<compile_context>
chip_gen: v7x
topology: tpu7x:2x2x1
jax: 0.10.0
libtpu: 0.0.40
codegen_flags: <defaults>
</compile_context>

<pallas_src>
import math

import jax
import jax.numpy as jnp
from jax import lax
from jax.experimental import pallas as pl
from jax.experimental.pallas import tpu as pltpu


# ---------------------------------------------------------------------------
# Model hyper-parameters (small, consistent with the module's forward).
# ---------------------------------------------------------------------------
VOCAB_SIZE = 512     # synthetic small vocab (gpt2's 50257 not needed here)
D_MODEL = 128
D_HIDDEN = 256
BATCH = 2
SEQ = 8

ROW_TILE = 128       # MXU-row-aligned token tile per grid step

_SQRT_2_OVER_PI = math.sqrt(2.0 / math.pi)


def _gelu_tanh(x):
    # tanh-approximate GELU (== torch nn.GELU(approximate='tanh')).
    # tanh lowers to the EUP (free slot here); exact erf would be a long VPU
    # polynomial chain.
    return 0.5 * x * (1.0 + jnp.tanh(_SQRT_2_OVER_PI * (x + 0.044715 * x * x * x)))


# ---------------------------------------------------------------------------
# Fused Pallas kernel: embedding gather (one-hot bf16 matmul) + 4x
# (Linear + GELU) + lm_head.  One grid step == one ROW_TILE of tokens; all
# weights are whole-array VMEM-resident blocks (constant index_map).
# ---------------------------------------------------------------------------
def fused_lm_kernel(ids_ref, embed_ref,
                    w1_ref, b1_ref, w2_ref, b2_ref,
                    w3_ref, b3_ref, w4_ref, b4_ref,
                    wlm_ref, out_ref):
    tm = ids_ref.shape[0]
    vocab = embed_ref.shape[0]

    # ---- fused embedding lookup as a one-hot matmul on the MXU ----
    ids = jnp.clip(ids_ref[...], 0, vocab - 1)                        # (tm, 1) int32
    onehot = (ids == lax.broadcasted_iota(jnp.int32, (tm, vocab), 1)
              ).astype(jnp.bfloat16)                                  # (tm, vocab)
    # One non-zero per row -> f32 accumulate is exactly the bf16 table value,
    # so the bf16 carry below is lossless.
    x = jnp.dot(onehot, embed_ref[...],
                preferred_element_type=jnp.float32).astype(jnp.bfloat16)

    def linear_gelu(h_bf16, w_ref, b_ref):
        y = jnp.dot(h_bf16, w_ref[...],
                    preferred_element_type=jnp.float32) + b_ref[...]  # f32 path
        return _gelu_tanh(y).astype(jnp.bfloat16)                     # bf16 carry

    h = linear_gelu(x, w1_ref, b1_ref)
    h = linear_gelu(h, w2_ref, b2_ref)
    h = linear_gelu(h, w3_ref, b3_ref)
    h = linear_gelu(h, w4_ref, b4_ref)

    logits = jnp.dot(h, wlm_ref[...],
                     preferred_element_type=jnp.float32)              # (tm, vocab) f32
    out_ref[...] = logits


def tiny_mlp_lm_forward(input_ids, params):
    """input_ids: (B, T) int32 -> logits (B, T, VOCAB_SIZE) float32."""
    b, t = input_ids.shape
    n = b * t

    # Pad the token axis to a whole number of ROW_TILE rows (extra rows are
    # nearly free: launch overhead and the weight DMA dominate at this size).
    n_tiles = pl.cdiv(n, ROW_TILE)
    n_pad = n_tiles * ROW_TILE
    ids = input_ids.reshape(n).astype(jnp.int32)
    ids = jnp.pad(ids, (0, n_pad - n))            # pad token id 0; rows sliced off
    ids2d = ids.reshape(n_pad, 1)

    weights = (params["embed"],
               params["w1"], params["b1"], params["w2"], params["b2"],
               params["w3"], params["b3"], params["w4"], params["b4"],
               params["wlm"])

    def resident_spec(arr):
        # Whole-array block with a constant block index: DMA'd once, stays
        # resident in VMEM across all row tiles of this call.
        return pl.BlockSpec(arr.shape, lambda i: (0, 0))

    in_specs = ([pl.BlockSpec((ROW_TILE, 1), lambda i: (i, 0))]
                + [resident_spec(a) for a in weights])
    out_specs = pl.BlockSpec((ROW_TILE, VOCAB_SIZE), lambda i: (i, 0))

    # Advisory cost estimate (helps XLA schedule the microsecond-scale call).
    flops = 2 * n_pad * (VOCAB_SIZE * D_MODEL            # one-hot embedding matmul
                         + D_MODEL * D_HIDDEN
                         + 2 * D_HIDDEN * D_HIDDEN
                         + D_HIDDEN * D_MODEL
                         + D_MODEL * VOCAB_SIZE)         # lm_head
    transcendentals = n_pad * (3 * D_HIDDEN + D_MODEL)   # one tanh per GELU output
    bytes_accessed = (ids2d.size * 4
                      + sum(int(a.size) * a.dtype.itemsize for a in weights)
                      + n_pad * VOCAB_SIZE * 4)

    logits_flat = pl.pallas_call(
        fused_lm_kernel,
        out_shape=jax.ShapeDtypeStruct((n_pad, VOCAB_SIZE), jnp.float32),
        grid=(n_tiles,),
        in_specs=in_specs,
        out_specs=out_specs,
        compiler_params=pltpu.CompilerParams(
            dimension_semantics=("parallel",)),          # shard tiles across v7x TCs
        cost_estimate=pl.CostEstimate(flops=flops,
                                      transcendentals=transcendentals,
                                      bytes_accessed=bytes_accessed),
    )(ids2d, *weights)
    return logits_flat[:n].reshape(b, t, VOCAB_SIZE)


# ---------------------------------------------------------------------------
# Parameter init (deterministic, synthetic).  Weights/embedding in bf16
# (MXU-native), biases in f32 (added on the f32 accumulate path).
# ---------------------------------------------------------------------------
def init_params(key):
    keys = jax.random.split(key, 10)

    def linear(kw, kb, fan_in, fan_out):
        bound = 1.0 / math.sqrt(fan_in)
        w = jax.random.uniform(kw, (fan_in, fan_out), jnp.float32, -bound, bound)
        b = jax.random.uniform(kb, (1, fan_out), jnp.float32, -bound, bound)
        return w.astype(jnp.bfloat16), b

    embed = jax.random.normal(keys[0], (VOCAB_SIZE, D_MODEL),
                              jnp.float32).astype(jnp.bfloat16)
    w1, b1 = linear(keys[1], keys[2], D_MODEL, D_HIDDEN)
    w2, b2 = linear(keys[3], keys[4], D_HIDDEN, D_HIDDEN)
    w3, b3 = linear(keys[5], keys[6], D_HIDDEN, D_HIDDEN)
    w4, b4 = linear(keys[7], keys[8], D_HIDDEN, D_MODEL)
    bound = 1.0 / math.sqrt(D_MODEL)
    wlm = jax.random.uniform(keys[9], (D_MODEL, VOCAB_SIZE), jnp.float32,
                             -bound, bound).astype(jnp.bfloat16)
    return dict(embed=embed, w1=w1, b1=b1, w2=w2, b2=b2, w3=w3, b3=b3,
                w4=w4, b4=b4, wlm=wlm)


# ---------------------------------------------------------------------------
# Pure-JAX reference with identical numerics (bf16 matmul inputs, f32 accum,
# bf16 activation carry, tanh-GELU) for the correctness check.
# ---------------------------------------------------------------------------
def reference_forward(input_ids, params):
    b, t = input_ids.shape
    ids = input_ids.reshape(-1)
    x = jnp.take(params["embed"], ids, axis=0)                     # bf16

    def linear_gelu(h, w, bias):
        y = jnp.dot(h, w, preferred_element_type=jnp.float32) + bias
        return _gelu_tanh(y).astype(jnp.bfloat16)

    h = linear_gelu(x, params["w1"], params["b1"])
    h = linear_gelu(h, params["w2"], params["b2"])
    h = linear_gelu(h, params["w3"], params["b3"])
    h = linear_gelu(h, params["w4"], params["b4"])
    logits = jnp.dot(h, params["wlm"], preferred_element_type=jnp.float32)
    return logits.reshape(b, t, VOCAB_SIZE)


if __name__ == "__main__":
    key = jax.random.PRNGKey(0)
    pkey, dkey = jax.random.split(key)
    params = init_params(pkey)
    input_ids = jax.random.randint(dkey, (BATCH, SEQ), 0, VOCAB_SIZE,
                                   dtype=jnp.int32)

    logits = tiny_mlp_lm_forward(input_ids, params)
    logits = jax.block_until_ready(logits)
    assert logits.shape == (BATCH, SEQ, VOCAB_SIZE)

    ref = reference_forward(input_ids, params)
    max_err = float(jnp.max(jnp.abs(logits - ref)))
    assert jnp.allclose(logits, ref, atol=2e-3, rtol=2e-3), (
        f"mismatch vs reference (max abs err {max_err})")

    print("KERNEL_OK")
</pallas_src>

<mosaic_0001>
module attributes {stable_mosaic.version = 11 : i64} {
  func.func @fused_lm_kernel(%arg0: i32, %arg1: memref<128x1xi32, #tpu.memory_space<vmem>>, %arg2: memref<512x128xbf16, #tpu.memory_space<vmem>>, %arg3: memref<128x256xbf16, #tpu.memory_space<vmem>>, %arg4: memref<1x256xf32, #tpu.memory_space<vmem>>, %arg5: memref<256x256xbf16, #tpu.memory_space<vmem>>, %arg6: memref<1x256xf32, #tpu.memory_space<vmem>>, %arg7: memref<256x256xbf16, #tpu.memory_space<vmem>>, %arg8: memref<1x256xf32, #tpu.memory_space<vmem>>, %arg9: memref<256x128xbf16, #tpu.memory_space<vmem>>, %arg10: memref<1x128xf32, #tpu.memory_space<vmem>>, %arg11: memref<128x512xbf16, #tpu.memory_space<vmem>>, %arg12: memref<128x512xf32, #tpu.memory_space<vmem>>) attributes {dimension_semantics = [#tpu.dimension_semantics<parallel>], iteration_bounds = array<i64: 1>, scalar_prefetch = 0 : i64, scratch_operands = 0 : i64, tpu.core_type = #tpu.core_type<tc>, window_params = [{transform_indices = @transform_0, window_bounds = array<i64: 128, 1>}, {pipeline_mode = #tpu.pipeline_mode<synchronous>, transform_indices = @transform_1, window_bounds = array<i64: 512, 128>}, {pipeline_mode = #tpu.pipeline_mode<synchronous>, transform_indices = @transform_2, window_bounds = array<i64: 128, 256>}, {pipeline_mode = #tpu.pipeline_mode<synchronous>, transform_indices = @transform_3, window_bounds = array<i64: 1, 256>}, {pipeline_mode = #tpu.pipeline_mode<synchronous>, transform_indices = @transform_4, window_bounds = array<i64: 256, 256>}, {pipeline_mode = #tpu.pipeline_mode<synchronous>, transform_indices = @transform_5, window_bounds = array<i64: 1, 256>}, {pipeline_mode = #tpu.pipeline_mode<synchronous>, transform_indices = @transform_6, window_bounds = array<i64: 256, 256>}, {pipeline_mode = #tpu.pipeline_mode<synchronous>, transform_indices = @transform_7, window_bounds = array<i64: 1, 256>}, {pipeline_mode = #tpu.pipeline_mode<synchronous>, transform_indices = @transform_8, window_bounds = array<i64: 256, 128>}, {pipeline_mode = #tpu.pipeline_mode<synchronous>, transform_indices = @transform_9, window_bounds = array<i64: 1, 128>}, {pipeline_mode = #tpu.pipeline_mode<synchronous>, transform_indices = @transform_10, window_bounds = array<i64: 128, 512>}, {transform_indices = @transform_11, window_bounds = array<i64: 128, 512>}]} {
    %c0 = arith.constant 0 : index
    %c0_0 = arith.constant 0 : index
    %0 = vector.load %arg1[%c0, %c0_0] : memref<128x1xi32, #tpu.memory_space<vmem>>, vector<128x1xi32>
    %c0_i32 = arith.constant 0 : i32
    %c511_i32 = arith.constant 511 : i32
    %1 = vector.broadcast %c0_i32 : i32 to vector<128x1xi32>
    %2 = arith.maxsi %1, %0 : vector<128x1xi32>
    %3 = vector.broadcast %c511_i32 : i32 to vector<128x1xi32>
    %4 = arith.minsi %3, %2 : vector<128x1xi32>
    %5 = tpu.iota {dimensions = array<i32: 1>} : vector<128x512xi32>
    %6 = vector.broadcast %4 : vector<128x1xi32> to vector<128x512xi32>
    %7 = arith.cmpi eq, %6, %5 : vector<128x512xi32>
    %8 = arith.extui %7 : vector<128x512xi1> to vector<128x512xi32>
    %9 = arith.sitofp %8 : vector<128x512xi32> to vector<128x512xf32>
    %10 = arith.truncf %9 : vector<128x512xf32> to vector<128x512xbf16>
    %c0_1 = arith.constant 0 : index
    %c0_2 = arith.constant 0 : index
    %11 = vector.load %arg2[%c0_1, %c0_2] : memref<512x128xbf16, #tpu.memory_space<vmem>>, vector<512x128xbf16>
    %cst = arith.constant dense<0.000000e+00> : vector<128x128xf32>
    %12 = tpu.matmul %10, %11, %cst {dimension_numbers = #tpu.dot_dimension_numbers<[1], [0], [0], [1], [0, 0, 1, 1], [], []>} : vector<128x512xbf16>, vector<512x128xbf16>, vector<128x128xf32> -> vector<128x128xf32>
    %13 = arith.truncf %12 : vector<128x128xf32> to vector<128x128xbf16>
    %c0_3 = arith.constant 0 : index
    %c0_4 = arith.constant 0 : index
    %14 = vector.load %arg3[%c0_3, %c0_4] : memref<128x256xbf16, #tpu.memory_space<vmem>>, vector<128x256xbf16>
    %cst_5 = arith.constant dense<0.000000e+00> : vector<128x256xf32>
    %15 = tpu.matmul %13, %14, %cst_5 {dimension_numbers = #tpu.dot_dimension_numbers<[1], [0], [0], [1], [0, 0, 1, 1], [], []>} : vector<128x128xbf16>, vector<128x256xbf16>, vector<128x256xf32> -> vector<128x256xf32>
    %c0_6 = arith.constant 0 : index
    %c0_7 = arith.constant 0 : index
    %16 = vector.load %arg4[%c0_6, %c0_7] : memref<1x256xf32, #tpu.memory_space<vmem>>, vector<1x256xf32>
    %17 = vector.broadcast %16 : vector<1x256xf32> to vector<128x256xf32>
    %18 = arith.addf %15, %17 : vector<128x256xf32>
    %cst_8 = arith.constant 5.000000e-01 : f32
    %19 = vector.broadcast %cst_8 : f32 to vector<128x256xf32>
    %20 = arith.mulf %19, %18 : vector<128x256xf32>
    %cst_9 = arith.constant 4.471500e-02 : f32
    %21 = vector.broadcast %cst_9 : f32 to vector<128x256xf32>
    %22 = arith.mulf %21, %18 : vector<128x256xf32>
    %23 = arith.mulf %22, %18 : vector<128x256xf32>
    %24 = arith.mulf %23, %18 : vector<128x256xf32>
    %25 = arith.addf %18, %24 : vector<128x256xf32>
    %cst_10 = arith.constant 0.797884583 : f32
    %26 = vector.broadcast %cst_10 : f32 to vector<128x256xf32>
    %27 = arith.mulf %26, %25 : vector<128x256xf32>
    %28 = math.tanh %27 : vector<128x256xf32>
    %cst_11 = arith.constant 1.000000e+00 : f32
    %29 = vector.broadcast %cst_11 : f32 to vector<128x256xf32>
    %30 = arith.addf %29, %28 : vector<128x256xf32>
    %31 = arith.mulf %20, %30 : vector<128x256xf32>
    %32 = arith.truncf %31 : vector<128x256xf32> to vector<128x256xbf16>
    %c0_12 = arith.constant 0 : index
    %c0_13 = arith.constant 0 : index
    %33 = vector.load %arg5[%c0_12, %c0_13] : memref<256x256xbf16, #tpu.memory_space<vmem>>, vector<256x256xbf16>
    %cst_14 = arith.constant dense<0.000000e+00> : vector<128x256xf32>
    %34 = tpu.matmul %32, %33, %cst_14 {dimension_numbers = #tpu.dot_dimension_numbers<[1], [0], [0], [1], [0, 0, 1, 1], [], []>} : vector<128x256xbf16>, vector<256x256xbf16>, vector<128x256xf32> -> vector<128x256xf32>
    %c0_15 = arith.constant 0 : index
    %c0_16 = arith.constant 0 : index
    %35 = vector.load %arg6[%c0_15, %c0_16] : memref<1x256xf32, #tpu.memory_space<vmem>>, vector<1x256xf32>
    %36 = vector.broadcast %35 : vector<1x256xf32> to vector<128x256xf32>
    %37 = arith.addf %34, %36 : vector<128x256xf32>
    %cst_17 = arith.constant 5.000000e-01 : f32
    %38 = vector.broadcast %cst_17 : f32 to vector<128x256xf32>
    %39 = arith.mulf %38, %37 : vector<128x256xf32>
    %cst_18 = arith.constant 4.471500e-02 : f32
    %40 = vector.broadcast %cst_18 : f32 to vector<128x256xf32>
    %41 = arith.mulf %40, %37 : vector<128x256xf32>
    %42 = arith.mulf %41, %37 : vector<128x256xf32>
    %43 = arith.mulf %42, %37 : vector<128x256xf32>
    %44 = arith.addf %37, %43 : vector<128x256xf32>
    %cst_19 = arith.constant 0.797884583 : f32
    %45 = vector.broadcast %cst_19 : f32 to vector<128x256xf32>
    %46 = arith.mulf %45, %44 : vector<128x256xf32>
    %47 = math.tanh %46 : vector<128x256xf32>
    %cst_20 = arith.constant 1.000000e+00 : f32
    %48 = vector.broadcast %cst_20 : f32 to vector<128x256xf32>
    %49 = arith.addf %48, %47 : vector<128x256xf32>
    %50 = arith.mulf %39, %49 : vector<128x256xf32>
    %51 = arith.truncf %50 : vector<128x256xf32> to vector<128x256xbf16>
    %c0_21 = arith.constant 0 : index
    %c0_22 = arith.constant 0 : index
    %52 = vector.load %arg7[%c0_21, %c0_22] : memref<256x256xbf16, #tpu.memory_space<vmem>>, vector<256x256xbf16>
    %cst_23 = arith.constant dense<0.000000e+00> : vector<128x256xf32>
    %53 = tpu.matmul %51, %52, %cst_23 {dimension_numbers = #tpu.dot_dimension_numbers<[1], [0], [0], [1], [0, 0, 1, 1], [], []>} : vector<128x256xbf16>, vector<256x256xbf16>, vector<128x256xf32> -> vector<128x256xf32>
    %c0_24 = arith.constant 0 : index
    %c0_25 = arith.constant 0 : index
    %54 = vector.load %arg8[%c0_24, %c0_25] : memref<1x256xf32, #tpu.memory_space<vmem>>, vector<1x256xf32>
    %55 = vector.broadcast %54 : vector<1x256xf32> to vector<128x256xf32>
    %56 = arith.addf %53, %55 : vector<128x256xf32>
    %cst_26 = arith.constant 5.000000e-01 : f32
    %57 = vector.broadcast %cst_26 : f32 to vector<128x256xf32>
    %58 = arith.mulf %57, %56 : vector<128x256xf32>
    %cst_27 = arith.constant 4.471500e-02 : f32
    %59 = vector.broadcast %cst_27 : f32 to vector<128x256xf32>
    %60 = arith.mulf %59, %56 : vector<128x256xf32>
    %61 = arith.mulf %60, %56 : vector<128x256xf32>
    %62 = arith.mulf %61, %56 : vector<128x256xf32>
    %63 = arith.addf %56, %62 : vector<128x256xf32>
    %cst_28 = arith.constant 0.797884583 : f32
    %64 = vector.broadcast %cst_28 : f32 to vector<128x256xf32>
    %65 = arith.mulf %64, %63 : vector<128x256xf32>
    %66 = math.tanh %65 : vector<128x256xf32>
    %cst_29 = arith.constant 1.000000e+00 : f32
    %67 = vector.broadcast %cst_29 : f32 to vector<128x256xf32>
    %68 = arith.addf %67, %66 : vector<128x256xf32>
    %69 = arith.mulf %58, %68 : vector<128x256xf32>
    %70 = arith.truncf %69 : vector<128x256xf32> to vector<128x256xbf16>
    %c0_30 = arith.constant 0 : index
    %c0_31 = arith.constant 0 : index
    %71 = vector.load %arg9[%c0_30, %c0_31] : memref<256x128xbf16, #tpu.memory_space<vmem>>, vector<256x128xbf16>
    %cst_32 = arith.constant dense<0.000000e+00> : vector<128x128xf32>
    %72 = tpu.matmul %70, %71, %cst_32 {dimension_numbers = #tpu.dot_dimension_numbers<[1], [0], [0], [1], [0, 0, 1, 1], [], []>} : vector<128x256xbf16>, vector<256x128xbf16>, vector<128x128xf32> -> vector<128x128xf32>
    %c0_33 = arith.constant 0 : index
    %c0_34 = arith.constant 0 : index
    %73 = vector.load %arg10[%c0_33, %c0_34] : memref<1x128xf32, #tpu.memory_space<vmem>>, vector<1x128xf32>
    %74 = vector.broadcast %73 : vector<1x128xf32> to vector<128x128xf32>
    %75 = arith.addf %72, %74 : vector<128x128xf32>
    %cst_35 = arith.constant 5.000000e-01 : f32
    %76 = vector.broadcast %cst_35 : f32 to vector<128x128xf32>
    %77 = arith.mulf %76, %75 : vector<128x128xf32>
    %cst_36 = arith.constant 4.471500e-02 : f32
    %78 = vector.broadcast %cst_36 : f32 to vector<128x128xf32>
    %79 = arith.mulf %78, %75 : vector<128x128xf32>
    %80 = arith.mulf %79, %75 : vector<128x128xf32>
    %81 = arith.mulf %80, %75 : vector<128x128xf32>
    %82 = arith.addf %75, %81 : vector<128x128xf32>
    %cst_37 = arith.constant 0.797884583 : f32
    %83 = vector.broadcast %cst_37 : f32 to vector<128x128xf32>
    %84 = arith.mulf %83, %82 : vector<128x128xf32>
    %85 = math.tanh %84 : vector<128x128xf32>
    %cst_38 = arith.constant 1.000000e+00 : f32
    %86 = vector.broadcast %cst_38 : f32 to vector<128x128xf32>
    %87 = arith.addf %86, %85 : vector<128x128xf32>
    %88 = arith.mulf %77, %87 : vector<128x128xf32>
    %89 = arith.truncf %88 : vector<128x128xf32> to vector<128x128xbf16>
    %c0_39 = arith.constant 0 : index
    %c0_40 = arith.constant 0 : index
    %90 = vector.load %arg11[%c0_39, %c0_40] : memref<128x512xbf16, #tpu.memory_space<vmem>>, vector<128x512xbf16>
    %cst_41 = arith.constant dense<0.000000e+00> : vector<128x512xf32>
    %91 = tpu.matmul %89, %90, %cst_41 {dimension_numbers = #tpu.dot_dimension_numbers<[1], [0], [0], [1], [0, 0, 1, 1], [], []>} : vector<128x128xbf16>, vector<128x512xbf16>, vector<128x512xf32> -> vector<128x512xf32>
    %c0_42 = arith.constant 0 : index
    %c0_43 = arith.constant 0 : index
    %92 = vector.load %arg12[%c0_42, %c0_43] : memref<128x512xf32, #tpu.memory_space<vmem>>, vector<128x512xf32>
    tpu.vector_store %arg12[%c0_42, %c0_43], %91 {strides = array<i32>} : memref<128x512xf32, #tpu.memory_space<vmem>>, vector<128x512xf32>,
    return
  }
  func.func @transform_0(%arg0: i32) -> (i32, i32) {
    %c0_i32 = arith.constant 0 : i32
    %c0_i32_0 = arith.constant 0 : i32
    return %arg0, %c0_i32 : i32, i32
  }
  func.func @transform_1(%arg0: i32) -> (i32, i32) {
    %c0_i32 = arith.constant 0 : i32
    %c0_i32_0 = arith.constant 0 : i32
    %c0_i32_1 = arith.constant 0 : i32
    return %c0_i32, %c0_i32_0 : i32, i32
  }
  func.func @transform_2(%arg0: i32) -> (i32, i32) {
    %c0_i32 = arith.constant 0 : i32
    %c0_i32_0 = arith.constant 0 : i32
    %c0_i32_1 = arith.constant 0 : i32
    return %c0_i32, %c0_i32_0 : i32, i32
  }
  func.func @transform_3(%arg0: i32) -> (i32, i32) {
    %c0_i32 = arith.constant 0 : i32
    %c0_i32_0 = arith.constant 0 : i32
    %c0_i32_1 = arith.constant 0 : i32
    return %c0_i32, %c0_i32_0 : i32, i32
  }
  func.func @transform_4(%arg0: i32) -> (i32, i32) {
    %c0_i32 = arith.constant 0 : i32
    %c0_i32_0 = arith.constant 0 : i32
    %c0_i32_1 = arith.constant 0 : i32
    return %c0_i32, %c0_i32_0 : i32, i32
  }
  func.func @transform_5(%arg0: i32) -> (i32, i32) {
    %c0_i32 = arith.constant 0 : i32
    %c0_i32_0 = arith.constant 0 : i32
    %c0_i32_1 = arith.constant 0 : i32
    return %c0_i32, %c0_i32_0 : i32, i32
  }
  func.func @transform_6(%arg0: i32) -> (i32, i32) {
    %c0_i32 = arith.constant 0 : i32
    %c0_i32_0 = arith.constant 0 : i32
    %c0_i32_1 = arith.constant 0 : i32
    return %c0_i32, %c0_i32_0 : i32, i32
  }
  func.func @transform_7(%arg0: i32) -> (i32, i32) {
    %c0_i32 = arith.constant 0 : i32
    %c0_i32_0 = arith.constant 0 : i32
    %c0_i32_1 = arith.constant 0 : i32
    return %c0_i32, %c0_i32_0 : i32, i32
  }
  func.func @transform_8(%arg0: i32) -> (i32, i32) {
    %c0_i32 = arith.constant 0 : i32
    %c0_i32_0 = arith.constant 0 : i32
    %c0_i32_1 = arith.constant 0 : i32
    return %c0_i32, %c0_i32_0 : i32, i32
  }
  func.func @transform_9(%arg0: i32) -> (i32, i32) {
    %c0_i32 = arith.constant 0 : i32
    %c0_i32_0 = arith.constant 0 : i32
    %c0_i32_1 = arith.constant 0 : i32
    return %c0_i32, %c0_i32_0 : i32, i32
  }
  func.func @transform_10(%arg0: i32) -> (i32, i32) {
    %c0_i32 = arith.constant 0 : i32
    %c0_i32_0 = arith.constant 0 : i32
    %c0_i32_1 = arith.constant 0 : i32
    return %c0_i32, %c0_i32_0 : i32, i32
  }
  func.func @transform_11(%arg0: i32) -> (i32, i32) {
    %c0_i32 = arith.constant 0 : i32
    %c0_i32_0 = arith.constant 0 : i32
    return %arg0, %c0_i32 : i32, i32
  }
}

</mosaic_0001>

<bundles_post_ra>
// kernel: tpu_custom_call.1
= control target key start
LH: loop header
LB: loop body
LE: loop exit
PB: predicated region body
PF: predicated region fallthrough
CT: control target
= control target key end

     0   :  { %16 = vsyncpa [#allocation3], 0  ;;  %s5871_s0 = inlined_call_operand.vmem [shape: s32[128,1], index: 0, kind: input, shape index: {}]   ;;  %s5872_s1 = inlined_call_operand.hbm [shape: bf16[512,128], index: 1, kind: input, shape index: {}]   ;;  %s5873_s2 = inlined_call_operand.vmem [shape: bf16[128,256], index: 2, kind: input, shape index: {}]   ;;  %s5874_s3 = inlined_call_operand.vmem [shape: f32[1,256], index: 3, kind: input, shape index: {}]   ;;  %s5875_s4 = inlined_call_operand.hbm [shape: bf16[256,256], index: 4, kind: input, shape index: {}]   ;;  %s5876_s5 = inlined_call_operand.vmem [shape: f32[1,256], index: 5, kind: input, shape index: {}]   ;;  %s5877_s6 = inlined_call_operand.hbm [shape: bf16[256,256], index: 6, kind: input, shape index: {}]   ;;  %s5878_s7 = inlined_call_operand.vmem [shape: f32[1,256], index: 7, kind: input, shape index: {}]   ;;  %s5879_s8 = inlined_call_operand.hbm [shape: bf16[256,128], index: 8, kind: input, shape index: {}]   ;;  %s5880_s9 = inlined_call_operand.vmem [shape: f32[1,128], index: 9, kind: input, shape index: {}]   ;;  %s5881_s10 = inlined_call_operand.hbm [shape: bf16[128,512], index: 10, kind: input, shape index: {}]   ;;  %s5882_s11 = inlined_call_operand.hbm [shape: f32[128,512], index: 11, kind: output, shape index: {}]  }
   0x1   :  { %17 = vsyncpa [#allocation6], 0 }
   0x2   :  { %18 = vsyncpa [#allocation9], 0 }
   0x3   :  { %19 = vsyncpa [#allocation4], 0  ;;  %s4654_s17 = smov [#allocation5]   ;;  %s4514_s21 = scalar_lea.hbm %s5875_s4, 4096 }
   0x4   :  { %s43_s18 = sshll.u32 %s4654_s17, 4  ;;  %p4515_p0 = scmp.ne.s32.totalorder %s5875_s4, %s4514_s21  ;;  %s44_s18 = int_to_ptr.vmem [resolvable:$true] %s43_s18 }
   0x5   :  { %p4518_p1 = scmp.lt.u32.totalorder %s4514_s21, %s5875_s4 }
   0x7   :  { %p4520_p2 = pnand %p4518_p1, %p4515_p0 }
   0x9   :  { %4523 = shalt.err (!%p4520_p2)
}
   0xa   :  { %s4524_s26 = scalar_lea.vmem %s44_s18, 4096  ;;  %p4529_p4 = scmp.lt.s32.totalorder %s44_s18, %s44_s18 }
   0xb   :  { %p4525_p3 = scmp.ne.s32.totalorder %s44_s18, %s4524_s26  ;;  %p4530_p5 = scmp.lt.s32.totalorder %s4524_s26, %s4524_s26 }
   0xd   :  { %p4531_p6 = por %p4530_p5, %p4529_p4 }
   0xf   :  { %p4532_p7 = pnand %p4531_p6, %p4525_p3 }
  0x11   :  { %4535 = shalt.err (!%p4532_p7)
}
  0x12   :  { %s4655_s27 = smov 128   ;;  %s4656_s28 = smov 8  }
  0x13   :  { %49 = dma.hbm_to_vmem [thread:$0]  %s5875_s4, 4096, %s44_s18, [#allocation6], %s4655_s27, %s4655_s27, %s4656_s28  }
  0x14   :  { %s4657_s12 = smov [#allocation8]   ;;  %s4658_s14 = smov [#allocation2]  }
  0x15   :  { %s71_s13 = sshll.u32 %s4657_s12, 4  ;;  %s27_s15 = sshll.u32 %s4658_s14, 4  ;;  %s72_s13 = int_to_ptr.vmem [resolvable:$true] %s71_s13  ;;  %s28_s15 = int_to_ptr.vmem [resolvable:$true] %s27_s15 }
  0x16   :  { %s4536_s19 = scalar_lea.hbm %s5879_s8, 2048 }
  0x17   :  { %p4537_p8 = scmp.ne.s32.totalorder %s5879_s8, %s4536_s19  ;;  %p4540_p9 = scmp.lt.u32.totalorder %s4536_s19, %s5879_s8 }
  0x19   :  { %p4542_p10 = pnand %p4540_p9, %p4537_p8 }
  0x1b   :  { %4545 = shalt.err (!%p4542_p10)
}
  0x1c   :  { %s4546_s4 = scalar_lea.vmem %s72_s13, 2048  ;;  %p4551_p12 = scmp.lt.s32.totalorder %s72_s13, %s72_s13 }
  0x1d   :  { %p4547_p11 = scmp.ne.s32.totalorder %s72_s13, %s4546_s4  ;;  %p4552_p13 = scmp.lt.s32.totalorder %s4546_s4, %s4546_s4 }
  0x1f   :  { %p4553_p0 = por %p4552_p13, %p4551_p12 }
  0x21   :  { %p4554_p1 = pnand %p4553_p0, %p4547_p11 }
  0x23   :  { %4557 = shalt.err (!%p4554_p1)
}
  0x24   :  { %s4659_s18 = smov 64   ;;  %s4660_s24 = smov 4  }
  0x25   :  { %77 = dma.hbm_to_vmem [thread:$0]  %s5879_s8, 2048, %s72_s13, [#allocation9], %s4659_s18, %s4659_s18, %s4660_s24  }
  0x26   :  { %s4558_s12 = scalar_lea.hbm %s5872_s1, 4096 }
  0x27   :  { %p4559_p2 = scmp.ne.s32.totalorder %s5872_s1, %s4558_s12  ;;  %p4562_p3 = scmp.lt.u32.totalorder %s4558_s12, %s5872_s1 }
  0x29   :  { %p4564_p4 = pnand %p4562_p3, %p4559_p2 }
  0x2b   :  { %4567 = shalt.err (!%p4564_p4)
}
  0x2c   :  { %s4568_s20 = scalar_lea.vmem %s28_s15, 4096  ;;  %p4573_p6 = scmp.lt.s32.totalorder %s28_s15, %s28_s15 }
  0x2d   :  { %p4569_p5 = scmp.ne.s32.totalorder %s28_s15, %s4568_s20  ;;  %p4574_p7 = scmp.lt.s32.totalorder %s4568_s20, %s4568_s20 }
  0x2f   :  { %p4575_p8 = por %p4574_p7, %p4573_p6 }
  0x31   :  { %p4576_p9 = pnand %p4575_p8, %p4569_p5 }
  0x33   :  { %4579 = shalt.err (!%p4576_p9)
}
  0x34   :  { %33 = dma.hbm_to_vmem [thread:$0]  %s5872_s1, 4096, %s28_s15, [#allocation3], %s4659_s18, %s4659_s18, %s4660_s24  }
  0x35   :  { %s4661_s21 = smov [#allocation7]   ;;  %s4662_s23 = smov [#allocation10]  }
  0x36   :  { %s57_s22 = sshll.u32 %s4661_s21, 4  ;;  %s85_s4 = sshll.u32 %s4662_s23, 4  ;;  %s58_s22 = int_to_ptr.vmem [resolvable:$true] %s57_s22  ;;  %s86_s4 = int_to_ptr.vmem [resolvable:$true] %s85_s4 }
  0x37   :  { %s4580_s29 = scalar_lea.hbm %s5877_s6, 4096 }
  0x38   :  { %p4581_p10 = scmp.ne.s32.totalorder %s5877_s6, %s4580_s29  ;;  %p4584_p11 = scmp.lt.u32.totalorder %s4580_s29, %s5877_s6 }
  0x3a   :  { %p4586_p12 = pnand %p4584_p11, %p4581_p10 }
  0x3c   :  { %4589 = shalt.err (!%p4586_p12)
}
  0x3d   :  { %s4590_s1 = scalar_lea.vmem %s58_s22, 4096  ;;  %p4595_p0 = scmp.lt.s32.totalorder %s58_s22, %s58_s22 }
  0x3e   :  { %p4591_p13 = scmp.ne.s32.totalorder %s58_s22, %s4590_s1  ;;  %p4596_p1 = scmp.lt.s32.totalorder %s4590_s1, %s4590_s1 }
  0x40   :  { %p4597_p2 = por %p4596_p1, %p4595_p0 }
  0x42   :  { %p4598_p3 = pnand %p4597_p2, %p4591_p13 }
  0x44   :  { %4601 = shalt.err (!%p4598_p3)
}
  0x45   :  { %63 = dma.hbm_to_vmem [thread:$0]  %s5877_s6, 4096, %s58_s22, [#allocation6], %s4655_s27, %s4655_s27, %s4656_s28  }
  0x46   :  { %s4602_s19 = scalar_lea.hbm %s5881_s10, 4096 }
  0x47   :  { %p4603_p4 = scmp.ne.s32.totalorder %s5881_s10, %s4602_s19  ;;  %p4606_p5 = scmp.lt.u32.totalorder %s4602_s19, %s5881_s10 }
  0x49   :  { %p4608_p6 = pnand %p4606_p5, %p4603_p4 }
  0x4b   :  { %4611 = shalt.err (!%p4608_p6)
}
  0x4c   :  { %s4612_s23 = scalar_lea.vmem %s86_s4, 4096  ;;  %p4617_p8 = scmp.lt.s32.totalorder %s86_s4, %s86_s4 }
  0x4d   :  { %p4613_p7 = scmp.ne.s32.totalorder %s86_s4, %s4612_s23  ;;  %p4618_p9 = scmp.lt.s32.totalorder %s4612_s23, %s4612_s23 }
  0x4f   :  { %p4619_p10 = por %p4618_p9, %p4617_p8 }
  0x51   :  { %p4620_p11 = pnand %p4619_p10, %p4613_p7 }
  0x53   :  { %4623 = shalt.err (!%p4620_p11)
}
  0x54   :  { %s4663_s6 = smov 256   ;;  %s4664_s27 = smov 16  }
  0x55   :  { %91 = dma.hbm_to_vmem [thread:$0]  %s5881_s10, 4096, %s86_s4, [#allocation9], %s4663_s6, %s4663_s6, %s4664_s27  }
  0x56   :  { %4646 = dma.done.wait [#allocation3], 4096  }
  0x57   :  { %4647 = vsyncadd [#allocation3], 4294963200 }
  0x58   :  { %4648 = dma.done.wait [#allocation6], 8192  }
  0x59   :  { %4649 = vsyncadd [#allocation6], 4294959104 }
  0x5a   :  { %4650 = dma.done.wait [#allocation9], 6144  }
  0x5b   :  { %4651 = vsyncadd [#allocation9], 4294961152  ;;  %v4665_v0 = vmov 0   ;;  %v110_v1 = vld [vmem:[%s5871_s0 + $0x10] sm:$0xff]  ;;  %v108_v2 = vld [vmem:[%s5871_s0] sm:$0xff] }
  0x5c   :  { %4073 = vset.pattern.permute.xlu1 %v4665_v0  ;;  %4072 = vset.pattern.permute.xlu0 %v4665_v0  ;;  %v111_v3 = vld [vmem:[%s5871_s0 + $0x18] sm:$0xff]  ;;  %vm128_vm0 = vcmp.gt.s32.totalorder %v110_v1, 0  ;;  %vm124_vm1 = vcmp.gt.s32.totalorder %v108_v2, 0  ;;  %v109_v4 = vld [vmem:[%s5871_s0 + $0x8] sm:$0xff]  ;;  %v112_v9 = vld [vmem:[%s5871_s0 + $0x20] sm:$0xff] }
  0x5d   :  { %vm130_vm2 = vcmp.gt.s32.totalorder %v111_v3, 0  ;;  %v113_v5 = vld [vmem:[%s5871_s0 + $0x28] sm:$0xff]  ;;  %v129_v6 = vsel %vm128_vm0, %v110_v1, 0  ;;  %v125_v7 = vsel %vm124_vm1, %v108_v2, 0  ;;  %vm126_vm3 = vcmp.gt.s32.totalorder %v109_v4, 0  ;;  %v115_v10 = vld [vmem:[%s5871_s0 + $0x38] sm:$0xff] }
  0x5e   :  { %v131_v8 = vsel %vm130_vm2, %v111_v3, 0  ;;  %vm160_vm4 = vcmp.lt.s32.totalorder %v129_v6, 511  ;;  %vm156_vm5 = vcmp.lt.s32.totalorder %v125_v7, 511  ;;  %v127_v11 = vsel %vm126_vm3, %v109_v4, 0  ;;  %v114_v12 = vld [vmem:[%s5871_s0 + $0x30] sm:$0xff]  ;;  %v117_v16 = vld [vmem:[%s5871_s0 + $0x48] sm:$0xff] }
  0x5f   :  { %vm162_vm6 = vcmp.lt.s32.totalorder %v131_v8, 511  ;;  %v161_v13 = vsel %vm160_vm4, %v129_v6, 511  ;;  %v157_v14 = vsel %vm156_vm5, %v125_v7, 511  ;;  %vm158_vm7 = vcmp.lt.s32.totalorder %v127_v11, 511  ;;  %v116_v20 = vld [vmem:[%s5871_s0 + $0x40] sm:$0xff]  ;;  %v119_v21 = vld [vmem:[%s5871_s0 + $0x58] sm:$0xff] }
  0x60   :  { %200 = vperm.xlu1 %4073, %v161_v13   ;;  %194 = vperm.xlu0 %4072, %v157_v14   ;;  %v163_v15 = vsel %vm162_vm6, %v131_v8, 511  ;;  %vm134_vm8 = vcmp.gt.s32.totalorder %v113_v5, 0  ;;  %vm132_vm9 = vcmp.gt.s32.totalorder %v112_v9, 0  ;;  %vm138_vm10 = vcmp.gt.s32.totalorder %v115_v10, 0  ;;  %v118_v22 = vld [vmem:[%s5871_s0 + $0x50] sm:$0xff]  ;;  %v4074_v27 = vld [vmem:[#allocation2 + $0x40] sm:$0xff]  }
  0x61   :  { %v159_v17 = vsel %vm158_vm7, %v127_v11, 511  ;;  %v135_v18 = vsel %vm134_vm8, %v113_v5, 0  ;;  %v133_v19 = vsel %vm132_vm9, %v112_v9, 0  ;;  %vm136_vm11 = vcmp.gt.s32.totalorder %v114_v12, 0  ;;  %v4075_v28 = vld [vmem:[#allocation2 + $0xc0] sm:$0xff]   ;;  %v121_v33 = vld [vmem:[%s5871_s0 + $0x68] sm:$0xff]  ;;  %3864 = vmatprep.subr.bf16.mxu0 %v4074_v27 }
  0x62   :  { %vm166_vm12 = vcmp.lt.s32.totalorder %v135_v18, 511  ;;  %vm164_vm13 = vcmp.lt.s32.totalorder %v133_v19, 511  ;;  %v139_v24 = vsel %vm138_vm10, %v115_v10, 0  ;;  %v137_v25 = vsel %vm136_vm11, %v114_v12, 0  ;;  %3928 = vmatprep.subr.bf16.mxu1 %v4075_v28  ;;  %v120_v34 = vld [vmem:[%s5871_s0 + $0x60] sm:$0xff]  ;;  %v123_v35 = vld [vmem:[%s5871_s0 + $0x78] sm:$0xff] }
  0x63   :  { %v167_v23 = vsel %vm166_vm12, %v135_v18, 511  ;;  %v165_v26 = vsel %vm164_vm13, %v133_v19, 511  ;;  %vm142_vm14 = vcmp.gt.s32.totalorder %v117_v16, 0  ;;  %vm140_vm15 = vcmp.gt.s32.totalorder %v116_v20, 0  ;;  %v4076_v38 = vld [vmem:[#allocation2] sm:$0xff]   ;;  %v122_v41 = vld [vmem:[%s5871_s0 + $0x70] sm:$0xff] }
  0x64   :  { %203 = vperm.xlu1 %4073, %v163_v15   ;;  %197 = vperm.xlu0 %4072, %v159_v17   ;;  %vm146_vm0 = vcmp.gt.s32.totalorder %v119_v21, 0  ;;  %v143_v29 = vsel %vm142_vm14, %v117_v16, 0  ;;  %v141_v30 = vsel %vm140_vm15, %v116_v20, 0  ;;  %vm144_vm1 = vcmp.gt.s32.totalorder %v118_v22, 0  ;;  %v4077_v39 = vld [vmem:[#allocation2 + $0x80] sm:$0xff]   ;;  %v4078_v46 = vld [vmem:[#allocation2 + $0x48] sm:$0xff]  }
  0x65   :  { %v147_v31 = vsel %vm146_vm0, %v119_v21, 0  ;;  %vm170_vm2 = vcmp.lt.s32.totalorder %v139_v24, 511  ;;  %vm168_vm3 = vcmp.lt.s32.totalorder %v137_v25, 511  ;;  %v145_v32 = vsel %vm144_vm1, %v118_v22, 0  ;;  %3865 = vmatpush3.bf16.msra.mxu0 %v4076_v38  ;;  %3929 = vmatpush3.bf16.msra.mxu1 %v4077_v39  ;;  %v4079_v48 = vld [vmem:[#allocation2 + $0xc8] sm:$0xff]   ;;  %v4082_v52 = vld [vmem:[#allocation2 + $0x50] sm:$0xff]  }
  0x66   :  { %vm174_vm4 = vcmp.lt.s32.totalorder %v143_v29, 511  ;;  %vm172_vm5 = vcmp.lt.s32.totalorder %v141_v30, 511  ;;  %vm178_vm6 = vcmp.lt.s32.totalorder %v147_v31, 511  ;;  %vm176_vm7 = vcmp.lt.s32.totalorder %v145_v32, 511  ;;  %3866 = vmatprep.subr.bf16.mxu0 %v4078_v46  ;;  %v4080_v50 = vld [vmem:[#allocation2 + $0x8] sm:$0xff]   ;;  %3930 = vmatprep.subr.bf16.mxu1 %v4079_v48  ;;  %v4083_v53 = vld [vmem:[#allocation2 + $0xd0] sm:$0xff]  }
  0x67   :  { %v171_v36 = vsel %vm170_vm2, %v139_v24, 511  ;;  %v169_v37 = vsel %vm168_vm3, %v137_v25, 511  ;;  %vm150_vm8 = vcmp.gt.s32.totalorder %v121_v33, 0  ;;  %v175_v40 = vsel %vm174_vm4, %v143_v29, 511  ;;  %v4081_v51 = vld [vmem:[#allocation2 + $0x88] sm:$0xff]   ;;  %v4084_v54 = vld [vmem:[#allocation2 + $0x10] sm:$0xff]  }
  0x68   :  { %209 = vperm.xlu1 %4073, %v167_v23   ;;  %206 = vperm.xlu0 %4072, %v165_v26   ;;  %vm148_vm9 = vcmp.gt.s32.totalorder %v120_v34, 0  ;;  %v173_v42 = vsel %vm172_vm5, %v141_v30, 511  ;;  %v179_v43 = vsel %vm178_vm6, %v147_v31, 511  ;;  %v177_v44 = vsel %vm176_vm7, %v145_v32, 511  ;;  %v4085_v56 = vld [vmem:[#allocation2 + $0x90] sm:$0xff]   ;;  %v4086_v58 = vld [vmem:[#allocation2 + $0x58] sm:$0xff]  }
  0x69   :  { %vm154_vm10 = vcmp.gt.s32.totalorder %v123_v35, 0  ;;  %v151_v45 = vsel %vm150_vm8, %v121_v33, 0  ;;  %v149_v47 = vsel %vm148_vm9, %v120_v34, 0  ;;  %vm152_vm11 = vcmp.gt.s32.totalorder %v122_v41, 0  ;;  %3867 = vmatpush3.bf16.msra.mxu0 %v4080_v50  ;;  %3931 = vmatpush3.bf16.msra.mxu1 %v4081_v51  ;;  %v4087_v60 = vld [vmem:[#allocation2 + $0xd8] sm:$0xff]   ;;  %v4090_v1 = vld [vmem:[#allocation2 + $0x60] sm:$0xff]  }
  0x6a   :  { %v155_v49 = vsel %vm154_vm10, %v123_v35, 0  ;;  %vm182_vm12 = vcmp.lt.s32.totalorder %v151_v45, 511  ;;  %vm180_vm13 = vcmp.lt.s32.totalorder %v149_v47, 511  ;;  %3868 = vmatprep.subr.bf16.mxu0 %v4082_v52  ;;  %v153_v55 = vsel %vm152_vm11, %v122_v41, 0  ;;  %3932 = vmatprep.subr.bf16.mxu1 %v4083_v53  ;;  %v4088_v61 = vld [vmem:[#allocation2 + $0x18] sm:$0xff]   ;;  %v4091_v3 = vld [vmem:[#allocation2 + $0xe0] sm:$0xff]  }
  0x6b   :  { %vm186_vm14 = vcmp.lt.s32.totalorder %v155_v49, 511  ;;  %v183_v57 = vsel %vm182_vm12, %v151_v45, 511  ;;  %v181_v59 = vsel %vm180_vm13, %v149_v47, 511  ;;  %vm184_vm15 = vcmp.lt.s32.totalorder %v153_v55, 511  ;;  %v4089_v62 = vld [vmem:[#allocation2 + $0x98] sm:$0xff]   ;;  %v4092_v4 = vld [vmem:[#allocation2 + $0x20] sm:$0xff]  }
  0x6c   :  { %215 = vperm.xlu1 %4073, %v171_v36   ;;  %212 = vperm.xlu0 %4072, %v169_v37   ;;  %v187_v63 = vsel %vm186_vm14, %v155_v49, 511  ;;  %v185_v2 = vsel %vm184_vm15, %v153_v55, 511  ;;  %v4093_v5 = vld [vmem:[#allocation2 + $0xa0] sm:$0xff]   ;;  %v4094_v6 = vld [vmem:[#allocation2 + $0x68] sm:$0xff]   ;;  %v4098_v10 = vld [vmem:[#allocation2 + $0x70] sm:$0xff]   ;;  %v188_v19 = vlaneseq }
  0x6d   :  { %3869 = vmatpush3.bf16.msra.mxu0 %v4084_v54  ;;  %3933 = vmatpush3.bf16.msra.mxu1 %v4085_v56  ;;  %v4095_v7 = vld [vmem:[#allocation2 + $0xe8] sm:$0xff]   ;;  %v4099_v11 = vld [vmem:[#allocation2 + $0xf0] sm:$0xff]   ;;  %v4102_v14 = vld [vmem:[#allocation2 + $0x78] sm:$0xff]   ;;  %v4666_v28 = vmov 1.0|1.0  }
  0x6e   :  { %3870 = vmatprep.subr.bf16.mxu0 %v4086_v58  ;;  %3934 = vmatprep.subr.bf16.mxu1 %v4087_v60  ;;  %v4096_v8 = vld [vmem:[#allocation2 + $0x28] sm:$0xff]   ;;  %v4100_v12 = vld [vmem:[#allocation2 + $0x30] sm:$0xff]   ;;  %v4103_v15 = vld [vmem:[#allocation2 + $0xf8] sm:$0xff]   ;;  %v4851_v20 = vand.u32 127, %v188_v19 }
  0x6f   :  { %v4097_v9 = vld [vmem:[#allocation2 + $0xa8] sm:$0xff]   ;;  %v4101_v13 = vld [vmem:[#allocation2 + $0xb0] sm:$0xff]   ;;  %v4104_v16 = vld [vmem:[#allocation2 + $0x38] sm:$0xff]  }
  0x70   :  { %221 = vperm.xlu1 %4073, %v175_v40   ;;  %218 = vperm.xlu0 %4072, %v173_v42   ;;  %v4105_v17 = vld [vmem:[#allocation2 + $0xb8] sm:$0xff]   ;;  %v4108_v18 = vld [vmem:[%s5873_s2 + $0x4] ss:$8 sps:$4 sm:$0xff]   ;;  %v4854_v23 = vadd.s32 128, %v4851_v20  ;;  %v4857_v24 = vadd.s32 384, %v4851_v20  ;;  %v4860_v26 = vadd.s32 256, %v4851_v20 }
  0x71   :  { %3871 = vmatpush3.bf16.msra.mxu0 %v4088_v61  ;;  %3935 = vmatpush3.bf16.msra.mxu1 %v4089_v62  ;;  %v4106_v29 = vld [vmem:[%s5873_s2] ss:$8 sps:$4 sm:$0xff]   ;;  %v4111_v30 = vld [vmem:[%s5873_s2 + $0x14] ss:$8 sps:$4 sm:$0xff]   ;;  %v4109_v33 = vld [vmem:[%s5873_s2 + $0x10] ss:$8 sps:$4 sm:$0xff]  }
  0x72   :  { %3872 = vmatprep.subr.bf16.mxu0 %v4090_v1  ;;  %3936 = vmatprep.subr.bf16.mxu1 %v4091_v3  ;;  %v4114_v34 = vld [vmem:[%s5873_s2 + $0x24] ss:$8 sps:$4 sm:$0xff]   ;;  %v4112_v35 = vld [vmem:[%s5873_s2 + $0x20] ss:$8 sps:$4 sm:$0xff]   ;;  %v4117_v36 = vld [vmem:[%s5873_s2 + $0x34] ss:$8 sps:$4 sm:$0xff]  }
  0x73   :  { %v4115_v39 = vld [vmem:[%s5873_s2 + $0x30] ss:$8 sps:$4 sm:$0xff]   ;;  %v4120_v40 = vld [vmem:[%s5873_s2 + $0x44] ss:$8 sps:$4 sm:$0xff]   ;;  %v4118_v41 = vld [vmem:[%s5873_s2 + $0x40] ss:$8 sps:$4 sm:$0xff]  }
  0x74   :  { %227 = vperm.xlu1 %4073, %v179_v43   ;;  %224 = vperm.xlu0 %4072, %v177_v44   ;;  %v4123_v42 = vld [vmem:[%s5873_s2 + $0x54] ss:$8 sps:$4 sm:$0xff]   ;;  %v4121_v45 = vld [vmem:[%s5873_s2 + $0x50] ss:$8 sps:$4 sm:$0xff]   ;;  %v4126_v46 = vld [vmem:[%s5873_s2 + $0x64] ss:$8 sps:$4 sm:$0xff]  }
  0x75   :  { %3873 = vmatpush3.bf16.msra.mxu0 %v4092_v4  ;;  %3937 = vmatpush3.bf16.msra.mxu1 %v4093_v5  ;;  %v4124_v47 = vld [vmem:[%s5873_s2 + $0x60] ss:$8 sps:$4 sm:$0xff]   ;;  %v4127_v54 = vld [vmem:[%s5873_s2 + $0x70] ss:$8 sps:$4 sm:$0xff]   ;;  %v4129_v55 = vld [vmem:[%s5873_s2 + $0x74] ss:$8 sps:$4 sm:$0xff]  }
  0x76   :  { %3874 = vmatprep.subr.bf16.mxu0 %v4094_v6  ;;  %3938 = vmatprep.subr.bf16.mxu1 %v4095_v7  ;;  %v4130_v56 = vld [vmem:[#allocation5] ss:$8 sps:$4 sm:$0xff]   ;;  %v4135_v58 = vld [vmem:[#allocation5 + $0x14] ss:$8 sps:$4 sm:$0xff]   ;;  %v4138_v60 = vld [vmem:[#allocation5 + $0x24] ss:$8 sps:$4 sm:$0xff]  }
  0x77   :  { %v4136_v61 = vld [vmem:[#allocation5 + $0x20] ss:$8 sps:$4 sm:$0xff]   ;;  %v4141_v62 = vld [vmem:[#allocation5 + $0x34] ss:$8 sps:$4 sm:$0xff]   ;;  %v4144_v1 = vld [vmem:[#allocation5 + $0x44] ss:$8 sps:$4 sm:$0xff]  }
  0x78   :  { %233 = vperm.xlu1 %4073, %v183_v57   ;;  %230 = vperm.xlu0 %4072, %v181_v59   ;;  %v4132_v57 = vld [vmem:[#allocation5 + $0x4] ss:$8 sps:$4 sm:$0xff]   ;;  %v4133_v59 = vld [vmem:[#allocation5 + $0x10] ss:$8 sps:$4 sm:$0xff]   ;;  %v4147_v3 = vld [vmem:[#allocation5 + $0x54] ss:$8 sps:$4 sm:$0xff]  }
  0x79   :  { %3875 = vmatpush3.bf16.msra.mxu0 %v4096_v8  ;;  %3939 = vmatpush3.bf16.msra.mxu1 %v4097_v9  ;;  %v4145_v4 = vld [vmem:[#allocation5 + $0x50] ss:$8 sps:$4 sm:$0xff]   ;;  %v4150_v5 = vld [vmem:[#allocation5 + $0x64] ss:$8 sps:$4 sm:$0xff]   ;;  %v4148_v6 = vld [vmem:[#allocation5 + $0x60] ss:$8 sps:$4 sm:$0xff]  }
  0x7a   :  { %3876 = vmatprep.subr.bf16.mxu0 %v4098_v10  ;;  %3940 = vmatprep.subr.bf16.mxu1 %v4099_v11  ;;  %v4153_v7 = vld [vmem:[#allocation5 + $0x74] ss:$8 sps:$4 sm:$0xff]   ;;  %v4151_v8 = vld [vmem:[#allocation5 + $0x70] ss:$8 sps:$4 sm:$0xff]  }
  0x7c   :  { %239 = vperm.xlu1 %4073, %v187_v63   ;;  %236 = vperm.xlu0 %4072, %v185_v2   ;;  %v4139_v63 = vld [vmem:[#allocation5 + $0x30] ss:$8 sps:$4 sm:$0xff]   ;;  %v4142_v2 = vld [vmem:[#allocation5 + $0x40] ss:$8 sps:$4 sm:$0xff]  }
  0x7d   :  { %3877 = vmatpush3.bf16.msra.mxu0 %v4100_v12  ;;  %3941 = vmatpush3.bf16.msra.mxu1 %v4101_v13 }
  0x7e   :  { %3878 = vmatprep.subr.bf16.mxu0 %v4102_v14  ;;  %3942 = vmatprep.subr.bf16.mxu1 %v4103_v15 }
  0x81   :  { %3879 = vmatpush3.bf16.msra.mxu0 %v4104_v16  ;;  %3943 = vmatpush3.bf16.msra.mxu1 %v4105_v17 }
  0x82   :  { %1031 = vmatprep.subr.bf16.mxu0 %v4108_v18  ;;  %1652 = vmatprep.subr.bf16.mxu1 %v4132_v57 }
  0xdf   :  { %v201_v21 = vpop.permute.xlu1 %200  ;;  %v195_v22 = vpop.permute.xlu0 %194 }
  0xe0   :  { %vm242_vm0 = vcmp.eq.s32.totalorder %v195_v22, %v4854_v23  ;;  %vm244_vm5 = vcmp.eq.s32.totalorder %v195_v22, %v4857_v24  ;;  %vm241_vm8 = vcmp.eq.s32.totalorder %v195_v22, %v4851_v20  ;;  %vm250_vm9 = vcmp.eq.s32.totalorder %v201_v21, %v4854_v23 }
  0xe1   :  { %vm243_vm12 = vcmp.eq.s32.totalorder %v195_v22, %v4860_v26  ;;  %vm252_vm13 = vcmp.eq.s32.totalorder %v201_v21, %v4857_v24 }
  0xe3   :  { %v198_v25 = vpop.permute.xlu0 %197  ;;  %v204_v27 = vpop.permute.xlu1 %203 }
  0xe4   :  { %vm246_vm1 = vcmp.eq.s32.totalorder %v198_v25, %v4854_v23  ;;  %vm248_vm2 = vcmp.eq.s32.totalorder %v198_v25, %v4857_v24  ;;  %vm245_vm3 = vcmp.eq.s32.totalorder %v198_v25, %v4851_v20  ;;  %vm247_vm6 = vcmp.eq.s32.totalorder %v198_v25, %v4860_v26 }
  0xe5   :  { %vm3671_vm4 = vmpackc.low %vm246_vm1, %vm242_vm0  ;;  %vm254_vm10 = vcmp.eq.s32.totalorder %v204_v27, %v4854_v23  ;;  %vm256_vm14 = vcmp.eq.s32.totalorder %v204_v27, %v4857_v24 }
  0xe6   :  { %3672 = vmatprep.mubr.msk.bf16.mxu0 %vm3671_vm4, %v4666_v28  ;;  %vm3703_vm7 = vmpackc.low %vm248_vm2, %vm244_vm5  ;;  %vm249_vm2 = vcmp.eq.s32.totalorder %v201_v21, %v4851_v20  ;;  %vm251_vm4 = vcmp.eq.s32.totalorder %v201_v21, %v4860_v26  ;;  %vm255_vm5 = vcmp.eq.s32.totalorder %v204_v27, %v4860_v26 }
  0xe7   :  { %3704 = vmatprep.mubr.msk.bf16.mxu1 %vm3703_vm7, %v4666_v28  ;;  %vm3673_vm11 = vmpackc.low %vm245_vm3, %vm241_vm8  ;;  %v210_v31 = vpop.permute.xlu1 %209  ;;  %v207_v32 = vpop.permute.xlu0 %206  ;;  %vm253_vm3 = vcmp.eq.s32.totalorder %v204_v27, %v4851_v20 }
  0xe8   :  { %3674 = vmatmul.mubr.msk.bf16.vlgmr.msra.gmra.mrb[0].mxu0 %vm3673_vm11, %v4666_v28  ;;  %vm3705_vm15 = vmpackc.low %vm247_vm6, %vm243_vm12  ;;  %vm258_vm6 = vcmp.eq.s32.totalorder %v207_v32, %v4854_v23  ;;  %vm262_vm7 = vcmp.eq.s32.totalorder %v210_v31, %v4854_v23 }
  0xe9   :  { %3706 = vmatmul.mubr.msk.bf16.vlgmr.msra.gmra.mrb[0].mxu1 %vm3705_vm15, %v4666_v28  ;;  %vm3675_vm0 = vmpackc.low %vm254_vm10, %vm250_vm9  ;;  %1032 = vmatpush1.bf16.msra.mxu0 %v4106_v29  ;;  %vm260_vm9 = vcmp.eq.s32.totalorder %v207_v32, %v4857_v24  ;;  %vm264_vm10 = vcmp.eq.s32.totalorder %v210_v31, %v4857_v24  ;;  %vm261_vm15 = vcmp.eq.s32.totalorder %v210_v31, %v4851_v20 }
  0xea   :  { %3676 = vmatprep.mubr.msk.bf16.mxu0 %vm3675_vm0, %v4666_v28  ;;  %vm3707_vm1 = vmpackc.low %vm256_vm14, %vm252_vm13  ;;  %1033 = vmatprep.subr.bf16.mxu0 %v4111_v30  ;;  %vm257_vm14 = vcmp.eq.s32.totalorder %v207_v32, %v4851_v20  ;;  %vm259_vm0 = vcmp.eq.s32.totalorder %v207_v32, %v4860_v26 }
  0xeb   :  { %3708 = vmatprep.mubr.msk.bf16.mxu1 %vm3707_vm1, %v4666_v28  ;;  %vm3677_vm8 = vmpackc.low %vm253_vm3, %vm249_vm2  ;;  %v216_v37 = vpop.permute.xlu1 %215  ;;  %v213_v38 = vpop.permute.xlu0 %212  ;;  %vm263_vm1 = vcmp.eq.s32.totalorder %v210_v31, %v4860_v26  ;;  %1653 = vmatpush1.bf16.msra.mxu1 %v4130_v56 }
  0xec   :  { %vm3709_vm11 = vmpackc.low %vm255_vm5, %vm251_vm4  ;;  %vm266_vm2 = vcmp.eq.s32.totalorder %v213_v38, %v4854_v23  ;;  %vm270_vm3 = vcmp.eq.s32.totalorder %v216_v37, %v4854_v23  ;;  %vm268_vm5 = vcmp.eq.s32.totalorder %v213_v38, %v4857_v24  ;;  %1654 = vmatprep.subr.bf16.mxu1 %v4135_v58 }
  0xed   :  { %1034 = vmatpush1.bf16.msra.mxu0 %v4109_v33  ;;  %vm3679_vm12 = vmpackc.low %vm262_vm7, %vm258_vm6  ;;  %vm272_vm6 = vcmp.eq.s32.totalorder %v216_v37, %v4857_v24 }
  0xee   :  { %1035 = vmatprep.subr.bf16.mxu0 %v4114_v34  ;;  %vm3711_vm13 = vmpackc.low %vm264_vm10, %vm260_vm9  ;;  %vm265_vm10 = vcmp.eq.s32.totalorder %v213_v38, %v4851_v20 }
  0xef   :  { %vm3681_vm4 = vmpackc.low %vm261_vm15, %vm257_vm14  ;;  %v222_v43 = vpop.permute.xlu1 %221  ;;  %v219_v44 = vpop.permute.xlu0 %218  ;;  %1655 = vmatpush1.bf16.msra.mxu1 %v4133_v59 }
  0xf0   :  { %3678 = vmatmul.mubr.msk.bf16.gmra.mrb[4].mxu0 %vm3677_vm8, %v4666_v28  ;;  %vm3713_vm7 = vmpackc.low %vm263_vm1, %vm259_vm0  ;;  %vm274_vm14 = vcmp.eq.s32.totalorder %v219_v44, %v4854_v23  ;;  %vm278_vm15 = vcmp.eq.s32.totalorder %v222_v43, %v4854_v23  ;;  %vm276_vm1 = vcmp.eq.s32.totalorder %v219_v44, %v4857_v24  ;;  %1656 = vmatprep.subr.bf16.mxu1 %v4138_v60 }
  0xf1   :  { %3710 = vmatmul.mubr.msk.bf16.gmra.mrb[4].mxu1 %vm3709_vm11, %v4666_v28  ;;  %3680 = vmatprep.mubr.msk.bf16.mxu0 %vm3679_vm12, %v4666_v28  ;;  %vm3683_vm8 = vmpackc.low %vm270_vm3, %vm266_vm2  ;;  %vm269_vm11 = vcmp.eq.s32.totalorder %v216_v37, %v4851_v20  ;;  %vm267_vm12 = vcmp.eq.s32.totalorder %v213_v38, %v4860_v26  ;;  %vm280_vm2 = vcmp.eq.s32.totalorder %v222_v43, %v4857_v24 }
  0xf2   :  { %3712 = vmatprep.mubr.msk.bf16.mxu1 %vm3711_vm13, %v4666_v28  ;;  %1036 = vmatpush1.bf16.msra.mxu0 %v4112_v35  ;;  %vm3715_vm9 = vmpackc.low %vm272_vm6, %vm268_vm5  ;;  %vm271_vm13 = vcmp.eq.s32.totalorder %v216_v37, %v4860_v26  ;;  %vm273_vm6 = vcmp.eq.s32.totalorder %v219_v44, %v4851_v20 }
  0xf3   :  { %1037 = vmatprep.subr.bf16.mxu0 %v4117_v36  ;;  %vm3685_vm0 = vmpackc.low %vm269_vm11, %vm265_vm10  ;;  %v228_v48 = vpop.permute.xlu1 %227  ;;  %v225_v49 = vpop.permute.xlu0 %224  ;;  %1657 = vmatpush1.bf16.msra.mxu1 %v4136_v61 }
  0xf4   :  { %vm3717_vm3 = vmpackc.low %vm271_vm13, %vm267_vm12  ;;  %vm282_vm10 = vcmp.eq.s32.totalorder %v225_v49, %v4854_v23  ;;  %vm286_vm11 = vcmp.eq.s32.totalorder %v228_v48, %v4854_v23  ;;  %vm284_vm13 = vcmp.eq.s32.totalorder %v225_v49, %v4857_v24  ;;  %1658 = vmatprep.subr.bf16.mxu1 %v4141_v62 }
  0xf5   :  { %vm3719_vm5 = vmpackc.low %vm280_vm2, %vm276_vm1  ;;  %vm281_vm2 = vcmp.eq.s32.totalorder %v225_v49, %v4851_v20 }
  0xf6   :  { %1038 = vmatpush1.bf16.msra.mxu0 %v4115_v39 }
  0xf7   :  { %1039 = vmatprep.subr.bf16.mxu0 %v4120_v40  ;;  %v234_v50 = vpop.permute.xlu1 %233  ;;  %v231_v51 = vpop.permute.xlu0 %230  ;;  %1659 = vmatpush1.bf16.msra.mxu1 %v4139_v63 }
  0xf8   :  { %3682 = vmatmul.mubr.msk.bf16.gmra.mrb[8].mxu0 %vm3681_vm4, %v4666_v28  ;;  %vm3687_vm4 = vmpackc.low %vm278_vm15, %vm274_vm14  ;;  %vm288_vm14 = vcmp.eq.s32.totalorder %v228_v48, %v4857_v24  ;;  %1660 = vmatprep.subr.bf16.mxu1 %v4144_v1 }
  0xf9   :  { %3714 = vmatmul.mubr.msk.bf16.gmra.mrb[8].mxu1 %vm3713_vm7, %v4666_v28  ;;  %3684 = vmatprep.mubr.msk.bf16.mxu0 %vm3683_vm8, %v4666_v28  ;;  %vm277_vm7 = vcmp.eq.s32.totalorder %v222_v43, %v4851_v20  ;;  %vm275_vm8 = vcmp.eq.s32.totalorder %v219_v44, %v4860_v26  ;;  %vm3723_vm1 = vmpackc.low %vm288_vm14, %vm284_vm13  ;;  %vm289_vm14 = vcmp.eq.s32.totalorder %v231_v51, %v4851_v20 }
  0xfa   :  { %3716 = vmatprep.mubr.msk.bf16.mxu1 %vm3715_vm9, %v4666_v28  ;;  %1040 = vmatpush1.bf16.msra.mxu0 %v4118_v41  ;;  %vm279_vm9 = vcmp.eq.s32.totalorder %v222_v43, %v4860_v26  ;;  %vm3689_vm12 = vmpackc.low %vm277_vm7, %vm273_vm6  ;;  %vm290_vm6 = vcmp.eq.s32.totalorder %v231_v51, %v4854_v23  ;;  %vm294_vm7 = vcmp.eq.s32.totalorder %v234_v50, %v4854_v23 }
  0xfb   :  { %1041 = vmatprep.subr.bf16.mxu0 %v4123_v42  ;;  %vm3721_vm15 = vmpackc.low %vm279_vm9, %vm275_vm8  ;;  %vm292_vm9 = vcmp.eq.s32.totalorder %v231_v51, %v4857_v24  ;;  %v240_v52 = vpop.permute.xlu1 %239  ;;  %v237_v53 = vpop.permute.xlu0 %236  ;;  %1661 = vmatpush1.bf16.msra.mxu1 %v4142_v2 }
  0xfc   :  { %1662 = vmatprep.subr.bf16.mxu1 %v4147_v3 }
  0xfe   :  { %1042 = vmatpush1.bf16.msra.mxu0 %v4121_v45 }
  0xff   :  { %1043 = vmatprep.subr.bf16.mxu0 %v4126_v46  ;;  %1663 = vmatpush1.bf16.msra.mxu1 %v4145_v4 }
 0x100   :  { %3686 = vmatmul.mubr.msk.bf16.gmra.mrb[12].mxu0 %vm3685_vm0, %v4666_v28  ;;  %vm3691_vm0 = vmpackc.low %vm286_vm11, %vm282_vm10  ;;  %vm296_vm10 = vcmp.eq.s32.totalorder %v234_v50, %v4857_v24  ;;  %1664 = vmatprep.subr.bf16.mxu1 %v4150_v5 }
 0x101   :  { %3718 = vmatmul.mubr.msk.bf16.gmra.mrb[12].mxu1 %vm3717_vm3, %v4666_v28  ;;  %3688 = vmatprep.mubr.msk.bf16.mxu0 %vm3687_vm4, %v4666_v28  ;;  %vm285_vm3 = vcmp.eq.s32.totalorder %v228_v48, %v4851_v20  ;;  %vm283_vm4 = vcmp.eq.s32.totalorder %v225_v49, %v4860_v26  ;;  %vm3727_vm13 = vmpackc.low %vm296_vm10, %vm292_vm9  ;;  %vm301_vm10 = vcmp.eq.s32.totalorder %v240_v52, %v4851_v20 }
 0x102   :  { %3720 = vmatprep.mubr.msk.bf16.mxu1 %vm3719_vm5, %v4666_v28  ;;  %1044 = vmatpush1.bf16.msra.mxu0 %v4124_v47  ;;  %vm287_vm5 = vcmp.eq.s32.totalorder %v228_v48, %v4860_v26  ;;  %vm3693_vm8 = vmpackc.low %vm285_vm3, %vm281_vm2  ;;  %vm302_vm2 = vcmp.eq.s32.totalorder %v240_v52, %v4854_v23  ;;  %vm298_vm3 = vcmp.eq.s32.totalorder %v237_v53, %v4854_v23 }
 0x103   :  { %vm3725_vm11 = vmpackc.low %vm287_vm5, %vm283_vm4  ;;  %vm304_vm4 = vcmp.eq.s32.totalorder %v240_v52, %v4857_v24  ;;  %vm300_vm5 = vcmp.eq.s32.totalorder %v237_v53, %v4857_v24  ;;  %1045 = vmatprep.subr.bf16.mxu0 %v4129_v55  ;;  %1665 = vmatpush1.bf16.msra.mxu1 %v4148_v6 }
 0x104   :  { %vm3731_vm9 = vmpackc.low %vm304_vm4, %vm300_vm5  ;;  %1666 = vmatprep.subr.bf16.mxu1 %v4153_v7 }
 0x106   :  { %1046 = vmatpush1.bf16.msra.mxu0 %v4127_v54 }
 0x107   :  { %1667 = vmatpush1.bf16.msra.mxu1 %v4151_v8 }
 0x108   :  { %3690 = vmatmul.mubr.msk.bf16.gmra.mrb[16].mxu0 %vm3689_vm12, %v4666_v28  ;;  %vm3695_vm12 = vmpackc.low %vm294_vm7, %vm290_vm6 }
 0x109   :  { %3722 = vmatmul.mubr.msk.bf16.gmra.mrb[16].mxu1 %vm3721_vm15, %v4666_v28  ;;  %3692 = vmatprep.mubr.msk.bf16.mxu0 %vm3691_vm0, %v4666_v28  ;;  %vm293_vm15 = vcmp.eq.s32.totalorder %v234_v50, %v4851_v20  ;;  %vm291_vm0 = vcmp.eq.s32.totalorder %v231_v51, %v4860_v26 }
 0x10a   :  { %3724 = vmatprep.mubr.msk.bf16.mxu1 %vm3723_vm1, %v4666_v28  ;;  %vm295_vm1 = vcmp.eq.s32.totalorder %v234_v50, %v4860_v26  ;;  %vm3697_vm6 = vmpackc.low %vm293_vm15, %vm289_vm14 }
 0x10b   :  { %vm3729_vm7 = vmpackc.low %vm295_vm1, %vm291_vm0 }
 0x110   :  { %3694 = vmatmul.mubr.msk.bf16.gmra.mrb[20].mxu0 %vm3693_vm8, %v4666_v28  ;;  %vm3699_vm8 = vmpackc.low %vm302_vm2, %vm298_vm3 }
 0x111   :  { %3726 = vmatmul.mubr.msk.bf16.gmra.mrb[20].mxu1 %vm3725_vm11, %v4666_v28  ;;  %3696 = vmatprep.mubr.msk.bf16.mxu0 %vm3695_vm12, %v4666_v28  ;;  %vm297_vm11 = vcmp.eq.s32.totalorder %v237_v53, %v4851_v20  ;;  %vm303_vm12 = vcmp.eq.s32.totalorder %v240_v52, %v4860_v26 }
 0x112   :  { %3728 = vmatprep.mubr.msk.bf16.mxu1 %vm3727_vm13, %v4666_v28  ;;  %vm299_vm13 = vcmp.eq.s32.totalorder %v237_v53, %v4860_v26  ;;  %vm3701_vm14 = vmpackc.low %vm301_vm10, %vm297_vm11 }
 0x113   :  { %vm3733_vm15 = vmpackc.low %vm303_vm12, %vm299_vm13 }
 0x118   :  { %3698 = vmatmul.mubr.msk.bf16.gmra.mrb[24].mxu0 %vm3697_vm6, %v4666_v28 }
 0x119   :  { %3730 = vmatmul.mubr.msk.bf16.gmra.mrb[24].mxu1 %vm3729_vm7, %v4666_v28  ;;  %3700 = vmatprep.mubr.msk.bf16.mxu0 %vm3699_vm8, %v4666_v28 }
 0x11a   :  { %3732 = vmatprep.mubr.msk.bf16.mxu1 %vm3731_vm9, %v4666_v28 }
 0x120   :  { %3702 = vmatmul.mubr.msk.bf16.gmra.mrb[28].mxu0 %vm3701_vm14, %v4666_v28 }
 0x121   :  { %3734 = vmatmul.mubr.msk.bf16.gmra.mrb[28].mxu1 %vm3733_vm15, %v4666_v28  ;;  %1063 = vmatprep.mubr.bf16.mxu0 %v4665_v0 }
 0x1bb   :  { %v3880_v9 = vpop.f32.mrb[0].mxu0 }
 0x1bc   :  { %v3944_v10 = vpop.f32.mrb[0].mxu1  ;;  %v3881_v11 = vpop.f32.mrb[1].mxu0 }
 0x1bd   :  { %v3882_v12 = vadd.f32 %v3881_v11, %v3880_v9  ;;  %v3945_v13 = vpop.f32.mrb[1].mxu1  ;;  %v3883_v14 = vpop.f32.mrb[2].mxu0 }
 0x1be   :  { %v3946_v15 = vadd.f32 %v3945_v13, %v3944_v10  ;;  %v3947_v16 = vpop.f32.mrb[2].mxu1  ;;  %v3884_v17 = vpop.f32.mrb[3].mxu0 }
 0x1bf   :  { %v3885_v18 = vadd.f32 %v3884_v17, %v3883_v14  ;;  %v3948_v20 = vpop.f32.mrb[3].mxu1 }
 0x1c0   :  { %v853_v21 = vadd.f32 %v3946_v15, %v3882_v12  ;;  %v3949_v22 = vadd.f32 %v3948_v20, %v3947_v16 }
 0x1c2   :  { %v856_v23 = vadd.f32 %v3949_v22, %v3885_v18 }
 0x1c3   :  { %v3886_v24 = vpop.f32.mrb[4].mxu0 }
 0x1c4   :  { %v915_v25 = vpack.c.bf16 %v856_v23, %v853_v21  ;;  %v3950_v26 = vpop.f32.mrb[4].mxu1  ;;  %v3887_v27 = vpop.f32.mrb[5].mxu0 }
 0x1c5   :  { %v3888_v28 = vadd.f32 %v3887_v27, %v3886_v24  ;;  %v3951_v29 = vpop.f32.mrb[5].mxu1  ;;  %v3889_v30 = vpop.f32.mrb[6].mxu0 }
 0x1c6   :  { %v3952_v31 = vadd.f32 %v3951_v29, %v3950_v26  ;;  %v3953_v32 = vpop.f32.mrb[6].mxu1  ;;  %1064 = vmatmul.mubr.bf16.vlgmr.msra.gmra.mrb[32].mxu0 %v915_v25  ;;  %v3890_v33 = vpop.f32.mrb[7].mxu0 }
 0x1c7   :  { %v3891_v34 = vadd.f32 %v3890_v33, %v3889_v30  ;;  %v3954_v35 = vpop.f32.mrb[7].mxu1  ;;  %1073 = vmatprep.mubr.bf16.mxu0 %v4665_v0 }
 0x1c8   :  { %v861_v36 = vadd.f32 %v3952_v31, %v3888_v28  ;;  %v3955_v37 = vadd.f32 %v3954_v35, %v3953_v32 }
 0x1ca   :  { %v864_v38 = vadd.f32 %v3955_v37, %v3891_v34 }
 0x1cb   :  { %v3892_v39 = vpop.f32.mrb[8].mxu0 }
 0x1cc   :  { %v3956_v40 = vpop.f32.mrb[8].mxu1  ;;  %v3893_v41 = vpop.f32.mrb[9].mxu0  ;;  %v916_v42 = vpack.c.bf16 %v864_v38, %v861_v36 }
 0x1cd   :  { %v3894_v43 = vadd.f32 %v3893_v41, %v3892_v39  ;;  %v3957_v44 = vpop.f32.mrb[9].mxu1  ;;  %v3895_v45 = vpop.f32.mrb[10].mxu0 }
 0x1ce   :  { %v3958_v46 = vadd.f32 %v3957_v44, %v3956_v40  ;;  %v3959_v47 = vpop.f32.mrb[10].mxu1  ;;  %1074 = vmatmul.mubr.bf16.gmra.mrb[36].mxu0 %v916_v42  ;;  %v3896_v48 = vpop.f32.mrb[11].mxu0 }
 0x1cf   :  { %v3897_v49 = vadd.f32 %v3896_v48, %v3895_v45  ;;  %v3960_v50 = vpop.f32.mrb[11].mxu1  ;;  %1083 = vmatprep.mubr.bf16.mxu0 %v4665_v0 }
 0x1d0   :  { %v869_v51 = vadd.f32 %v3958_v46, %v3894_v43  ;;  %v3961_v52 = vadd.f32 %v3960_v50, %v3959_v47 }
 0x1d2   :  { %v872_v53 = vadd.f32 %v3961_v52, %v3897_v49 }
 0x1d3   :  { %v3898_v54 = vpop.f32.mrb[12].mxu0 }
 0x1d4   :  { %v3962_v55 = vpop.f32.mrb[12].mxu1  ;;  %v3899_v56 = vpop.f32.mrb[13].mxu0  ;;  %v917_v57 = vpack.c.bf16 %v872_v53, %v869_v51 }
 0x1d5   :  { %v3900_v58 = vadd.f32 %v3899_v56, %v3898_v54  ;;  %v3963_v59 = vpop.f32.mrb[13].mxu1  ;;  %v3901_v60 = vpop.f32.mrb[14].mxu0 }
 0x1d6   :  { %v3964_v61 = vadd.f32 %v3963_v59, %v3962_v55  ;;  %v3965_v62 = vpop.f32.mrb[14].mxu1  ;;  %1084 = vmatmul.mubr.bf16.gmra.mrb[40].mxu0 %v917_v57  ;;  %v3902_v63 = vpop.f32.mrb[15].mxu0 }
 0x1d7   :  { %v3903_v1 = vadd.f32 %v3902_v63, %v3901_v60  ;;  %v3966_v2 = vpop.f32.mrb[15].mxu1  ;;  %1093 = vmatprep.mubr.bf16.mxu0 %v4665_v0 }
 0x1d8   :  { %v877_v3 = vadd.f32 %v3964_v61, %v3900_v58  ;;  %v3967_v4 = vadd.f32 %v3966_v2, %v3965_v62 }
 0x1da   :  { %v880_v5 = vadd.f32 %v3967_v4, %v3903_v1 }
 0x1db   :  { %v3904_v6 = vpop.f32.mrb[16].mxu0 }
 0x1dc   :  { %v3968_v7 = vpop.f32.mrb[16].mxu1  ;;  %v3905_v8 = vpop.f32.mrb[17].mxu0  ;;  %v918_v9 = vpack.c.bf16 %v880_v5, %v877_v3  ;;  %v4156_v5 = vld [vmem:[#allocation5 + $0x84] ss:$8 sps:$4 sm:$0xff]  }
 0x1dd   :  { %v3906_v10 = vadd.f32 %v3905_v8, %v3904_v6  ;;  %v3969_v11 = vpop.f32.mrb[17].mxu1  ;;  %v3907_v12 = vpop.f32.mrb[18].mxu0  ;;  %v4154_v6 = vld [vmem:[#allocation5 + $0x80] ss:$8 sps:$4 sm:$0xff]   ;;  %1668 = vmatprep.subr.bf16.mxu1 %v4156_v5  ;;  %v4157_v8 = vld [vmem:[#allocation5 + $0x90] ss:$8 sps:$4 sm:$0xff]  }
 0x1de   :  { %v3970_v13 = vadd.f32 %v3969_v11, %v3968_v7  ;;  %v3971_v14 = vpop.f32.mrb[18].mxu1  ;;  %1094 = vmatmul.mubr.bf16.gmra.mrb[44].mxu0 %v918_v9  ;;  %v3908_v15 = vpop.f32.mrb[19].mxu0  ;;  %1669 = vmatpush1.bf16.msra.mxu1 %v4154_v6  ;;  %v4159_v7 = vld [vmem:[#allocation5 + $0x94] ss:$8 sps:$4 sm:$0xff]   ;;  %v4162_v9 = vld [vmem:[#allocation5 + $0xa4] ss:$8 sps:$4 sm:$0xff]  }
 0x1df   :  { %v3909_v16 = vadd.f32 %v3908_v15, %v3907_v12  ;;  %v3972_v17 = vpop.f32.mrb[19].mxu1  ;;  %1103 = vmatprep.mubr.bf16.mxu0 %v4665_v0  ;;  %1670 = vmatprep.subr.bf16.mxu1 %v4159_v7  ;;  %v4165_v11 = vld [vmem:[#allocation5 + $0xb4] ss:$8 sps:$4 sm:$0xff]   ;;  %v4163_v12 = vld [vmem:[#allocation5 + $0xb0] ss:$8 sps:$4 sm:$0xff]  }
 0x1e0   :  { %v885_v18 = vadd.f32 %v3970_v13, %v3906_v10  ;;  %v3973_v20 = vadd.f32 %v3972_v17, %v3971_v14  ;;  %v4160_v10 = vld [vmem:[#allocation5 + $0xa0] ss:$8 sps:$4 sm:$0xff]   ;;  %v4168_v13 = vld [vmem:[#allocation5 + $0xc4] ss:$8 sps:$4 sm:$0xff]   ;;  %v4171_v15 = vld [vmem:[#allocation5 + $0xd4] ss:$8 sps:$4 sm:$0xff]  }
 0x1e1   :  { %v4166_v14 = vld [vmem:[#allocation5 + $0xc0] ss:$8 sps:$4 sm:$0xff]   ;;  %v4174_v17 = vld [vmem:[#allocation5 + $0xe4] ss:$8 sps:$4 sm:$0xff]  }
 0x1e2   :  { %v888_v21 = vadd.f32 %v3973_v20, %v3909_v16  ;;  %1671 = vmatpush1.bf16.msra.mxu1 %v4157_v8  ;;  %v4169_v16 = vld [vmem:[#allocation5 + $0xd0] ss:$8 sps:$4 sm:$0xff]   ;;  %v4177_v20 = vld [vmem:[#allocation5 + $0xf4] ss:$8 sps:$4 sm:$0xff]  }
 0x1e3   :  { %v3910_v22 = vpop.f32.mrb[20].mxu0  ;;  %1672 = vmatprep.subr.bf16.mxu1 %v4162_v9 }
 0x1e4   :  { %v3974_v23 = vpop.f32.mrb[20].mxu1  ;;  %v3911_v24 = vpop.f32.mrb[21].mxu0  ;;  %v919_v25 = vpack.c.bf16 %v888_v21, %v885_v18  ;;  %v4172_v18 = vld [vmem:[#allocation5 + $0xe0] ss:$8 sps:$4 sm:$0xff]   ;;  %v4175_v21 = vld [vmem:[#allocation5 + $0xf0] ss:$8 sps:$4 sm:$0xff]  }
 0x1e5   :  { %v3912_v26 = vadd.f32 %v3911_v24, %v3910_v22  ;;  %v3975_v27 = vpop.f32.mrb[21].mxu1  ;;  %v3913_v28 = vpop.f32.mrb[22].mxu0  ;;  %v4178_v22 = vld [vmem:[#allocation7] ss:$8 sps:$4 sm:$0xff]   ;;  %v4183_v24 = vld [vmem:[#allocation7 + $0x14] ss:$8 sps:$4 sm:$0xff]  }
 0x1e6   :  { %v3976_v29 = vadd.f32 %v3975_v27, %v3974_v23  ;;  %v3977_v30 = vpop.f32.mrb[22].mxu1  ;;  %1104 = vmatmul.mubr.bf16.gmra.mrb[48].mxu0 %v919_v25  ;;  %v3914_v31 = vpop.f32.mrb[23].mxu0  ;;  %1673 = vmatpush1.bf16.msra.mxu1 %v4160_v10  ;;  %v4180_v23 = vld [vmem:[#allocation7 + $0x4] ss:$8 sps:$4 sm:$0xff]   ;;  %v4181_v25 = vld [vmem:[#allocation7 + $0x10] ss:$8 sps:$4 sm:$0xff]  }
 0x1e7   :  { %v3915_v32 = vadd.f32 %v3914_v31, %v3913_v28  ;;  %v3978_v33 = vpop.f32.mrb[23].mxu1  ;;  %1113 = vmatprep.mubr.bf16.mxu0 %v4665_v0  ;;  %1674 = vmatprep.subr.bf16.mxu1 %v4165_v11  ;;  %v4184_v27 = vld [vmem:[#allocation7 + $0x20] ss:$8 sps:$4 sm:$0xff]   ;;  %v4189_v28 = vld [vmem:[#allocation7 + $0x34] ss:$8 sps:$4 sm:$0xff]  }
 0x1e8   :  { %v893_v34 = vadd.f32 %v3976_v29, %v3912_v26  ;;  %v3979_v35 = vadd.f32 %v3978_v33, %v3977_v30  ;;  %2273 = vmatprep.subr.bf16.mxu0 %v4180_v23  ;;  %v4186_v26 = vld [vmem:[#allocation7 + $0x24] ss:$8 sps:$4 sm:$0xff]   ;;  %v942_v29 = vshrl.u32 %v188_v19, 7  ;;  %v4187_v30 = vld [vmem:[#allocation7 + $0x30] ss:$8 sps:$4 sm:$0xff]  }
 0x1e9   :  { %2274 = vmatpush1.bf16.msra.mxu0 %v4178_v22  ;;  %v4192_v31 = vld [vmem:[#allocation7 + $0x44] ss:$8 sps:$4 sm:$0xff]   ;;  %v939_v33 = vld [vmem:[%s5874_s3] sm:$0x3] }
 0x1ea   :  { %v896_v36 = vadd.f32 %v3979_v35, %v3915_v32  ;;  %1675 = vmatpush1.bf16.msra.mxu1 %v4163_v12  ;;  %2275 = vmatprep.subr.bf16.mxu0 %v4183_v24  ;;  %v5014_v32 = vsub.s32 0, %v942_v29  ;;  %v4190_v35 = vld [vmem:[#allocation7 + $0x40] ss:$8 sps:$4 sm:$0xff]  }
 0x1eb   :  { %v3916_v37 = vpop.f32.mrb[24].mxu0  ;;  %1676 = vmatprep.subr.bf16.mxu1 %v4168_v13 }
 0x1ec   :  { %v3980_v38 = vpop.f32.mrb[24].mxu1  ;;  %v3917_v39 = vpop.f32.mrb[25].mxu0  ;;  %v920_v40 = vpack.c.bf16 %v896_v36, %v893_v34  ;;  %v5019_v34 = vsub.s32 1, %v942_v29  ;;  %v4195_v36 = vld [vmem:[#allocation7 + $0x54] ss:$8 sps:$4 sm:$0xff]  }
 0x1ed   :  { %v3918_v41 = vadd.f32 %v3917_v39, %v3916_v37  ;;  %v3981_v42 = vpop.f32.mrb[25].mxu1  ;;  %v3919_v43 = vpop.f32.mrb[26].mxu0  ;;  %2276 = vmatpush1.bf16.msra.mxu0 %v4181_v25  ;;  %v5022_v37 = vrot.slane %v939_v33, %v5014_v32 }
 0x1ee   :  { %v3982_v44 = vadd.f32 %v3981_v42, %v3980_v38  ;;  %v3983_v45 = vpop.f32.mrb[26].mxu1  ;;  %1114 = vmatmul.mubr.bf16.gmra.mrb[52].mxu0 %v920_v40  ;;  %v3920_v46 = vpop.f32.mrb[27].mxu0  ;;  %1677 = vmatpush1.bf16.msra.mxu1 %v4166_v14  ;;  %v5025_v19 = vrot.slane %v939_v33, %v5019_v34  ;;  %v4193_v38 = vld [vmem:[#allocation7 + $0x50] ss:$8 sps:$4 sm:$0xff]   ;;  %v4198_v40 = vld [vmem:[#allocation7 + $0x64] ss:$8 sps:$4 sm:$0xff]  }
 0x1ef   :  { %v3921_v47 = vadd.f32 %v3920_v46, %v3919_v43  ;;  %v3984_v48 = vpop.f32.mrb[27].mxu1  ;;  %1123 = vmatprep.mubr.bf16.mxu0 %v4665_v0  ;;  %1678 = vmatprep.subr.bf16.mxu1 %v4171_v15 }
 0x1f0   :  { %v901_v49 = vadd.f32 %v3982_v44, %v3918_v41  ;;  %v3985_v50 = vadd.f32 %v3984_v48, %v3983_v45  ;;  %2277 = vmatprep.subr.bf16.mxu0 %v4186_v26  ;;  %v4196_v48 = vld [vmem:[#allocation7 + $0x60] ss:$8 sps:$4 sm:$0xff]  }
 0x1f1   :  { %2278 = vmatpush1.bf16.msra.mxu0 %v4184_v27 }
 0x1f2   :  { %v904_v51 = vadd.f32 %v3985_v50, %v3921_v47  ;;  %1679 = vmatpush1.bf16.msra.mxu1 %v4169_v16  ;;  %2279 = vmatprep.subr.bf16.mxu0 %v4189_v28 }
 0x1f3   :  { %v3922_v52 = vpop.f32.mrb[28].mxu0  ;;  %1680 = vmatprep.subr.bf16.mxu1 %v4174_v17 }
 0x1f4   :  { %v3986_v53 = vpop.f32.mrb[28].mxu1  ;;  %v3923_v54 = vpop.f32.mrb[29].mxu0  ;;  %v921_v55 = vpack.c.bf16 %v904_v51, %v901_v49  ;;  %v4201_v51 = vld [vmem:[#allocation7 + $0x74] ss:$8 sps:$4 sm:$0xff]  }
 0x1f5   :  { %v3924_v56 = vadd.f32 %v3923_v54, %v3922_v52  ;;  %v3987_v57 = vpop.f32.mrb[29].mxu1  ;;  %v3925_v58 = vpop.f32.mrb[30].mxu0  ;;  %2280 = vmatpush1.bf16.msra.mxu0 %v4187_v30 }
 0x1f6   :  { %v3988_v59 = vadd.f32 %v3987_v57, %v3986_v53  ;;  %v3989_v60 = vpop.f32.mrb[30].mxu1  ;;  %1124 = vmatmul.mubr.bf16.gmra.mrb[56].mxu0 %v921_v55  ;;  %v3926_v61 = vpop.f32.mrb[31].mxu0  ;;  %1681 = vmatpush1.bf16.msra.mxu1 %v4172_v18 }
 0x1f7   :  { %v3927_v62 = vadd.f32 %v3926_v61, %v3925_v58  ;;  %v3990_v63 = vpop.f32.mrb[31].mxu1  ;;  %1133 = vmatprep.mubr.bf16.mxu0 %v4665_v0  ;;  %1682 = vmatprep.subr.bf16.mxu1 %v4177_v20  ;;  %v4199_v58 = vld [vmem:[#allocation7 + $0x70] ss:$8 sps:$4 sm:$0xff]  }
 0x1f8   :  { %v909_v1 = vadd.f32 %v3988_v59, %v3924_v56  ;;  %v3991_v2 = vadd.f32 %v3990_v63, %v3989_v60  ;;  %2281 = vmatprep.subr.bf16.mxu0 %v4192_v31 }
 0x1f9   :  { %2282 = vmatpush1.bf16.msra.mxu0 %v4190_v35 }
 0x1fa   :  { %v912_v3 = vadd.f32 %v3991_v2, %v3927_v62  ;;  %1683 = vmatpush1.bf16.msra.mxu1 %v4175_v21  ;;  %2283 = vmatprep.subr.bf16.mxu0 %v4195_v36 }
 0x1fc   :  { %v922_v4 = vpack.c.bf16 %v912_v3, %v909_v1 }
 0x1fd   :  { %2284 = vmatpush1.bf16.msra.mxu0 %v4193_v38 }
 0x1fe   :  { %1134 = vmatmul.mubr.bf16.gmra.mrb[60].mxu0 %v922_v4  ;;  %2285 = vmatprep.subr.bf16.mxu0 %v4198_v40 }
 0x201   :  { %2286 = vmatpush1.bf16.msra.mxu0 %v4196_v48 }
 0x202   :  { %2287 = vmatprep.subr.bf16.mxu0 %v4201_v51 }
 0x205   :  { %2288 = vmatpush1.bf16.msra.mxu0 %v4199_v58 }
 0x299   :  { %v1065_v39 = vpop.f32.mrb[32].mxu0 }
 0x29a   :  { %v5028_v41 = vadd.f32 %v1065_v39, %v5022_v37  ;;  %v1067_v42 = vpop.f32.mrb[33].mxu0 }
 0x29b   :  { %v5031_v43 = vadd.f32 %v1067_v42, %v5025_v19  ;;  %v1069_v44 = vpop.f32.mrb[34].mxu0 }
 0x29c   :  { %v1176_v45 = vmul.f32 0.044715, %v5028_v41  ;;  %v5035_v46 = vadd.f32 %v1069_v44, %v5022_v37  ;;  %v1071_v47 = vpop.f32.mrb[35].mxu0  ;;  %v1144_v38 = vmul.f32 0.5, %v5028_v41 }
 0x29d   :  { %v1177_v49 = vmul.f32 0.044715, %v5031_v43  ;;  %v5039_v50 = vadd.f32 %v1071_v47, %v5025_v19  ;;  %v1145_v51 = vmul.f32 0.5, %v5031_v43 }
 0x29e   :  { %v1208_v52 = vmul.f32 %v1176_v45, %v5028_v41  ;;  %v1178_v53 = vmul.f32 0.044715, %v5035_v46 }
 0x29f   :  { %v1209_v54 = vmul.f32 %v1177_v49, %v5031_v43  ;;  %v1179_v55 = vmul.f32 0.044715, %v5039_v50 }
 0x2a0   :  { %v1240_v56 = vmul.f32 %v1208_v52, %v5028_v41  ;;  %v1210_v57 = vmul.f32 %v1178_v53, %v5035_v46 }
 0x2a1   :  { %v1241_v59 = vmul.f32 %v1209_v54, %v5031_v43  ;;  %v1211_v60 = vmul.f32 %v1179_v55, %v5039_v50  ;;  %v1075_v61 = vpop.f32.mrb[36].mxu0 }
 0x2a2   :  { %v1272_v62 = vadd.f32 %v1240_v56, %v5028_v41  ;;  %v1242_v63 = vmul.f32 %v1210_v57, %v5035_v46  ;;  %v5052_v1 = vadd.f32 %v1075_v61, %v5022_v37  ;;  %v1077_v2 = vpop.f32.mrb[37].mxu0  ;;  %v1146_v57 = vmul.f32 0.5, %v5035_v46 }
 0x2a3   :  { %v1243_v3 = vmul.f32 %v1211_v60, %v5039_v50  ;;  %v1078_v4 = vadd.f32 %v1077_v2, %v5025_v19  ;;  %v1079_v5 = vpop.f32.mrb[38].mxu0  ;;  %v1273_v6 = vadd.f32 %v1241_v59, %v5031_v43  ;;  %v1147_v59 = vmul.f32 0.5, %v5039_v50 }
 0x2a4   :  { %v1304_v7 = vmul.f32 0.7978846, %v1272_v62  ;;  %v1274_v8 = vadd.f32 %v1242_v63, %v5035_v46  ;;  %v1180_v9 = vmul.f32 0.044715, %v5052_v1  ;;  %v5060_v10 = vadd.f32 %v1079_v5, %v5022_v37  ;;  %v1081_v11 = vpop.f32.mrb[39].mxu0 }
 0x2a5   :  { %v1181_v12 = vmul.f32 0.044715, %v1078_v4  ;;  %v1082_v13 = vadd.f32 %v1081_v11, %v5025_v19  ;;  %v1275_v14 = vadd.f32 %v1243_v3, %v5039_v50  ;;  %v1305_v15 = vmul.f32 0.7978846, %v1273_v6 }
 0x2a6   :  { %4290 = vtanh.f32 %v1304_v7  ;;  %v1306_v16 = vmul.f32 0.7978846, %v1274_v8  ;;  %v1212_v17 = vmul.f32 %v1180_v9, %v5052_v1  ;;  %v1182_v18 = vmul.f32 0.044715, %v5060_v10 }
 0x2a7   :  { %v1213_v20 = vmul.f32 %v1181_v12, %v1078_v4  ;;  %v1183_v21 = vmul.f32 0.044715, %v1082_v13  ;;  %v1307_v22 = vmul.f32 0.7978846, %v1275_v14  ;;  %4292 = vtanh.f32 %v1305_v15 }
 0x2a8   :  { %4294 = vtanh.f32 %v1306_v16  ;;  %v1244_v23 = vmul.f32 %v1212_v17, %v5052_v1  ;;  %v1214_v24 = vmul.f32 %v1182_v18, %v5060_v10  ;;  %v5092_v63 = vmul.f32 0.5, %v1078_v4 }
 0x2a9   :  { %v1245_v25 = vmul.f32 %v1213_v20, %v1078_v4  ;;  %v1215_v26 = vmul.f32 %v1183_v21, %v1082_v13  ;;  %v1085_v27 = vpop.f32.mrb[40].mxu0  ;;  %4296 = vtanh.f32 %v1307_v22  ;;  %v1151_v7 = vmul.f32 0.5, %v1082_v13 }
 0x2aa   :  { %v1246_v28 = vmul.f32 %v1214_v24, %v5060_v10  ;;  %v1087_v29 = vpop.f32.mrb[41].mxu0  ;;  %v1276_v36 = vadd.f32 %v1244_v23, %v5052_v1  ;;  %v5075_v39 = vadd.f32 %v1085_v27, %v5022_v37  ;;  %v1150_v24 = vmul.f32 0.5, %v5060_v10 }
 0x2ab   :  { %v1247_v30 = vmul.f32 %v1215_v26, %v1082_v13  ;;  %v5070_v31 = vadd.f32 %v1087_v29, %v5025_v19  ;;  %v1089_v33 = vpop.f32.mrb[42].mxu0  ;;  %v1277_v35 = vadd.f32 %v1245_v25, %v1078_v4 }
 0x2ac   :  { %v1091_v40 = vpop.f32.mrb[43].mxu0  ;;  %v1278_v42 = vadd.f32 %v1246_v28, %v5060_v10  ;;  %v5083_v49 = vadd.f32 %v1089_v33, %v5022_v37  ;;  %v1308_v52 = vmul.f32 0.7978846, %v1276_v36  ;;  %v1184_v58 = vmul.f32 0.044715, %v5075_v39 }
 0x2ad   :  { %v1185_v44 = vmul.f32 0.044715, %v5070_v31  ;;  %v5080_v45 = vadd.f32 %v1091_v40, %v5025_v19  ;;  %v1279_v47 = vadd.f32 %v1247_v30, %v1082_v13  ;;  %v1309_v48 = vmul.f32 0.7978846, %v1277_v35 }
 0x2ae   :  { %v1310_v41 = vmul.f32 0.7978846, %v1278_v42  ;;  %v1186_v8 = vmul.f32 0.044715, %v5083_v49  ;;  %v1216_v4 = vmul.f32 %v1184_v58, %v5075_v39  ;;  %v1148_v13 = vmul.f32 0.5, %v5052_v1 }
 0x2af   :  { %v1217_v53 = vmul.f32 %v1185_v44, %v5070_v31  ;;  %v1187_v54 = vmul.f32 0.044715, %v5080_v45  ;;  %v1311_v55 = vmul.f32 0.7978846, %v1279_v47  ;;  %4298 = vtanh.f32 %v1309_v48 }
 0x2b0   :  { %v4291_v56 = vpop.eup %4290  ;;  %4300 = vtanh.f32 %v1308_v52  ;;  %v1218_v26 = vmul.f32 %v1186_v8, %v5083_v49  ;;  %v5114_v1 = vmul.f32 0.5, %v5075_v39 }
 0x2b1   :  { %v4293_v60 = vpop.eup %4292  ;;  %v1219_v61 = vmul.f32 %v1187_v54, %v5080_v45  ;;  %v1095_v43 = vpop.f32.mrb[44].mxu0  ;;  %v1368_v62 = vadd.f32 1.0, %v4291_v56  ;;  %4302 = vtanh.f32 %v1311_v55  ;;  %v1249_v3 = vmul.f32 %v1217_v53, %v5070_v31 }
 0x2b2   :  { %v4295_v2 = vpop.eup %4294  ;;  %v1097_v5 = vpop.f32.mrb[45].mxu0  ;;  %v1369_v6 = vadd.f32 1.0, %v4293_v60  ;;  %4304 = vtanh.f32 %v1310_v41  ;;  %v5102_v14 = vadd.f32 %v1095_v43, %v5022_v37  ;;  %v5127_v41 = vmul.f32 0.5, %v5070_v31 }
 0x2b3   :  { %v4297_v46 = vpop.eup %4296  ;;  %v1251_v50 = vmul.f32 %v1219_v61, %v5080_v45  ;;  %v5098_v9 = vadd.f32 %v1097_v5, %v5025_v19  ;;  %v1099_v11 = vpop.f32.mrb[46].mxu0  ;;  %v1370_v12 = vadd.f32 1.0, %v4295_v2  ;;  %v1400_v20 = vmul.f32 %v1368_v62, %v1144_v38 }
 0x2b4   :  { %v1101_v15 = vpop.f32.mrb[47].mxu0  ;;  %v1371_v16 = vadd.f32 1.0, %v4297_v46  ;;  %v1401_v22 = vmul.f32 %v1369_v6, %v1145_v51  ;;  %v1281_v25 = vadd.f32 %v1249_v3, %v5070_v31  ;;  %v1188_v29 = vmul.f32 0.044715, %v5102_v14 }
 0x2b5   :  { %v1189_v17 = vmul.f32 0.044715, %v5098_v9  ;;  %v5107_v18 = vadd.f32 %v1101_v15, %v5025_v19  ;;  %v1402_v21 = vmul.f32 %v1370_v12, %v1146_v57  ;;  %v1283_v28 = vadd.f32 %v1251_v50, %v5080_v45 }
 0x2b6   :  { %v1403_v23 = vmul.f32 %v1371_v16, %v1147_v59  ;;  %v1313_v35 = vmul.f32 0.7978846, %v1281_v25  ;;  %v1248_v38 = vmul.f32 %v1216_v4, %v5075_v39  ;;  %v5121_v40 = vadd.f32 %v1099_v11, %v5022_v37 }
 0x2b7   :  { %v1432_v27 = vpack.c.bf16 %v1402_v21, %v1400_v20  ;;  %v1191_v30 = vmul.f32 0.044715, %v5107_v18  ;;  %v1221_v10 = vmul.f32 %v1189_v17, %v5098_v9  ;;  %v1315_v44 = vmul.f32 0.7978846, %v1283_v28 }
 0x2b8   :  { %v1433_v33 = vpack.c.bf16 %v1403_v23, %v1401_v22  ;;  %4306 = vtanh.f32 %v1313_v35  ;;  %v1250_v54 = vmul.f32 %v1218_v26, %v5083_v49  ;;  %v1220_v59 = vmul.f32 %v1188_v29, %v5102_v14 }
 0x2b9   :  { %v4299_v36 = vpop.eup %4298  ;;  %v1105_v42 = vpop.f32.mrb[48].mxu0  ;;  %4308 = vtanh.f32 %v1315_v44  ;;  %v1223_v60 = vmul.f32 %v1191_v30, %v5107_v18  ;;  %v1253_v62 = vmul.f32 %v1221_v10, %v5098_v9  ;;  %v1190_v2 = vmul.f32 0.044715, %v5121_v40 }
 0x2ba   :  { %v4301_v47 = vpop.eup %4300  ;;  %v5124_v48 = vadd.f32 %v1105_v42, %v5022_v37  ;;  %v1107_v51 = vpop.f32.mrb[49].mxu0  ;;  %1684 = vmatprep.mubr.bf16.mxu1 %v1433_v33  ;;  %v1373_v52 = vadd.f32 1.0, %v4299_v36  ;;  %v1280_v50 = vadd.f32 %v1248_v38, %v5075_v39  ;;  %v1282_v15 = vadd.f32 %v1250_v54, %v5083_v49 }
 0x2bb   :  { %v4303_v53 = vpop.eup %4302  ;;  %v5131_v55 = vadd.f32 %v1107_v51, %v5025_v19  ;;  %v1109_v56 = vpop.f32.mrb[50].mxu0  ;;  %1685 = vmatmul.mubr.bf16.vlgmr.msra.gmra.mrb[32].mxu1 %v1432_v27  ;;  %v1372_v57 = vadd.f32 1.0, %v4301_v47  ;;  %v1255_v16 = vmul.f32 %v1223_v60, %v5107_v18  ;;  %v1222_v22 = vmul.f32 %v1190_v2, %v5121_v40 }
 0x2bc   :  { %v4305_v58 = vpop.eup %4304  ;;  %v5136_v61 = vadd.f32 %v1109_v56, %v5022_v37  ;;  %v1111_v31 = vpop.f32.mrb[51].mxu0  ;;  %v1375_v43 = vadd.f32 1.0, %v4303_v53  ;;  %v1192_v3 = vmul.f32 0.044715, %v5124_v48  ;;  %v1405_v46 = vmul.f32 %v1373_v52, %v5092_v63 }
 0x2bd   :  { %v1374_v5 = vadd.f32 1.0, %v4305_v58  ;;  %v1193_v6 = vmul.f32 0.044715, %v5131_v55  ;;  %v5145_v11 = vadd.f32 %v1111_v31, %v5025_v19  ;;  %v1404_v12 = vmul.f32 %v1372_v57, %v1148_v13 }
 0x2be   :  { %v1407_v8 = vmul.f32 %v1375_v43, %v1151_v7  ;;  %v1194_v17 = vmul.f32 0.044715, %v5136_v61  ;;  %v1312_v21 = vmul.f32 0.7978846, %v1280_v50  ;;  %v1155_v7 = vmul.f32 0.5, %v5080_v45 }
 0x2bf   :  { %v1406_v4 = vmul.f32 %v1374_v5, %v1150_v24  ;;  %v1314_v39 = vmul.f32 0.7978846, %v1282_v15  ;;  %v1252_v25 = vmul.f32 %v1220_v59, %v5102_v14  ;;  %v1224_v13 = vmul.f32 %v1192_v3, %v5124_v48 }
 0x2c0   :  { %v1435_v20 = vpack.c.bf16 %v1407_v8, %v1405_v46  ;;  %4310 = vtanh.f32 %v1312_v21  ;;  %v1225_v27 = vmul.f32 %v1193_v6, %v5131_v55  ;;  %v1195_v28 = vmul.f32 0.044715, %v5145_v11 }
 0x2c1   :  { %v1115_v23 = vpop.f32.mrb[52].mxu0  ;;  %v1434_v63 = vpack.c.bf16 %v1406_v4, %v1404_v12  ;;  %4312 = vtanh.f32 %v1314_v39  ;;  %v1226_v33 = vmul.f32 %v1194_v17, %v5136_v61  ;;  %v1154_v36 = vmul.f32 0.5, %v5083_v49 }
 0x2c2   :  { %v5155_v24 = vadd.f32 %v1115_v23, %v5022_v37  ;;  %v1117_v26 = vpop.f32.mrb[53].mxu0  ;;  %1694 = vmatprep.mubr.bf16.mxu1 %v1435_v20  ;;  %v4307_v45 = vpop.eup %4306  ;;  %v1285_v38 = vadd.f32 %v1253_v62, %v5098_v9  ;;  %v1287_v10 = vadd.f32 %v1255_v16, %v5107_v18  ;;  %v1254_v44 = vmul.f32 %v1222_v22, %v5121_v40 }
 0x2c3   :  { %v5160_v29 = vadd.f32 %v1117_v26, %v5025_v19  ;;  %v1119_v30 = vpop.f32.mrb[54].mxu0  ;;  %1695 = vmatmul.mubr.bf16.gmra.mrb[36].mxu1 %v1434_v63  ;;  %v4309_v42 = vpop.eup %4308  ;;  %v1377_v52 = vadd.f32 1.0, %v4307_v45  ;;  %v5174_v53 = vmul.f32 %v1224_v13, %v5124_v48  ;;  %v1257_v57 = vmul.f32 %v1225_v27, %v5131_v55 }
 0x2c4   :  { %v1121_v35 = vpop.f32.mrb[55].mxu0  ;;  %v5168_v47 = vadd.f32 %v1119_v30, %v5022_v37  ;;  %v1196_v54 = vmul.f32 0.044715, %v5155_v24  ;;  %v1379_v49 = vadd.f32 1.0, %v4309_v42  ;;  %v1317_v56 = vmul.f32 0.7978846, %v1285_v38 }
 0x2c5   :  { %v5171_v51 = vadd.f32 %v1121_v35, %v5025_v19  ;;  %v1227_v58 = vmul.f32 %v1195_v28, %v5145_v11  ;;  %v1197_v59 = vmul.f32 0.044715, %v5160_v29  ;;  %v1319_v60 = vmul.f32 0.7978846, %v1287_v10 }
 0x2c6   :  { %v5181_v31 = vmul.f32 %v1226_v33, %v5136_v61  ;;  %v1409_v43 = vmul.f32 %v1377_v52, %v5127_v41  ;;  %v1411_v62 = vmul.f32 %v1379_v49, %v1155_v7  ;;  %4314 = vtanh.f32 %v1317_v56 }
 0x2c7   :  { %v1198_v2 = vmul.f32 0.044715, %v5168_v47  ;;  %v1199_v3 = vmul.f32 0.044715, %v5171_v51  ;;  %v5187_v6 = vmul.f32 0.5, %v5098_v9  ;;  %4316 = vtanh.f32 %v1319_v60 }
 0x2c8   :  { %v1228_v46 = vmul.f32 %v1196_v54, %v5155_v24  ;;  %v1437_v12 = vpack.c.bf16 %v1411_v62, %v1409_v43  ;;  %v1284_v41 = vadd.f32 %v1252_v25, %v5102_v14  ;;  %v1259_v4 = vmul.f32 %v1227_v58, %v5145_v11 }
 0x2c9   :  { %v1125_v5 = vpop.f32.mrb[56].mxu0  ;;  %v1229_v15 = vmul.f32 %v1197_v59, %v5160_v29  ;;  %v1159_v17 = vmul.f32 0.5, %v5107_v18  ;;  %v1286_v9 = vadd.f32 %v1254_v44, %v5121_v40  ;;  %v5205_v63 = vmul.f32 0.5, %v5102_v14 }
 0x2ca   :  { %v5191_v8 = vadd.f32 %v1125_v5, %v5022_v37  ;;  %v1127_v50 = vpop.f32.mrb[57].mxu0  ;;  %v4311_v20 = vpop.eup %4310  ;;  %1704 = vmatprep.mubr.bf16.mxu1 %v1437_v12  ;;  %v1316_v7 = vmul.f32 0.7978846, %v1284_v41  ;;  %v1230_v25 = vmul.f32 %v1198_v2, %v5168_v47  ;;  %v1231_v18 = vmul.f32 %v1199_v3, %v5171_v51 }
 0x2cb   :  { %v1129_v16 = vpop.f32.mrb[58].mxu0  ;;  %v5199_v21 = vadd.f32 %v1127_v50, %v5025_v19  ;;  %v4313_v39 = vpop.eup %4312  ;;  %v1376_v13 = vadd.f32 1.0, %v4311_v20  ;;  %v1318_v26 = vmul.f32 0.7978846, %v1286_v9  ;;  %v5210_v27 = vmul.f32 %v1228_v46, %v5155_v24 }
 0x2cc   :  { %v5202_v22 = vadd.f32 %v1129_v16, %v5022_v37  ;;  %v1131_v23 = vpop.f32.mrb[59].mxu0  ;;  %v1378_v28 = vadd.f32 1.0, %v4313_v39  ;;  %4318 = vtanh.f32 %v1316_v7  ;;  %v1261_v45 = vmul.f32 %v1229_v15, %v5160_v29 }
 0x2cd   :  { %v5213_v30 = vadd.f32 %v1131_v23, %v5025_v19  ;;  %v1200_v14 = vmul.f32 0.044715, %v5191_v8  ;;  %v1158_v33 = vmul.f32 0.5, %v5121_v40  ;;  %4320 = vtanh.f32 %v1318_v26 }
 0x2ce   :  { %v1201_v35 = vmul.f32 0.044715, %v5199_v21  ;;  %v1408_v38 = vmul.f32 %v1376_v13, %v5114_v1  ;;  %v1410_v10 = vmul.f32 %v1378_v28, %v1154_v36  ;;  %v1289_v42 = vadd.f32 %v1257_v57, %v5131_v55 }
 0x2cf   :  { %v1262_v44 = vmul.f32 %v1230_v25, %v5168_v47  ;;  %v1263_v52 = vmul.f32 %v1231_v18, %v5171_v51  ;;  %v1202_v54 = vmul.f32 0.044715, %v5202_v22  ;;  %v1291_v56 = vadd.f32 %v1259_v4, %v5145_v11 }
 0x2d0   :  { %v4315_v58 = vpop.eup %4314  ;;  %v1436_v59 = vpack.c.bf16 %v1410_v10, %v1408_v38  ;;  %v1203_v40 = vmul.f32 0.044715, %v5213_v30  ;;  %v1321_v36 = vmul.f32 0.7978846, %v1289_v42  ;;  %v1232_v57 = vmul.f32 %v1200_v14, %v5191_v8 }
 0x2d1   :  { %v1135_v49 = vpop.f32.mrb[60].mxu0  ;;  %v4317_v43 = vpop.eup %4316  ;;  %v1381_v2 = vadd.f32 1.0, %v4315_v58  ;;  %v1323_v5 = vmul.f32 0.7978846, %v1291_v56  ;;  %v1233_v46 = vmul.f32 %v1201_v35, %v5199_v21  ;;  %v1234_v4 = vmul.f32 %v1202_v54, %v5202_v22 }
 0x2d2   :  { %v5227_v60 = vadd.f32 %v1135_v49, %v5022_v37  ;;  %v1137_v1 = vpop.f32.mrb[61].mxu0  ;;  %1705 = vmatmul.mubr.bf16.gmra.mrb[40].mxu1 %v1436_v59  ;;  %v1383_v50 = vadd.f32 1.0, %v4317_v43  ;;  %4322 = vtanh.f32 %v1321_v36  ;;  %v1161_v16 = vmul.f32 0.5, %v5131_v55 }
 0x2d3   :  { %v5231_v62 = vadd.f32 %v1137_v1, %v5025_v19  ;;  %v1139_v3 = vpop.f32.mrb[62].mxu0  ;;  %4324 = vtanh.f32 %v1323_v5  ;;  %v1235_v9 = vmul.f32 %v1203_v40, %v5213_v30  ;;  %v1413_v23 = vmul.f32 %v1381_v2, %v5187_v6 }
 0x2d4   :  { %v5235_v12 = vadd.f32 %v1139_v3, %v5022_v37  ;;  %v1141_v41 = vpop.f32.mrb[63].mxu0  ;;  %v1415_v7 = vmul.f32 %v1383_v50, %v1159_v17  ;;  %v1204_v37 = vmul.f32 0.044715, %v5227_v60  ;;  %v1288_v25 = vadd.f32 %v5174_v53, %v5124_v48 }
 0x2d5   :  { %v5239_v15 = vadd.f32 %v1141_v41, %v5025_v19  ;;  %v1205_v20 = vmul.f32 0.044715, %v5231_v62  ;;  %v1290_v19 = vadd.f32 %v5181_v31, %v5136_v61  ;;  %v1264_v55 = vmul.f32 %v1232_v57, %v5191_v8 }
 0x2d6   :  { %v4319_v18 = vpop.eup %4318  ;;  %v1265_v13 = vmul.f32 %v1233_v46, %v5199_v21  ;;  %v1439_v26 = vpack.c.bf16 %v1415_v7, %v1413_v23  ;;  %v1163_v28 = vmul.f32 0.5, %v5145_v11  ;;  %v1266_v17 = vmul.f32 %v1234_v4, %v5202_v22 }
 0x2d7   :  { %v1207_v39 = vmul.f32 0.044715, %v5239_v15  ;;  %v4321_v6 = vpop.eup %4320  ;;  %v1206_v14 = vmul.f32 0.044715, %v5235_v12  ;;  %v1380_v35 = vadd.f32 1.0, %v4319_v18  ;;  %v1237_v53 = vmul.f32 %v1205_v20, %v5231_v62 }
 0x2d8   :  { %v1320_v38 = vmul.f32 0.7978846, %v1288_v25  ;;  %1714 = vmatprep.mubr.bf16.mxu1 %v1439_v26  ;;  %v1382_v10 = vadd.f32 1.0, %v4321_v6  ;;  %v1322_v42 = vmul.f32 0.7978846, %v1290_v19  ;;  %v1267_v54 = vmul.f32 %v1235_v9, %v5213_v30 }
 0x2d9   :  { %v1239_v31 = vmul.f32 %v1207_v39, %v5239_v15  ;;  %v1236_v49 = vmul.f32 %v1204_v37, %v5227_v60  ;;  %v1293_v11 = vadd.f32 %v1261_v45, %v5160_v29  ;;  %v1412_v56 = vmul.f32 %v1380_v35, %v5205_v63 }
 0x2da   :  { %4326 = vtanh.f32 %v1320_v38  ;;  %v1414_v58 = vmul.f32 %v1382_v10, %v1158_v33  ;;  %v1295_v59 = vadd.f32 %v1263_v52, %v5171_v51  ;;  %v1238_v40 = vmul.f32 %v1206_v14, %v5235_v12 }
 0x2db   :  { %4328 = vtanh.f32 %v1322_v42  ;;  %v1325_v1 = vmul.f32 0.7978846, %v1293_v11  ;;  %v1292_v36 = vadd.f32 %v5210_v27, %v5155_v24  ;;  %v1294_v43 = vadd.f32 %v1262_v44, %v5168_v47 }
 0x2dc   :  { %v4323_v57 = vpop.eup %4322  ;;  %v1269_v2 = vmul.f32 %v1237_v53, %v5231_v62  ;;  %v1438_v3 = vpack.c.bf16 %v1414_v58, %v1412_v56  ;;  %v1271_v45 = vmul.f32 %v1239_v31, %v5239_v15  ;;  %v1327_v5 = vmul.f32 0.7978846, %v1295_v59 }
 0x2dd   :  { %v4325_v63 = vpop.eup %4324  ;;  %v1385_v33 = vadd.f32 1.0, %v4323_v57  ;;  %4330 = vtanh.f32 %v1325_v1  ;;  %v1324_v46 = vmul.f32 0.7978846, %v1292_v36  ;;  %v1326_v52 = vmul.f32 0.7978846, %v1294_v43 }
 0x2de   :  { %1715 = vmatmul.mubr.bf16.gmra.mrb[44].mxu1 %v1438_v3  ;;  %v1387_v50 = vadd.f32 1.0, %v4325_v63  ;;  %4332 = vtanh.f32 %v1327_v5  ;;  %v1297_v41 = vadd.f32 %v1265_v13, %v5199_v21  ;;  %v1299_v27 = vadd.f32 %v1267_v54, %v5213_v30 }
 0x2df   :  { %v1417_v44 = vmul.f32 %v1385_v33, %v1161_v16  ;;  %4334 = vtanh.f32 %v1324_v46  ;;  %v1268_v23 = vmul.f32 %v1236_v49, %v5227_v60  ;;  %v1270_v7 = vmul.f32 %v1238_v40, %v5235_v12 }
 0x2e0   :  { %v1419_v4 = vmul.f32 %v1387_v50, %v1163_v28  ;;  %4336 = vtanh.f32 %v1326_v52  ;;  %v1329_v9 = vmul.f32 0.7978846, %v1297_v41  ;;  %v1331_v20 = vmul.f32 0.7978846, %v1299_v27 }
 0x2e1   :  { %v1296_v37 = vadd.f32 %v1264_v55, %v5191_v8  ;;  %v1298_v39 = vadd.f32 %v1266_v17, %v5202_v22  ;;  %v1301_v19 = vadd.f32 %v1269_v2, %v5231_v62  ;;  %v1303_v18 = vadd.f32 %v1271_v45, %v5239_v15 }
 0x2e2   :  { %v1441_v25 = vpack.c.bf16 %v1419_v4, %v1417_v44  ;;  %4338 = vtanh.f32 %v1329_v9  ;;  %v1160_v13 = vmul.f32 0.5, %v5124_v48  ;;  %v1162_v14 = vmul.f32 0.5, %v5136_v61 }
 0x2e3   :  { %4340 = vtanh.f32 %v1331_v20  ;;  %v1328_v26 = vmul.f32 0.7978846, %v1296_v37  ;;  %v1330_v28 = vmul.f32 0.7978846, %v1298_v39  ;;  %v1333_v55 = vmul.f32 0.7978846, %v1301_v19 }
 0x2e4   :  { %v4327_v16 = vpop.eup %4326  ;;  %1724 = vmatprep.mubr.bf16.mxu1 %v1441_v25  ;;  %v1335_v38 = vmul.f32 0.7978846, %v1303_v18  ;;  %v1300_v53 = vadd.f32 %v1268_v23, %v5227_v60  ;;  %v1302_v10 = vadd.f32 %v1270_v7, %v5235_v12  ;;  %v1165_v56 = vmul.f32 0.5, %v5160_v29 }
 0x2e5   :  { %v4329_v6 = vpop.eup %4328  ;;  %v1384_v35 = vadd.f32 1.0, %v4327_v16  ;;  %4342 = vtanh.f32 %v1328_v26  ;;  %v1167_v40 = vmul.f32 0.5, %v5171_v51  ;;  %v1164_v43 = vmul.f32 0.5, %v5155_v24 }
 0x2e6   :  { %v1386_v17 = vadd.f32 1.0, %v4329_v6  ;;  %4344 = vtanh.f32 %v1330_v28  ;;  %v1332_v54 = vmul.f32 0.7978846, %v1300_v53  ;;  %v1334_v49 = vmul.f32 0.7978846, %v1302_v10 }
 0x2e7   :  { %v1416_v31 = vmul.f32 %v1384_v35, %v1160_v13  ;;  %v4331_v42 = vpop.eup %4330  ;;  %4346 = vtanh.f32 %v1333_v55  ;;  %v1166_v45 = vmul.f32 0.5, %v5168_v47  ;;  %v1169_v51 = vmul.f32 0.5, %v5199_v21 }
 0x2e8   :  { %v1418_v48 = vmul.f32 %v1386_v17, %v1162_v14  ;;  %v4333_v11 = vpop.eup %4332  ;;  %v1389_v61 = vadd.f32 1.0, %v4331_v42  ;;  %4348 = vtanh.f32 %v1335_v38  ;;  %v1171_v41 = vmul.f32 0.5, %v5213_v30  ;;  %v4204_v42 = vld [vmem:[#allocation7 + $0x84] ss:$8 sps:$4 sm:$0xff]  }
 0x2e9   :  { %v4335_v58 = vpop.eup %4334  ;;  %v1391_v1 = vadd.f32 1.0, %v4333_v11  ;;  %4350 = vtanh.f32 %v1332_v54  ;;  %v1168_v7 = vmul.f32 0.5, %v5191_v8  ;;  %v1170_v37 = vmul.f32 0.5, %v5202_v22  ;;  %2289 = vmatprep.subr.bf16.mxu0 %v4204_v42  ;;  %v4208_v54 = vld [vmem:[#allocation7 + $0xa0] ss:$8 sps:$4 sm:$0xff]  }
 0x2ea   :  { %v1440_v59 = vpack.c.bf16 %v1418_v48, %v1416_v31  ;;  %v4337_v36 = vpop.eup %4336  ;;  %v1388_v57 = vadd.f32 1.0, %v4335_v58  ;;  %4352 = vtanh.f32 %v1334_v49  ;;  %v1421_v2 = vmul.f32 %v1389_v61, %v1165_v56  ;;  %v4207_v48 = vld [vmem:[#allocation7 + $0x94] ss:$8 sps:$4 sm:$0xff]   ;;  %v4211_v11 = vld [vmem:[#allocation7 + $0xb0] ss:$8 sps:$4 sm:$0xff]  }
 0x2eb   :  { %v1423_v3 = vmul.f32 %v1391_v1, %v1167_v40  ;;  %v1390_v5 = vadd.f32 1.0, %v4337_v36  ;;  %v1173_v21 = vmul.f32 0.5, %v5231_v62  ;;  %v1175_v26 = vmul.f32 0.5, %v5239_v15  ;;  %v4202_v15 = vld [vmem:[#allocation7 + $0x80] ss:$8 sps:$4 sm:$0xff]  }
 0x2ec   :  { %1725 = vmatmul.mubr.bf16.gmra.mrb[48].mxu1 %v1440_v59  ;;  %v4339_v29 = vpop.eup %4338  ;;  %v1420_v46 = vmul.f32 %v1388_v57, %v1164_v43  ;;  %v1172_v14 = vmul.f32 0.5, %v5227_v60  ;;  %v1174_v8 = vmul.f32 0.5, %v5235_v12  ;;  %2290 = vmatpush1.bf16.msra.mxu0 %v4202_v15  ;;  %v4205_v60 = vld [vmem:[#allocation7 + $0x90] ss:$8 sps:$4 sm:$0xff]   ;;  %v4210_v12 = vld [vmem:[#allocation7 + $0xa4] ss:$8 sps:$4 sm:$0xff]  }
 0x2ed   :  { %v4341_v63 = vpop.eup %4340  ;;  %v1443_v33 = vpack.c.bf16 %v1423_v3, %v1421_v2  ;;  %v1422_v52 = vmul.f32 %v1390_v5, %v1166_v45  ;;  %v1393_v50 = vadd.f32 1.0, %v4339_v29  ;;  %2291 = vmatprep.subr.bf16.mxu0 %v4207_v48  ;;  %v4213_v49 = vld [vmem:[#allocation7 + $0xb4] ss:$8 sps:$4 sm:$0xff]   ;;  %v4214_v56 = vld [vmem:[#allocation7 + $0xc0] ss:$8 sps:$4 sm:$0xff]  }
 0x2ee   :  { %v1395_v27 = vadd.f32 1.0, %v4341_v63  ;;  %v4216_v61 = vld [vmem:[#allocation7 + $0xc4] ss:$8 sps:$4 sm:$0xff]   ;;  %v4219_v58 = vld [vmem:[#allocation7 + $0xd4] ss:$8 sps:$4 sm:$0xff]  }
 0x2ef   :  { %v4343_v24 = vpop.eup %4342  ;;  %1734 = vmatprep.mubr.bf16.mxu1 %v1443_v33  ;;  %v1442_v44 = vpack.c.bf16 %v1422_v52, %v1420_v46  ;;  %v1425_v9 = vmul.f32 %v1393_v50, %v1169_v51  ;;  %v4217_v59 = vld [vmem:[#allocation7 + $0xd0] ss:$8 sps:$4 sm:$0xff]   ;;  %v4220_v40 = vld [vmem:[#allocation7 + $0xe0] ss:$8 sps:$4 sm:$0xff]   ;;  %v4222_v1 = vld [vmem:[#allocation7 + $0xe4] ss:$8 sps:$4 sm:$0xff]  }
 0x2f0   :  { %v4345_v4 = vpop.eup %4344  ;;  %v1427_v20 = vmul.f32 %v1395_v27, %v1171_v41  ;;  %v1392_v23 = vadd.f32 1.0, %v4343_v24  ;;  %2292 = vmatpush1.bf16.msra.mxu0 %v4205_v60  ;;  %v4225_v36 = vld [vmem:[#allocation7 + $0xf4] ss:$8 sps:$4 sm:$0xff]   ;;  %v4223_v43 = vld [vmem:[#allocation7 + $0xf0] ss:$8 sps:$4 sm:$0xff]   ;;  %v4226_v57 = vld [vmem:[#allocation8 + $0x40] sm:$0xff]  }
 0x2f1   :  { %v4347_v47 = vpop.eup %4346  ;;  %v1394_v39 = vadd.f32 1.0, %v4345_v4  ;;  %2293 = vmatprep.subr.bf16.mxu0 %v4210_v12  ;;  %v4227_v2 = vld [vmem:[#allocation8] sm:$0xff]   ;;  %v4228_v3 = vld [vmem:[#allocation8 + $0x48] sm:$0xff]   ;;  %3992 = vmatprep.subr.bf16.mxu1 %v4226_v57  ;;  %v4230_v5 = vld [vmem:[#allocation8 + $0x50] sm:$0xff]  }
 0x2f2   :  { %v4349_v25 = vpop.eup %4348  ;;  %v1445_v19 = vpack.c.bf16 %v1427_v20, %v1425_v9  ;;  %v1397_v18 = vadd.f32 1.0, %v4347_v47  ;;  %v1424_v16 = vmul.f32 %v1392_v23, %v1168_v7  ;;  %3993 = vmatpush3.bf16.msra.mxu1 %v4227_v2  ;;  %v4229_v45 = vld [vmem:[#allocation8 + $0x8] sm:$0xff]   ;;  %v4231_v63 = vld [vmem:[#allocation8 + $0x10] sm:$0xff]   ;;  %v4232_v33 = vld [vmem:[#allocation8 + $0x58] sm:$0xff]  }
 0x2f3   :  { %v4351_v30 = vpop.eup %4350  ;;  %v1426_v13 = vmul.f32 %v1394_v39, %v1170_v37  ;;  %v1399_v28 = vadd.f32 1.0, %v4349_v25  ;;  %3994 = vmatprep.subr.bf16.mxu1 %v4228_v3  ;;  %v1480_v29 = vld [vmem:[%s5876_s5] sm:$0x3]  ;;  %v4233_v50 = vld [vmem:[#allocation8 + $0x18] sm:$0xff]  }
 0x2f4   :  { %1735 = vmatmul.mubr.bf16.gmra.mrb[52].mxu1 %v1442_v44  ;;  %v4353_v6 = vpop.eup %4352  ;;  %v1396_v22 = vadd.f32 1.0, %v4351_v30  ;;  %v1429_v55 = vmul.f32 %v1397_v18, %v1173_v21  ;;  %2294 = vmatpush1.bf16.msra.mxu0 %v4208_v54  ;;  %v5297_v46 = vrot.slane %v1480_v29, %v5014_v32  ;;  %v5300_v52 = vrot.slane %v1480_v29, %v5019_v34 }
 0x2f5   :  { %1744 = vmatprep.mubr.bf16.mxu1 %v1445_v19  ;;  %v1444_v35 = vpack.c.bf16 %v1426_v13, %v1424_v16  ;;  %v1431_v38 = vmul.f32 %v1399_v28, %v1175_v26  ;;  %v1398_v17 = vadd.f32 1.0, %v4353_v6  ;;  %2295 = vmatprep.subr.bf16.mxu0 %v4213_v49 }
 0x2f6   :  { %v1428_v53 = vmul.f32 %v1396_v22, %v1172_v14  ;;  %3995 = vmatpush3.bf16.msra.mxu1 %v4229_v45 }
 0x2f7   :  { %v1447_v62 = vpack.c.bf16 %v1431_v38, %v1429_v55  ;;  %v1430_v10 = vmul.f32 %v1398_v17, %v1174_v8  ;;  %3996 = vmatprep.subr.bf16.mxu1 %v4230_v5 }
 0x2f8   :  { %2296 = vmatpush1.bf16.msra.mxu0 %v4211_v11 }
 0x2f9   :  { %v1446_v31 = vpack.c.bf16 %v1430_v10, %v1428_v53  ;;  %2297 = vmatprep.subr.bf16.mxu0 %v4216_v61 }
 0x2fa   :  { %3997 = vmatpush3.bf16.msra.mxu1 %v4231_v63 }
 0x2fb   :  { %3998 = vmatprep.subr.bf16.mxu1 %v4232_v33 }
 0x2fc   :  { %1745 = vmatmul.mubr.bf16.gmra.mrb[56].mxu1 %v1444_v35  ;;  %2298 = vmatpush1.bf16.msra.mxu0 %v4214_v56 }
 0x2fd   :  { %1754 = vmatprep.mubr.bf16.mxu1 %v1447_v62  ;;  %2299 = vmatprep.subr.bf16.mxu0 %v4219_v58 }
 0x2fe   :  { %3999 = vmatpush3.bf16.msra.mxu1 %v4233_v50 }
 0x300   :  { %2300 = vmatpush1.bf16.msra.mxu0 %v4217_v59 }
 0x301   :  { %2301 = vmatprep.subr.bf16.mxu0 %v4222_v1 }
 0x304   :  { %1755 = vmatmul.mubr.bf16.gmra.mrb[60].mxu1 %v1446_v31  ;;  %2302 = vmatpush1.bf16.msra.mxu0 %v4220_v40 }
 0x305   :  { %2303 = vmatprep.subr.bf16.mxu0 %v4225_v36 }
 0x308   :  { %2304 = vmatpush1.bf16.msra.mxu0 %v4223_v43 }
 0x38e   :  { %v1686_v51 = vpop.f32.mrb[32].mxu1 }
 0x38f   :  { %v5303_v41 = vadd.f32 %v1686_v51, %v5297_v46  ;;  %v1688_v27 = vpop.f32.mrb[33].mxu1 }
 0x390   :  { %v5306_v24 = vadd.f32 %v1688_v27, %v5300_v52  ;;  %v1690_v44 = vpop.f32.mrb[34].mxu1 }
 0x391   :  { %v1797_v4 = vmul.f32 0.044715, %v5303_v41  ;;  %v5310_v9 = vadd.f32 %v1690_v44, %v5297_v46  ;;  %v1692_v20 = vpop.f32.mrb[35].mxu1 }
 0x392   :  { %v1798_v23 = vmul.f32 0.044715, %v5306_v24  ;;  %v5314_v47 = vadd.f32 %v1692_v20, %v5300_v52  ;;  %v1765_v20 = vmul.f32 0.5, %v5303_v41 }
 0x393   :  { %v1829_v7 = vmul.f32 %v1797_v4, %v5303_v41  ;;  %v1799_v37 = vmul.f32 0.044715, %v5310_v9 }
 0x394   :  { %v1830_v39 = vmul.f32 %v1798_v23, %v5306_v24  ;;  %v1800_v25 = vmul.f32 0.044715, %v5314_v47  ;;  %v1767_v23 = vmul.f32 0.5, %v5310_v9 }
 0x395   :  { %v1861_v19 = vmul.f32 %v1829_v7, %v5303_v41  ;;  %v1831_v21 = vmul.f32 %v1799_v37, %v5310_v9 }
 0x396   :  { %v1862_v18 = vmul.f32 %v1830_v39, %v5306_v24  ;;  %v1832_v30 = vmul.f32 %v1800_v25, %v5314_v47  ;;  %v1696_v16 = vpop.f32.mrb[36].mxu1 }
 0x397   :  { %v1893_v13 = vadd.f32 %v1861_v19, %v5303_v41  ;;  %v1863_v26 = vmul.f32 %v1831_v21, %v5310_v9  ;;  %v5327_v28 = vadd.f32 %v1696_v16, %v5297_v46  ;;  %v1698_v6 = vpop.f32.mrb[37].mxu1  ;;  %v1766_v21 = vmul.f32 0.5, %v5306_v24 }
 0x398   :  { %v1864_v14 = vmul.f32 %v1832_v30, %v5314_v47  ;;  %v5331_v8 = vadd.f32 %v1698_v6, %v5300_v52  ;;  %v1700_v22 = vpop.f32.mrb[38].mxu1  ;;  %v1894_v35 = vadd.f32 %v1862_v18, %v5306_v24  ;;  %v1768_v18 = vmul.f32 0.5, %v5314_v47 }
 0x399   :  { %v1925_v55 = vmul.f32 0.7978846, %v1893_v13  ;;  %v1895_v38 = vadd.f32 %v1863_v26, %v5310_v9  ;;  %v1801_v17 = vmul.f32 0.044715, %v5327_v28  ;;  %v5337_v62 = vadd.f32 %v1700_v22, %v5297_v46  ;;  %v1702_v53 = vpop.f32.mrb[39].mxu1 }
 0x39a   :  { %v1802_v10 = vmul.f32 0.044715, %v5331_v8  ;;  %v5341_v31 = vadd.f32 %v1702_v53, %v5300_v52  ;;  %v1896_v15 = vadd.f32 %v1864_v14, %v5314_v47  ;;  %v1926_v42 = vmul.f32 0.7978846, %v1894_v35 }
 0x39b   :  { %4354 = vtanh.f32 %v1925_v55  ;;  %v1927_v48 = vmul.f32 0.7978846, %v1895_v38  ;;  %v1833_v60 = vmul.f32 %v1801_v17, %v5327_v28  ;;  %v1803_v12 = vmul.f32 0.044715, %v5337_v62 }
 0x39c   :  { %v1834_v54 = vmul.f32 %v1802_v10, %v5331_v8  ;;  %v1804_v49 = vmul.f32 0.044715, %v5341_v31  ;;  %v1928_v11 = vmul.f32 0.7978846, %v1896_v15  ;;  %4356 = vtanh.f32 %v1926_v42 }
 0x39d   :  { %4358 = vtanh.f32 %v1927_v48  ;;  %v1865_v56 = vmul.f32 %v1833_v60, %v5327_v28  ;;  %v1835_v61 = vmul.f32 %v1803_v12, %v5337_v62  ;;  %v1770_v60 = vmul.f32 0.5, %v5331_v8 }
 0x39e   :  { %v1866_v58 = vmul.f32 %v1834_v54, %v5331_v8  ;;  %v1836_v59 = vmul.f32 %v1804_v49, %v5341_v31  ;;  %4360 = vtanh.f32 %v1928_v11 }
 0x39f   :  { %v1867_v40 = vmul.f32 %v1835_v61, %v5337_v62  ;;  %v1897_v1 = vadd.f32 %v1865_v56, %v5327_v28  ;;  %v1769_v61 = vmul.f32 0.5, %v5327_v28 }
 0x3a0   :  { %v1868_v36 = vmul.f32 %v1836_v59, %v5341_v31  ;;  %v1898_v43 = vadd.f32 %v1866_v58, %v5331_v8 }
 0x3a1   :  { %v1899_v57 = vadd.f32 %v1867_v40, %v5337_v62  ;;  %v1929_v2 = vmul.f32 0.7978846, %v1897_v1  ;;  %v1771_v40 = vmul.f32 0.5, %v5337_v62 }
 0x3a2   :  { %v1900_v3 = vadd.f32 %v1868_v36, %v5341_v31  ;;  %v1930_v45 = vmul.f32 0.7978846, %v1898_v43  ;;  %v1772_v43 = vmul.f32 0.5, %v5341_v31 }
 0x3a3   :  { %v1931_v5 = vmul.f32 0.7978846, %v1899_v57  ;;  %4362 = vtanh.f32 %v1929_v2 }
 0x3a4   :  { %v1932_v29 = vmul.f32 0.7978846, %v1900_v3  ;;  %4364 = vtanh.f32 %v1930_v45 }
 0x3a5   :  { %v4355_v63 = vpop.eup %4354  ;;  %4366 = vtanh.f32 %v1931_v5  ;;  %v1706_v27 = vpop.f32.mrb[40].mxu1 }
 0x3a6   :  { %v4357_v33 = vpop.eup %4356  ;;  %v1989_v50 = vadd.f32 1.0, %v4355_v63  ;;  %4368 = vtanh.f32 %v1932_v29  ;;  %v5361_v7 = vadd.f32 %v1706_v27, %v5297_v46  ;;  %v1708_v37 = vpop.f32.mrb[41].mxu1 }
 0x3a7   :  { %v4359_v51 = vpop.eup %4358  ;;  %v1990_v44 = vadd.f32 1.0, %v4357_v33  ;;  %v5364_v25 = vadd.f32 %v1708_v37, %v5300_v52  ;;  %v1710_v19 = vpop.f32.mrb[42].mxu1 }
 0x3a8   :  { %v4361_v4 = vpop.eup %4360  ;;  %v1991_v39 = vadd.f32 1.0, %v4359_v51  ;;  %v1805_v16 = vmul.f32 0.044715, %v5361_v7  ;;  %v5370_v41 = vadd.f32 %v1710_v19, %v5297_v46  ;;  %v1712_v9 = vpop.f32.mrb[43].mxu1  ;;  %v2021_v13 = vmul.f32 %v1989_v50, %v1765_v20 }
 0x3a9   :  { %v1992_v30 = vadd.f32 1.0, %v4361_v4  ;;  %v1806_v6 = vmul.f32 0.044715, %v5364_v25  ;;  %v5374_v14 = vadd.f32 %v1712_v9, %v5300_v52  ;;  %v2022_v22 = vmul.f32 %v1990_v44, %v1766_v21 }
 0x3aa   :  { %v2023_v26 = vmul.f32 %v1991_v39, %v1767_v23  ;;  %v1837_v24 = vmul.f32 %v1805_v16, %v5361_v7  ;;  %v1807_v47 = vmul.f32 0.044715, %v5370_v41 }
 0x3ab   :  { %v2024_v35 = vmul.f32 %v1992_v30, %v1768_v18  ;;  %v1838_v17 = vmul.f32 %v1806_v6, %v5364_v25  ;;  %v1808_v53 = vmul.f32 0.044715, %v5374_v14 }
 0x3ac   :  { %v2053_v55 = vpack.c.bf16 %v2023_v26, %v2021_v13  ;;  %v1869_v42 = vmul.f32 %v1837_v24, %v5361_v7  ;;  %v1839_v48 = vmul.f32 %v1807_v47, %v5370_v41 }
 0x3ad   :  { %v4363_v38 = vpop.eup %4362  ;;  %v2054_v10 = vpack.c.bf16 %v2024_v35, %v2022_v22  ;;  %v1870_v49 = vmul.f32 %v1838_v17, %v5364_v25  ;;  %v1840_v11 = vmul.f32 %v1808_v53, %v5374_v14 }
 0x3ae   :  { %v4365_v15 = vpop.eup %4364  ;;  %v1993_v12 = vadd.f32 1.0, %v4363_v38  ;;  %v1871_v59 = vmul.f32 %v1839_v48, %v5370_v41  ;;  %v1901_v36 = vadd.f32 %v1869_v42, %v5361_v7 }
 0x3af   :  { %v4367_v54 = vpop.eup %4366  ;;  %2305 = vmatprep.mubr.bf16.mxu0 %v2054_v10  ;;  %v1994_v56 = vadd.f32 1.0, %v4365_v15  ;;  %v1872_v8 = vmul.f32 %v1840_v11, %v5374_v14  ;;  %v1902_v2 = vadd.f32 %v1870_v49, %v5364_v25  ;;  %v1774_v10 = vmul.f32 0.5, %v5364_v25 }
 0x3b0   :  { %v4369_v58 = vpop.eup %4368  ;;  %2306 = vmatmul.mubr.bf16.vlgmr.msra.gmra.mrb[64].mxu0 %v2053_v55  ;;  %v1995_v1 = vadd.f32 1.0, %v4367_v54  ;;  %v2025_v3 = vmul.f32 %v1993_v12, %v1769_v61  ;;  %v1903_v28 = vadd.f32 %v1871_v59, %v5370_v41  ;;  %v1933_v5 = vmul.f32 0.7978846, %v1901_v36 }
 0x3b1   :  { %v1996_v57 = vadd.f32 1.0, %v4369_v58  ;;  %v1716_v29 = vpop.f32.mrb[44].mxu1  ;;  %v2026_v63 = vmul.f32 %v1994_v56, %v1770_v60  ;;  %v1904_v62 = vadd.f32 %v1872_v8, %v5374_v14  ;;  %v1934_v50 = vmul.f32 0.7978846, %v1902_v2 }
 0x3b2   :  { %v2027_v45 = vmul.f32 %v1995_v1, %v1771_v40  ;;  %v5395_v51 = vadd.f32 %v1716_v29, %v5297_v46  ;;  %v1718_v27 = vpop.f32.mrb[45].mxu1  ;;  %v1935_v31 = vmul.f32 0.7978846, %v1903_v28  ;;  %4370 = vtanh.f32 %v1933_v5 }
 0x3b3   :  { %v2028_v33 = vmul.f32 %v1996_v57, %v1772_v43  ;;  %v5398_v4 = vadd.f32 %v1718_v27, %v5300_v52  ;;  %v1720_v20 = vpop.f32.mrb[46].mxu1  ;;  %v1936_v37 = vmul.f32 0.7978846, %v1904_v62  ;;  %4372 = vtanh.f32 %v1934_v50 }
 0x3b4   :  { %v2055_v44 = vpack.c.bf16 %v2027_v45, %v2025_v3  ;;  %v1809_v39 = vmul.f32 0.044715, %v5395_v51  ;;  %v5402_v19 = vadd.f32 %v1720_v20, %v5297_v46  ;;  %v1722_v21 = vpop.f32.mrb[47].mxu1  ;;  %4374 = vtanh.f32 %v1935_v31 }
 0x3b5   :  { %v2056_v23 = vpack.c.bf16 %v2028_v33, %v2026_v63  ;;  %v1810_v18 = vmul.f32 0.044715, %v5398_v4  ;;  %v5406_v30 = vadd.f32 %v1722_v21, %v5300_v52  ;;  %4376 = vtanh.f32 %v1936_v37 }
 0x3b6   :  { %v1841_v16 = vmul.f32 %v1809_v39, %v5395_v51  ;;  %v1811_v9 = vmul.f32 0.044715, %v5402_v19  ;;  %v1773_v15 = vmul.f32 0.5, %v5361_v7  ;;  %v1775_v12 = vmul.f32 0.5, %v5370_v41 }
 0x3b7   :  { %2315 = vmatprep.mubr.bf16.mxu0 %v2056_v23  ;;  %v1842_v13 = vmul.f32 %v1810_v18, %v5398_v4  ;;  %v1812_v26 = vmul.f32 0.044715, %v5406_v30  ;;  %v1776_v58 = vmul.f32 0.5, %v5374_v14  ;;  %v1777_v18 = vmul.f32 0.5, %v5395_v51 }
 0x3b8   :  { %2316 = vmatmul.mubr.bf16.gmra.mrb[68].mxu0 %v2055_v44  ;;  %v1873_v6 = vmul.f32 %v1841_v16, %v5395_v51  ;;  %v1843_v22 = vmul.f32 %v1811_v9, %v5402_v19 }
 0x3b9   :  { %v1874_v35 = vmul.f32 %v1842_v13, %v5398_v4  ;;  %v1844_v24 = vmul.f32 %v1812_v26, %v5406_v30 }
 0x3ba   :  { %v1875_v47 = vmul.f32 %v1843_v22, %v5402_v19  ;;  %v1905_v55 = vadd.f32 %v1873_v6, %v5395_v51  ;;  %v1778_v6 = vmul.f32 0.5, %v5398_v4  ;;  %v1779_v51 = vmul.f32 0.5, %v5402_v19 }
 0x3bb   :  { %v1876_v38 = vmul.f32 %v1844_v24, %v5406_v30  ;;  %v1906_v17 = vadd.f32 %v1874_v35, %v5398_v4 }
 0x3bc   :  { %v4371_v53 = vpop.eup %4370  ;;  %v1907_v42 = vadd.f32 %v1875_v47, %v5402_v19  ;;  %v1937_v48 = vmul.f32 0.7978846, %v1905_v55 }
 0x3bd   :  { %v4373_v60 = vpop.eup %4372  ;;  %v1997_v54 = vadd.f32 1.0, %v4371_v53  ;;  %v1908_v49 = vadd.f32 %v1876_v38, %v5406_v30  ;;  %v1938_v11 = vmul.f32 0.7978846, %v1906_v17 }
 0x3be   :  { %v4375_v56 = vpop.eup %4374  ;;  %v1998_v59 = vadd.f32 1.0, %v4373_v60  ;;  %v1939_v40 = vmul.f32 0.7978846, %v1907_v42  ;;  %4378 = vtanh.f32 %v1937_v48 }
 0x3bf   :  { %v1726_v61 = vpop.f32.mrb[48].mxu1  ;;  %v4377_v25 = vpop.eup %4376  ;;  %v1999_v36 = vadd.f32 1.0, %v4375_v56  ;;  %v2029_v8 = vmul.f32 %v1997_v54, %v1773_v15  ;;  %v1940_v43 = vmul.f32 0.7978846, %v1908_v49  ;;  %4380 = vtanh.f32 %v1938_v11 }
 0x3c0   :  { %v5427_v7 = vadd.f32 %v1726_v61, %v5297_v46  ;;  %v1728_v1 = vpop.f32.mrb[49].mxu1  ;;  %v2000_v2 = vadd.f32 1.0, %v4377_v25  ;;  %v2030_v3 = vmul.f32 %v1998_v59, %v1774_v10  ;;  %v1780_v10 = vmul.f32 0.5, %v5406_v30 }
 0x3c1   :  { %v5430_v41 = vadd.f32 %v1728_v1, %v5300_v52  ;;  %v1730_v57 = vpop.f32.mrb[50].mxu1  ;;  %v2031_v5 = vmul.f32 %v1999_v36, %v1775_v12  ;;  %4382 = vtanh.f32 %v1940_v43 }
 0x3c2   :  { %v1813_v14 = vmul.f32 0.044715, %v5427_v7  ;;  %v5434_v45 = vadd.f32 %v1730_v57, %v5297_v46  ;;  %v1732_v28 = vpop.f32.mrb[51].mxu1  ;;  %v2032_v33 = vmul.f32 %v2000_v2, %v1776_v58  ;;  %4384 = vtanh.f32 %v1939_v40 }
 0x3c3   :  { %v1814_v29 = vmul.f32 0.044715, %v5430_v41  ;;  %v5438_v63 = vadd.f32 %v1732_v28, %v5300_v52  ;;  %v2057_v27 = vpack.c.bf16 %v2031_v5, %v2029_v8 }
 0x3c4   :  { %v1845_v62 = vmul.f32 %v1813_v14, %v5427_v7  ;;  %v1815_v50 = vmul.f32 0.044715, %v5434_v45  ;;  %v2058_v20 = vpack.c.bf16 %v2032_v33, %v2030_v3 }
 0x3c5   :  { %v1846_v44 = vmul.f32 %v1814_v29, %v5430_v41  ;;  %v1816_v31 = vmul.f32 0.044715, %v5438_v63 }
 0x3c6   :  { %v1847_v23 = vmul.f32 %v1815_v50, %v5434_v45  ;;  %2325 = vmatprep.mubr.bf16.mxu0 %v2058_v20  ;;  %v1877_v16 = vmul.f32 %v1845_v62, %v5427_v7 }
 0x3c7   :  { %v1878_v37 = vmul.f32 %v1846_v44, %v5430_v41  ;;  %v1848_v39 = vmul.f32 %v1816_v31, %v5438_v63  ;;  %v1736_v21 = vpop.f32.mrb[52].mxu1  ;;  %2326 = vmatmul.mubr.bf16.gmra.mrb[72].mxu0 %v2057_v27 }
 0x3c8   :  { %v1879_v9 = vmul.f32 %v1847_v23, %v5434_v45  ;;  %v5451_v13 = vadd.f32 %v1736_v21, %v5297_v46  ;;  %v1738_v26 = vpop.f32.mrb[53].mxu1  ;;  %v4379_v22 = vpop.eup %4378  ;;  %v1909_v11 = vadd.f32 %v1877_v16, %v5427_v7 }
 0x3c9   :  { %v1880_v35 = vmul.f32 %v1848_v39, %v5438_v63  ;;  %v5456_v24 = vadd.f32 %v1738_v26, %v5300_v52  ;;  %v1740_v47 = vpop.f32.mrb[54].mxu1  ;;  %v1910_v55 = vadd.f32 %v1878_v37, %v5430_v41  ;;  %v2001_v4 = vadd.f32 1.0, %v4379_v22  ;;  %v4381_v15 = vpop.eup %4380 }
 0x3ca   :  { %v1817_v38 = vmul.f32 0.044715, %v5451_v13  ;;  %v5462_v17 = vadd.f32 %v1740_v47, %v5297_v46  ;;  %v1742_v53 = vpop.f32.mrb[55].mxu1  ;;  %v2002_v49 = vadd.f32 1.0, %v4381_v15  ;;  %v1911_v56 = vadd.f32 %v1879_v9, %v5434_v45 }
 0x3cb   :  { %v1818_v42 = vmul.f32 0.044715, %v5456_v24  ;;  %v5467_v48 = vadd.f32 %v1742_v53, %v5300_v52  ;;  %v1912_v60 = vadd.f32 %v1880_v35, %v5438_v63  ;;  %v1942_v19 = vmul.f32 0.7978846, %v1910_v55  ;;  %v4383_v12 = vpop.eup %4382 }
 0x3cc   :  { %v1819_v54 = vmul.f32 0.044715, %v5462_v17  ;;  %v4385_v61 = vpop.eup %4384  ;;  %v2004_v59 = vadd.f32 1.0, %v4383_v12  ;;  %v1849_v25 = vmul.f32 %v1817_v38, %v5451_v13  ;;  %v2033_v8 = vmul.f32 %v2001_v4, %v1777_v18 }
 0x3cd   :  { %v1850_v30 = vmul.f32 %v1818_v42, %v5456_v24  ;;  %v1820_v58 = vmul.f32 0.044715, %v5467_v48  ;;  %v1944_v40 = vmul.f32 0.7978846, %v1912_v60  ;;  %v2003_v36 = vadd.f32 1.0, %v4385_v61 }
 0x3ce   :  { %v1851_v1 = vmul.f32 %v1819_v54, %v5462_v17  ;;  %v2034_v2 = vmul.f32 %v2002_v49, %v1778_v6  ;;  %v2036_v3 = vmul.f32 %v2004_v59, %v1780_v10  ;;  %4386 = vtanh.f32 %v1942_v19 }
 0x3cf   :  { %v1852_v43 = vmul.f32 %v1820_v58, %v5467_v48  ;;  %v1746_v57 = vpop.f32.mrb[56].mxu1  ;;  %v1882_v14 = vmul.f32 %v1850_v30, %v5456_v24  ;;  %v2035_v29 = vmul.f32 %v2003_v36, %v1779_v51  ;;  %4388 = vtanh.f32 %v1944_v40 }
 0x3d0   :  { %v5480_v28 = vadd.f32 %v1746_v57, %v5297_v46  ;;  %v1748_v5 = vpop.f32.mrb[57].mxu1  ;;  %v2060_v27 = vpack.c.bf16 %v2036_v3, %v2034_v2  ;;  %v1941_v44 = vmul.f32 0.7978846, %v1909_v11  ;;  %v1943_v39 = vmul.f32 0.7978846, %v1911_v56 }
 0x3d1   :  { %v1884_v33 = vmul.f32 %v1852_v43, %v5467_v48  ;;  %v5484_v62 = vadd.f32 %v1748_v5, %v5300_v52  ;;  %v1750_v50 = vpop.f32.mrb[58].mxu1  ;;  %v2059_v37 = vpack.c.bf16 %v2035_v29, %v2033_v8  ;;  %v1881_v21 = vmul.f32 %v1849_v25, %v5451_v13 }
 0x3d2   :  { %v1821_v31 = vmul.f32 0.044715, %v5480_v28  ;;  %v5488_v20 = vadd.f32 %v1750_v50, %v5297_v46  ;;  %v1752_v23 = vpop.f32.mrb[59].mxu1  ;;  %2335 = vmatprep.mubr.bf16.mxu0 %v2060_v27  ;;  %4390 = vtanh.f32 %v1941_v44  ;;  %v1883_v9 = vmul.f32 %v1851_v1, %v5462_v17 }
 0x3d3   :  { %v1822_v18 = vmul.f32 0.044715, %v5484_v62  ;;  %v5493_v16 = vadd.f32 %v1752_v23, %v5300_v52  ;;  %2336 = vmatmul.mubr.bf16.gmra.mrb[76].mxu0 %v2059_v37  ;;  %4392 = vtanh.f32 %v1943_v39  ;;  %v1914_v47 = vadd.f32 %v1882_v14, %v5456_v24 }
 0x3d4   :  { %v1853_v26 = vmul.f32 %v1821_v31, %v5480_v28  ;;  %v1823_v6 = vmul.f32 0.044715, %v5488_v20  ;;  %v1916_v51 = vadd.f32 %v1884_v33, %v5467_v48  ;;  %v1782_v55 = vmul.f32 0.5, %v5430_v41 }
 0x3d5   :  { %v1854_v22 = vmul.f32 %v1822_v18, %v5484_v62  ;;  %v1824_v35 = vmul.f32 0.044715, %v5493_v16  ;;  %v1784_v38 = vmul.f32 0.5, %v5438_v63  ;;  %v1781_v53 = vmul.f32 0.5, %v5427_v7 }
 0x3d6   :  { %v1885_v10 = vmul.f32 %v1853_v26, %v5480_v28  ;;  %v1783_v15 = vmul.f32 0.5, %v5434_v45  ;;  %v1946_v42 = vmul.f32 0.7978846, %v1914_v47  ;;  %v1948_v60 = vmul.f32 0.7978846, %v1916_v51 }
 0x3d7   :  { %v1756_v4 = vpop.f32.mrb[60].mxu1  ;;  %v1856_v19 = vmul.f32 %v1824_v35, %v5493_v16  ;;  %v1913_v49 = vadd.f32 %v1881_v21, %v5451_v13  ;;  %v1915_v41 = vadd.f32 %v1883_v9, %v5462_v17  ;;  %v1886_v7 = vmul.f32 %v1854_v22, %v5484_v62 }
 0x3d8   :  { %v5509_v12 = vadd.f32 %v1756_v4, %v5297_v46  ;;  %v1758_v54 = vpop.f32.mrb[61].mxu1  ;;  %v4387_v63 = vpop.eup %4386  ;;  %v1855_v11 = vmul.f32 %v1823_v6, %v5488_v20  ;;  %4394 = vtanh.f32 %v1946_v42  ;;  %v1786_v21 = vmul.f32 0.5, %v5456_v24 }
 0x3d9   :  { %v5516_v56 = vadd.f32 %v1758_v54, %v5300_v52  ;;  %v1760_v45 = vpop.f32.mrb[62].mxu1  ;;  %v4389_v61 = vpop.eup %4388  ;;  %v2006_v40 = vadd.f32 1.0, %v4387_v63  ;;  %4396 = vtanh.f32 %v1948_v60  ;;  %v1945_v8 = vmul.f32 0.7978846, %v1913_v49 }
 0x3da   :  { %v1825_v30 = vmul.f32 0.044715, %v5509_v12  ;;  %v5520_v58 = vadd.f32 %v1760_v45, %v5297_v46  ;;  %v1762_v59 = vpop.f32.mrb[63].mxu1  ;;  %v2008_v36 = vadd.f32 1.0, %v4389_v61  ;;  %v1888_v43 = vmul.f32 %v1856_v19, %v5493_v16 }
 0x3db   :  { %v1826_v25 = vmul.f32 0.044715, %v5516_v56  ;;  %v5524_v1 = vadd.f32 %v1762_v59, %v5300_v52  ;;  %v2038_v2 = vmul.f32 %v2006_v40, %v1782_v55  ;;  %v1947_v3 = vmul.f32 0.7978846, %v1915_v41 }
 0x3dc   :  { %v1827_v57 = vmul.f32 0.044715, %v5520_v58  ;;  %v4391_v14 = vpop.eup %4390  ;;  %v2040_v29 = vmul.f32 %v2008_v36, %v1784_v38  ;;  %4398 = vtanh.f32 %v1945_v8  ;;  %v1887_v50 = vmul.f32 %v1855_v11, %v5488_v20 }
 0x3dd   :  { %v1858_v46 = vmul.f32 %v1826_v25, %v5516_v56  ;;  %v1828_v5 = vmul.f32 0.044715, %v5524_v1  ;;  %v4393_v33 = vpop.eup %4392  ;;  %v1857_v52 = vmul.f32 %v1825_v30, %v5509_v12  ;;  %v2005_v27 = vadd.f32 1.0, %v4391_v14 }
 0x3de   :  { %4400 = vtanh.f32 %v1947_v3  ;;  %v1859_v44 = vmul.f32 %v1827_v57, %v5520_v58  ;;  %v2062_v23 = vpack.c.bf16 %v2040_v29, %v2038_v2  ;;  %v2007_v37 = vadd.f32 1.0, %v4393_v33 }
 0x3df   :  { %v1860_v31 = vmul.f32 %v1828_v5, %v5524_v1  ;;  %v1890_v39 = vmul.f32 %v1858_v46, %v5516_v56  ;;  %v1918_v18 = vadd.f32 %v1886_v7, %v5484_v62  ;;  %v2037_v26 = vmul.f32 %v2005_v27, %v1781_v53 }
 0x3e0   :  { %2345 = vmatprep.mubr.bf16.mxu0 %v2062_v23  ;;  %v2039_v6 = vmul.f32 %v2007_v37, %v1783_v15  ;;  %v1920_v22 = vadd.f32 %v1888_v43, %v5493_v16  ;;  %v1788_v35 = vmul.f32 0.5, %v5467_v48  ;;  %v1917_v51 = vadd.f32 %v1885_v10, %v5480_v28 }
 0x3e1   :  { %v1892_v9 = vmul.f32 %v1860_v31, %v5524_v1  ;;  %v1950_v47 = vmul.f32 0.7978846, %v1918_v18  ;;  %v1919_v55 = vadd.f32 %v1887_v50, %v5488_v20  ;;  %v1889_v4 = vmul.f32 %v1857_v52, %v5509_v12 }
 0x3e2   :  { %v4395_v38 = vpop.eup %4394  ;;  %v1891_v24 = vmul.f32 %v1859_v44, %v5520_v58  ;;  %v2061_v42 = vpack.c.bf16 %v2039_v6, %v2037_v26  ;;  %v1952_v60 = vmul.f32 0.7978846, %v1920_v22  ;;  %v1949_v53 = vmul.f32 0.7978846, %v1917_v51 }
 0x3e3   :  { %v4397_v19 = vpop.eup %4396  ;;  %v2010_v54 = vadd.f32 1.0, %v4395_v38  ;;  %4402 = vtanh.f32 %v1950_v47  ;;  %v1951_v15 = vmul.f32 0.7978846, %v1919_v55  ;;  %v1922_v48 = vadd.f32 %v1890_v39, %v5516_v56 }
 0x3e4   :  { %2346 = vmatmul.mubr.bf16.gmra.mrb[80].mxu0 %v2061_v42  ;;  %v2012_v49 = vadd.f32 1.0, %v4397_v19  ;;  %4404 = vtanh.f32 %v1952_v60  ;;  %v1924_v10 = vadd.f32 %v1892_v9, %v5524_v1  ;;  %v1785_v30 = vmul.f32 0.5, %v5451_v13 }
 0x3e5   :  { %v2042_v41 = vmul.f32 %v2010_v54, %v1786_v21  ;;  %4406 = vtanh.f32 %v1949_v53  ;;  %v1954_v11 = vmul.f32 0.7978846, %v1922_v48  ;;  %v1921_v40 = vadd.f32 %v1889_v4, %v5509_v12  ;;  %v4237_v48 = vld [vmem:[#allocation8 + $0x28] sm:$0xff]  }
 0x3e6   :  { %v4399_v63 = vpop.eup %4398  ;;  %v2044_v7 = vmul.f32 %v2012_v49, %v1788_v35  ;;  %4408 = vtanh.f32 %v1951_v15  ;;  %v1956_v45 = vmul.f32 0.7978846, %v1924_v10  ;;  %v1923_v25 = vadd.f32 %v1891_v24, %v5520_v58  ;;  %v4235_v15 = vld [vmem:[#allocation8 + $0x20] sm:$0xff]   ;;  %v4236_v49 = vld [vmem:[#allocation8 + $0x68] sm:$0xff]   ;;  %v4239_v10 = vld [vmem:[#allocation8 + $0x30] sm:$0xff]  }
 0x3e7   :  { %v2009_v59 = vadd.f32 1.0, %v4399_v63  ;;  %v1787_v8 = vmul.f32 0.5, %v5462_v17  ;;  %4410 = vtanh.f32 %v1954_v11  ;;  %v1953_v57 = vmul.f32 0.7978846, %v1921_v40  ;;  %v2101_v63 = vld [vmem:[%s5878_s7] sm:$0x3] }
 0x3e8   :  { %v4401_v61 = vpop.eup %4400  ;;  %v2064_v36 = vpack.c.bf16 %v2044_v7, %v2042_v41  ;;  %4412 = vtanh.f32 %v1956_v45  ;;  %v1955_v2 = vmul.f32 0.7978846, %v1923_v25  ;;  %v1790_v50 = vmul.f32 0.5, %v5484_v62  ;;  %v4241_v41 = vld [vmem:[#allocation8 + $0x38] sm:$0xff]   ;;  %v4242_v7 = vld [vmem:[#allocation10] ss:$16 sps:$4 sm:$0xff]  }
 0x3e9   :  { %v2011_v43 = vadd.f32 1.0, %v4401_v61  ;;  %v2041_v3 = vmul.f32 %v2009_v59, %v1785_v30  ;;  %4414 = vtanh.f32 %v1953_v57  ;;  %v1792_v17 = vmul.f32 0.5, %v5493_v16  ;;  %v4244_v11 = vld [vmem:[#allocation10 + $0x4] ss:$16 sps:$4 sm:$0xff]   ;;  %v4247_v45 = vld [vmem:[#allocation10 + $0xc] ss:$16 sps:$4 sm:$0xff]  }
 0x3ea   :  { %2355 = vmatprep.mubr.bf16.mxu0 %v2064_v36  ;;  %4416 = vtanh.f32 %v1955_v2  ;;  %v1789_v44 = vmul.f32 0.5, %v5480_v28  ;;  %v1791_v39 = vmul.f32 0.5, %v5488_v20  ;;  %v1794_v62 = vmul.f32 0.5, %v5516_v56  ;;  %v4250_v61 = vld [vmem:[#allocation10 + $0x24] ss:$16 sps:$4 sm:$0xff]   ;;  %3266 = vmatprep.subr.bf16.mxu0 %v4244_v11 }
 0x3eb   :  { %v2043_v14 = vmul.f32 %v2011_v43, %v1787_v8  ;;  %v1796_v16 = vmul.f32 0.5, %v5524_v1  ;;  %v1793_v20 = vmul.f32 0.5, %v5509_v12  ;;  %v1795_v42 = vmul.f32 0.5, %v5520_v58  ;;  %v4234_v1 = vld [vmem:[#allocation8 + $0x60] sm:$0xff]   ;;  %v4238_v12 = vld [vmem:[#allocation8 + $0x70] sm:$0xff]   ;;  %v4240_v58 = vld [vmem:[#allocation8 + $0x78] sm:$0xff]   ;;  %3267 = vmatpush1.bf16.msra.mxu0 %v4242_v7 }
 0x3ec   :  { %4000 = vmatprep.subr.bf16.mxu1 %v4234_v1  ;;  %v5563_v30 = vrot.slane %v2101_v63, %v5014_v32  ;;  %v4248_v59 = vld [vmem:[#allocation10 + $0x20] ss:$16 sps:$4 sm:$0xff]   ;;  %v5566_v40 = vrot.slane %v2101_v63, %v5019_v34  ;;  %3268 = vmatprep.subr.bf16.mxu0 %v4250_v61  ;;  %v4256_v25 = vld [vmem:[#allocation10 + $0x44] ss:$16 sps:$4 sm:$0xff]  }
 0x3ed   :  { %v2063_v46 = vpack.c.bf16 %v2043_v14, %v2041_v3  ;;  %v4403_v13 = vpop.eup %4402  ;;  %4001 = vmatpush3.bf16.msra.mxu1 %v4235_v15  ;;  %v4254_v57 = vld [vmem:[#allocation10 + $0x40] ss:$16 sps:$4 sm:$0xff]   ;;  %v4262_v3 = vld [vmem:[#allocation10 + $0x64] ss:$16 sps:$4 sm:$0xff]  }
 0x3ee   :  { %v4405_v5 = vpop.eup %4404  ;;  %v2014_v29 = vadd.f32 1.0, %v4403_v13  ;;  %4002 = vmatprep.subr.bf16.mxu1 %v4236_v49 }
 0x3ef   :  { %2356 = vmatmul.mubr.bf16.gmra.mrb[84].mxu0 %v2063_v46  ;;  %v4407_v33 = vpop.eup %4406  ;;  %v2016_v52 = vadd.f32 1.0, %v4405_v5 }
 0x3f0   :  { %v4409_v27 = vpop.eup %4408  ;;  %v2013_v31 = vadd.f32 1.0, %v4407_v33  ;;  %v2046_v23 = vmul.f32 %v2014_v29, %v1790_v50  ;;  %3269 = vmatpush1.bf16.msra.mxu0 %v4248_v59  ;;  %v4260_v50 = vld [vmem:[#allocation10 + $0x60] ss:$16 sps:$4 sm:$0xff]  }
 0x3f1   :  { %v2048_v37 = vmul.f32 %v2016_v52, %v1792_v17  ;;  %v2015_v21 = vadd.f32 1.0, %v4409_v27  ;;  %v4411_v18 = vpop.eup %4410  ;;  %4003 = vmatpush3.bf16.msra.mxu1 %v4237_v48  ;;  %3270 = vmatprep.subr.bf16.mxu0 %v4256_v25 }
 0x3f2   :  { %v4413_v9 = vpop.eup %4412  ;;  %v2045_v6 = vmul.f32 %v2013_v31, %v1789_v44  ;;  %v2018_v35 = vadd.f32 1.0, %v4411_v18  ;;  %4004 = vmatprep.subr.bf16.mxu1 %v4238_v12 }
 0x3f3   :  { %v2066_v26 = vpack.c.bf16 %v2048_v37, %v2046_v23  ;;  %v2047_v22 = vmul.f32 %v2015_v21, %v1791_v39  ;;  %v2020_v47 = vadd.f32 1.0, %v4413_v9  ;;  %v4415_v51 = vpop.eup %4414 }
 0x3f4   :  { %v4417_v55 = vpop.eup %4416  ;;  %v2050_v38 = vmul.f32 %v2018_v35, %v1794_v62  ;;  %v2017_v24 = vadd.f32 1.0, %v4415_v51  ;;  %3271 = vmatpush1.bf16.msra.mxu0 %v4254_v57 }
 0x3f5   :  { %2365 = vmatprep.mubr.bf16.mxu0 %v2066_v26  ;;  %v2065_v28 = vpack.c.bf16 %v2047_v22, %v2045_v6  ;;  %v2052_v4 = vmul.f32 %v2020_v47, %v1796_v16  ;;  %v2019_v60 = vadd.f32 1.0, %v4417_v55  ;;  %4005 = vmatpush3.bf16.msra.mxu1 %v4239_v10 }
 0x3f6   :  { %v2049_v54 = vmul.f32 %v2017_v24, %v1793_v20  ;;  %4006 = vmatprep.subr.bf16.mxu1 %v4240_v58  ;;  %3272 = vmatprep.subr.bf16.mxu0 %v4262_v3 }
 0x3f7   :  { %2366 = vmatmul.mubr.bf16.gmra.mrb[88].mxu0 %v2065_v28  ;;  %v2068_v19 = vpack.c.bf16 %v2052_v4, %v2050_v38  ;;  %v2051_v53 = vmul.f32 %v2019_v60, %v1795_v42 }
 0x3f8   :  { %3273 = vmatpush1.bf16.msra.mxu0 %v4260_v50 }
 0x3f9   :  { %2375 = vmatprep.mubr.bf16.mxu0 %v2068_v19  ;;  %v2067_v56 = vpack.c.bf16 %v2051_v53, %v2049_v54  ;;  %4007 = vmatpush3.bf16.msra.mxu1 %v4241_v41 }
 0x3fa   :  { %3379 = vmatprep.subr.bf16.mxu1 %v4247_v45 }
 0x3ff   :  { %2376 = vmatmul.mubr.bf16.gmra.mrb[92].mxu0 %v2067_v56 }
 0x400   :  { %3298 = vmatprep.mubr.bf16.mxu0 %v4665_v0 }
 0x483   :  { %v2307_v36 = vpop.f32.mrb[64].mxu0 }
 0x484   :  { %v5569_v8 = vadd.f32 %v2307_v36, %v5563_v30  ;;  %v2309_v43 = vpop.f32.mrb[65].mxu0 }
 0x485   :  { %v5572_v2 = vadd.f32 %v2309_v43, %v5566_v40  ;;  %v2311_v32 = vpop.f32.mrb[66].mxu0 }
 0x486   :  { %v2418_v14 = vmul.f32 0.044715, %v5569_v8  ;;  %v5576_v34 = vadd.f32 %v2311_v32, %v5563_v30  ;;  %v2313_v46 = vpop.f32.mrb[67].mxu0 }
 0x487   :  { %v2419_v13 = vmul.f32 0.044715, %v5572_v2  ;;  %v5580_v5 = vadd.f32 %v2313_v46, %v5566_v40 }
 0x488   :  { %v2450_v29 = vmul.f32 %v2418_v14, %v5569_v8  ;;  %v2420_v33 = vmul.f32 0.044715, %v5576_v34  ;;  %v2386_v14 = vmul.f32 0.5, %v5569_v8  ;;  %v2388_v46 = vmul.f32 0.5, %v5576_v34 }
 0x489   :  { %v2451_v17 = vmul.f32 %v2419_v13, %v5572_v2  ;;  %v2421_v52 = vmul.f32 0.044715, %v5580_v5 }
 0x48a   :  { %v2482_v27 = vmul.f32 %v2450_v29, %v5569_v8  ;;  %v2452_v44 = vmul.f32 %v2420_v33, %v5576_v34 }
 0x48b   :  { %v2483_v31 = vmul.f32 %v2451_v17, %v5572_v2  ;;  %v2453_v23 = vmul.f32 %v2421_v52, %v5580_v5  ;;  %v2317_v37 = vpop.f32.mrb[68].mxu0  ;;  %v2387_v52 = vmul.f32 0.5, %v5572_v2 }
 0x48c   :  { %v2514_v39 = vadd.f32 %v2482_v27, %v5569_v8  ;;  %v2484_v21 = vmul.f32 %v2452_v44, %v5576_v34  ;;  %v5593_v18 = vadd.f32 %v2317_v37, %v5563_v30  ;;  %v2319_v9 = vpop.f32.mrb[69].mxu0  ;;  %v2389_v27 = vmul.f32 0.5, %v5580_v5 }
 0x48d   :  { %v2485_v26 = vmul.f32 %v2453_v23, %v5580_v5  ;;  %v5597_v6 = vadd.f32 %v2319_v9, %v5566_v40  ;;  %v2321_v22 = vpop.f32.mrb[70].mxu0  ;;  %v2515_v35 = vadd.f32 %v2483_v31, %v5572_v2 }
 0x48e   :  { %v2546_v62 = vmul.f32 0.7978846, %v2514_v39  ;;  %v2516_v16 = vadd.f32 %v2484_v21, %v5576_v34  ;;  %v2422_v47 = vmul.f32 0.044715, %v5593_v18  ;;  %v5603_v51 = vadd.f32 %v2321_v22, %v5563_v30  ;;  %v2323_v28 = vpop.f32.mrb[71].mxu0 }
 0x48f   :  { %v2423_v55 = vmul.f32 0.044715, %v5597_v6  ;;  %v5607_v38 = vadd.f32 %v2323_v28, %v5566_v40  ;;  %v2517_v4 = vadd.f32 %v2485_v26, %v5580_v5  ;;  %v2547_v24 = vmul.f32 0.7978846, %v2515_v35  ;;  %v4245_v28 = vld [vmem:[#allocation10 + $0x8] ss:$16 sps:$4 sm:$0xff]  }
 0x490   :  { %4418 = vtanh.f32 %v2546_v62  ;;  %v2548_v20 = vmul.f32 0.7978846, %v2516_v16  ;;  %v2454_v42 = vmul.f32 %v2422_v47, %v5593_v18  ;;  %v2424_v60 = vmul.f32 0.044715, %v5603_v51 }
 0x491   :  { %v2455_v19 = vmul.f32 %v2423_v55, %v5597_v6  ;;  %v2425_v54 = vmul.f32 0.044715, %v5607_v38  ;;  %v2549_v53 = vmul.f32 0.7978846, %v2517_v4  ;;  %4420 = vtanh.f32 %v2547_v24 }
 0x492   :  { %4422 = vtanh.f32 %v2548_v20  ;;  %v2486_v56 = vmul.f32 %v2454_v42, %v5593_v18  ;;  %v2456_v1 = vmul.f32 %v2424_v60, %v5603_v51  ;;  %v2391_v20 = vmul.f32 0.5, %v5597_v6  ;;  %v4253_v60 = vld [vmem:[#allocation10 + $0x2c] ss:$16 sps:$4 sm:$0xff]  }
 0x493   :  { %v2487_v15 = vmul.f32 %v2455_v19, %v5597_v6  ;;  %v2457_v49 = vmul.f32 %v2425_v54, %v5607_v38  ;;  %4424 = vtanh.f32 %v2549_v53 }
 0x494   :  { %v2488_v48 = vmul.f32 %v2456_v1, %v5603_v51  ;;  %v2518_v12 = vadd.f32 %v2486_v56, %v5593_v18  ;;  %v2390_v1 = vmul.f32 0.5, %v5593_v18 }
 0x495   :  { %v2489_v10 = vmul.f32 %v2457_v49, %v5607_v38  ;;  %v2519_v58 = vadd.f32 %v2487_v15, %v5597_v6 }
 0x496   :  { %v2520_v41 = vadd.f32 %v2488_v48, %v5603_v51  ;;  %v2550_v63 = vmul.f32 0.7978846, %v2518_v12  ;;  %v2392_v48 = vmul.f32 0.5, %v5603_v51 }
 0x497   :  { %v2521_v7 = vadd.f32 %v2489_v10, %v5607_v38  ;;  %v2551_v11 = vmul.f32 0.7978846, %v2519_v58  ;;  %v2393_v58 = vmul.f32 0.5, %v5607_v38 }
 0x498   :  { %v2552_v45 = vmul.f32 0.7978846, %v2520_v41  ;;  %4426 = vtanh.f32 %v2550_v63 }
 0x499   :  { %v2553_v61 = vmul.f32 0.7978846, %v2521_v7  ;;  %4428 = vtanh.f32 %v2551_v11  ;;  %v4251_v7 = vld [vmem:[#allocation10 + $0x28] ss:$16 sps:$4 sm:$0xff]  }
 0x49a   :  { %v4419_v59 = vpop.eup %4418  ;;  %4430 = vtanh.f32 %v2552_v45  ;;  %v2327_v57 = vpop.f32.mrb[72].mxu0 }
 0x49b   :  { %v4421_v25 = vpop.eup %4420  ;;  %v2610_v36 = vadd.f32 1.0, %v4419_v59  ;;  %4432 = vtanh.f32 %v2553_v61  ;;  %v5627_v13 = vadd.f32 %v2327_v57, %v5563_v30  ;;  %v2329_v29 = vpop.f32.mrb[73].mxu0  ;;  %v4259_v59 = vld [vmem:[#allocation10 + $0x4c] ss:$16 sps:$4 sm:$0xff]  }
 0x49c   :  { %v4423_v43 = vpop.eup %4422  ;;  %v2611_v32 = vadd.f32 1.0, %v4421_v25  ;;  %v5630_v50 = vadd.f32 %v2329_v29, %v5566_v40  ;;  %v2331_v17 = vpop.f32.mrb[74].mxu0 }
 0x49d   :  { %v4425_v3 = vpop.eup %4424  ;;  %v2612_v33 = vadd.f32 1.0, %v4423_v43  ;;  %v2426_v31 = vmul.f32 0.044715, %v5627_v13  ;;  %v5636_v8 = vadd.f32 %v2331_v17, %v5563_v30  ;;  %v2333_v34 = vpop.f32.mrb[75].mxu0  ;;  %v2642_v23 = vmul.f32 %v2610_v36, %v2386_v14 }
 0x49e   :  { %v2613_v44 = vadd.f32 1.0, %v4425_v3  ;;  %v2427_v39 = vmul.f32 0.044715, %v5630_v50  ;;  %v5640_v21 = vadd.f32 %v2333_v34, %v5566_v40  ;;  %v2643_v9 = vmul.f32 %v2611_v32, %v2387_v52  ;;  %v4257_v52 = vld [vmem:[#allocation10 + $0x48] ss:$16 sps:$4 sm:$0xff]  }
 0x49f   :  { %v2644_v37 = vmul.f32 %v2612_v33, %v2388_v46  ;;  %v2458_v2 = vmul.f32 %v2426_v31, %v5627_v13  ;;  %v2428_v5 = vmul.f32 0.044715, %v5636_v8  ;;  %v4265_v34 = vld [vmem:[#allocation10 + $0x6c] ss:$16 sps:$4 sm:$0xff]  }
 0x4a0   :  { %v2645_v26 = vmul.f32 %v2613_v44, %v2389_v27  ;;  %v2459_v62 = vmul.f32 %v2427_v39, %v5630_v50  ;;  %v2429_v16 = vmul.f32 0.044715, %v5640_v21 }
 0x4a1   :  { %v2674_v22 = vpack.c.bf16 %v2644_v37, %v2642_v23  ;;  %v2490_v4 = vmul.f32 %v2458_v2, %v5627_v13  ;;  %v2460_v24 = vmul.f32 %v2428_v5, %v5636_v8  ;;  %v4263_v5 = vld [vmem:[#allocation10 + $0x68] ss:$16 sps:$4 sm:$0xff]  }
 0x4a2   :  { %v4427_v35 = vpop.eup %4426  ;;  %v2675_v47 = vpack.c.bf16 %v2645_v26, %v2643_v9  ;;  %v2491_v54 = vmul.f32 %v2459_v62, %v5630_v50  ;;  %v2461_v53 = vmul.f32 %v2429_v16, %v5640_v21 }
 0x4a3   :  { %v4429_v55 = vpop.eup %4428  ;;  %v2614_v42 = vadd.f32 1.0, %v4427_v35  ;;  %v2492_v49 = vmul.f32 %v2460_v24, %v5636_v8  ;;  %v2522_v6 = vadd.f32 %v2490_v4, %v5627_v13 }
 0x4a4   :  { %v4431_v19 = vpop.eup %4430  ;;  %2857 = vmatprep.mubr.bf16.mxu1 %v2675_v47  ;;  %v2615_v56 = vadd.f32 1.0, %v4429_v55  ;;  %v2493_v10 = vmul.f32 %v2461_v53, %v5640_v21  ;;  %v2523_v63 = vadd.f32 %v2491_v54, %v5630_v50 }
 0x4a5   :  { %v4433_v15 = vpop.eup %4432  ;;  %2858 = vmatmul.mubr.bf16.vlgmr.msra.gmra.mrb[64].mxu1 %v2674_v22  ;;  %v2616_v12 = vadd.f32 1.0, %v4431_v19  ;;  %v2646_v11 = vmul.f32 %v2614_v42, %v2390_v1  ;;  %v2524_v45 = vadd.f32 %v2492_v49, %v5636_v8  ;;  %v2554_v61 = vmul.f32 0.7978846, %v2522_v6 }
 0x4a6   :  { %v2617_v41 = vadd.f32 1.0, %v4433_v15  ;;  %3380 = vmatpush1.bf16.msra.mxu1 %v4245_v28  ;;  %v2337_v51 = vpop.f32.mrb[76].mxu0  ;;  %v2647_v25 = vmul.f32 %v2615_v56, %v2391_v20  ;;  %v2525_v43 = vadd.f32 %v2493_v10, %v5640_v21  ;;  %v2555_v57 = vmul.f32 0.7978846, %v2523_v63 }
 0x4a7   :  { %v2648_v18 = vmul.f32 %v2616_v12, %v2392_v48  ;;  %3381 = vmatprep.subr.bf16.mxu1 %v4253_v60  ;;  %v5661_v38 = vadd.f32 %v2337_v51, %v5563_v30  ;;  %v2339_v32 = vpop.f32.mrb[77].mxu0  ;;  %v2556_v14 = vmul.f32 0.7978846, %v2524_v45  ;;  %4434 = vtanh.f32 %v2554_v61 }
 0x4a8   :  { %v2649_v36 = vmul.f32 %v2617_v41, %v2393_v58  ;;  %v5664_v46 = vadd.f32 %v2339_v32, %v5566_v40  ;;  %v2341_v29 = vpop.f32.mrb[78].mxu0  ;;  %v2557_v17 = vmul.f32 0.7978846, %v2525_v43  ;;  %4436 = vtanh.f32 %v2555_v57 }
 0x4a9   :  { %v2676_v3 = vpack.c.bf16 %v2648_v18, %v2646_v11  ;;  %v2430_v27 = vmul.f32 0.044715, %v5661_v38  ;;  %v5668_v44 = vadd.f32 %v2341_v29, %v5563_v30  ;;  %v2343_v31 = vpop.f32.mrb[79].mxu0  ;;  %4438 = vtanh.f32 %v2556_v14 }
 0x4aa   :  { %v2677_v33 = vpack.c.bf16 %v2649_v36, %v2647_v25  ;;  %3382 = vmatpush1.bf16.msra.mxu1 %v4251_v7  ;;  %v2431_v23 = vmul.f32 0.044715, %v5664_v46  ;;  %v5672_v37 = vadd.f32 %v2343_v31, %v5566_v40  ;;  %4440 = vtanh.f32 %v2557_v17 }
 0x4ab   :  { %3383 = vmatprep.subr.bf16.mxu1 %v4259_v59  ;;  %v2462_v39 = vmul.f32 %v2430_v27, %v5661_v38  ;;  %v2432_v9 = vmul.f32 0.044715, %v5668_v44  ;;  %v2394_v15 = vmul.f32 0.5, %v5627_v13  ;;  %v2396_v12 = vmul.f32 0.5, %v5636_v8 }
 0x4ac   :  { %2865 = vmatprep.mubr.bf16.mxu1 %v2677_v33  ;;  %v2463_v26 = vmul.f32 %v2431_v23, %v5664_v46  ;;  %v2433_v2 = vmul.f32 0.044715, %v5672_v37  ;;  %v2395_v58 = vmul.f32 0.5, %v5630_v50  ;;  %v2397_v41 = vmul.f32 0.5, %v5640_v21 }
 0x4ad   :  { %2866 = vmatmul.mubr.bf16.gmra.mrb[68].mxu1 %v2676_v3  ;;  %v2494_v22 = vmul.f32 %v2462_v39, %v5661_v38  ;;  %v2464_v35 = vmul.f32 %v2432_v9, %v5668_v44  ;;  %v2398_v27 = vmul.f32 0.5, %v5661_v38  ;;  %v2400_v39 = vmul.f32 0.5, %v5668_v44 }
 0x4ae   :  { %3384 = vmatpush1.bf16.msra.mxu1 %v4257_v52  ;;  %v2495_v62 = vmul.f32 %v2463_v26, %v5664_v46  ;;  %v2465_v16 = vmul.f32 %v2433_v2, %v5672_v37  ;;  %v2399_v52 = vmul.f32 0.5, %v5664_v46 }
 0x4af   :  { %3385 = vmatprep.subr.bf16.mxu1 %v4265_v34  ;;  %v2496_v47 = vmul.f32 %v2464_v35, %v5668_v44  ;;  %v2526_v28 = vadd.f32 %v2494_v22, %v5661_v38  ;;  %v2401_v22 = vmul.f32 0.5, %v5672_v37 }
 0x4b0   :  { %v2497_v55 = vmul.f32 %v2465_v16, %v5672_v37  ;;  %v2527_v4 = vadd.f32 %v2495_v62, %v5664_v46 }
 0x4b1   :  { %v4435_v24 = vpop.eup %4434  ;;  %v2528_v20 = vadd.f32 %v2496_v47, %v5668_v44  ;;  %v2558_v42 = vmul.f32 0.7978846, %v2526_v28 }
 0x4b2   :  { %3386 = vmatpush1.bf16.msra.mxu1 %v4263_v5  ;;  %v4437_v60 = vpop.eup %4436  ;;  %v2618_v19 = vadd.f32 1.0, %v4435_v24  ;;  %v2529_v54 = vadd.f32 %v2497_v55, %v5672_v37  ;;  %v2559_v53 = vmul.f32 0.7978846, %v2527_v4 }
 0x4b3   :  { %v4439_v56 = vpop.eup %4438  ;;  %v2619_v1 = vadd.f32 1.0, %v4437_v60  ;;  %v2560_v49 = vmul.f32 0.7978846, %v2528_v20  ;;  %4442 = vtanh.f32 %v2558_v42 }
 0x4b4   :  { %v4441_v48 = vpop.eup %4440  ;;  %v2620_v6 = vadd.f32 1.0, %v4439_v56  ;;  %v2561_v10 = vmul.f32 0.7978846, %v2529_v54  ;;  %4444 = vtanh.f32 %v2559_v53  ;;  %v2650_v7 = vmul.f32 %v2618_v19, %v2394_v15 }
 0x4b5   :  { %v2621_v63 = vadd.f32 1.0, %v4441_v48  ;;  %4446 = vtanh.f32 %v2560_v49  ;;  %v2651_v45 = vmul.f32 %v2619_v1, %v2395_v58 }
 0x4b6   :  { %v2652_v11 = vmul.f32 %v2620_v6, %v2396_v12  ;;  %4448 = vtanh.f32 %v2561_v10 }
 0x4b7   :  { %v2347_v18 = vpop.f32.mrb[80].mxu0  ;;  %v2653_v13 = vmul.f32 %v2621_v63, %v2397_v41 }
 0x4b8   :  { %v5693_v61 = vadd.f32 %v2347_v18, %v5563_v30  ;;  %v2349_v59 = vpop.f32.mrb[81].mxu0  ;;  %v2678_v8 = vpack.c.bf16 %v2652_v11, %v2650_v7 }
 0x4b9   :  { %v5696_v51 = vadd.f32 %v2349_v59, %v5566_v40  ;;  %v2351_v25 = vpop.f32.mrb[82].mxu0  ;;  %v2679_v50 = vpack.c.bf16 %v2653_v13, %v2651_v45 }
 0x4ba   :  { %v2434_v21 = vmul.f32 0.044715, %v5693_v61  ;;  %v5700_v36 = vadd.f32 %v2351_v25, %v5563_v30  ;;  %v2353_v43 = vpop.f32.mrb[83].mxu0 }
 0x4bb   :  { %v2435_v57 = vmul.f32 0.044715, %v5696_v51  ;;  %v5704_v32 = vadd.f32 %v2353_v43, %v5566_v40  ;;  %2873 = vmatprep.mubr.bf16.mxu1 %v2679_v50 }
 0x4bc   :  { %v2466_v3 = vmul.f32 %v2434_v21, %v5693_v61  ;;  %v2436_v14 = vmul.f32 0.044715, %v5700_v36  ;;  %2874 = vmatmul.mubr.bf16.gmra.mrb[72].mxu1 %v2678_v8 }
 0x4bd   :  { %v4443_v29 = vpop.eup %4442  ;;  %v2467_v33 = vmul.f32 %v2435_v57, %v5696_v51  ;;  %v2437_v17 = vmul.f32 0.044715, %v5704_v32 }
 0x4be   :  { %v4445_v31 = vpop.eup %4444  ;;  %v2498_v34 = vmul.f32 %v2466_v3, %v5693_v61  ;;  %v2468_v23 = vmul.f32 %v2436_v14, %v5700_v36  ;;  %v2622_v9 = vadd.f32 1.0, %v4443_v29 }
 0x4bf   :  { %v4447_v26 = vpop.eup %4446  ;;  %v2499_v2 = vmul.f32 %v2467_v33, %v5696_v51  ;;  %v2469_v5 = vmul.f32 %v2437_v17, %v5704_v32  ;;  %v2623_v35 = vadd.f32 1.0, %v4445_v31  ;;  %v2402_v33 = vmul.f32 0.5, %v5693_v61 }
 0x4c0   :  { %v4449_v62 = vpop.eup %4448  ;;  %v2500_v46 = vmul.f32 %v2468_v23, %v5700_v36  ;;  %v2624_v38 = vadd.f32 1.0, %v4447_v26  ;;  %v2654_v16 = vmul.f32 %v2622_v9, %v2398_v27  ;;  %v2530_v47 = vadd.f32 %v2498_v34, %v5693_v61 }
 0x4c1   :  { %v2501_v28 = vmul.f32 %v2469_v5, %v5704_v32  ;;  %v2625_v44 = vadd.f32 1.0, %v4449_v62  ;;  %v2655_v4 = vmul.f32 %v2623_v35, %v2399_v52  ;;  %v2531_v24 = vadd.f32 %v2499_v2, %v5696_v51 }
 0x4c2   :  { %v2357_v55 = vpop.f32.mrb[84].mxu0  ;;  %v2656_v37 = vmul.f32 %v2624_v38, %v2400_v39  ;;  %v2532_v60 = vadd.f32 %v2500_v46, %v5700_v36  ;;  %v2562_v19 = vmul.f32 0.7978846, %v2530_v47  ;;  %v2403_v31 = vmul.f32 0.5, %v5696_v51 }
 0x4c3   :  { %v5723_v20 = vadd.f32 %v2357_v55, %v5563_v30  ;;  %v2359_v42 = vpop.f32.mrb[85].mxu0  ;;  %v2657_v56 = vmul.f32 %v2625_v44, %v2401_v22  ;;  %v2533_v1 = vadd.f32 %v2501_v28, %v5704_v32  ;;  %v2563_v15 = vmul.f32 0.7978846, %v2531_v24 }
 0x4c4   :  { %v2360_v54 = vadd.f32 %v2359_v42, %v5566_v40  ;;  %v2361_v53 = vpop.f32.mrb[86].mxu0  ;;  %v2680_v6 = vpack.c.bf16 %v2656_v37, %v2654_v16  ;;  %v2564_v10 = vmul.f32 0.7978846, %v2532_v60  ;;  %v2404_v62 = vmul.f32 0.5, %v5700_v36 }
 0x4c5   :  { %v2438_v49 = vmul.f32 0.044715, %v5723_v20  ;;  %v5730_v48 = vadd.f32 %v2361_v53, %v5563_v30  ;;  %v2363_v12 = vpop.f32.mrb[87].mxu0  ;;  %v2681_v63 = vpack.c.bf16 %v2657_v56, %v2655_v4  ;;  %v2565_v7 = vmul.f32 0.7978846, %v2533_v1 }
 0x4c6   :  { %v2439_v58 = vmul.f32 0.044715, %v2360_v54  ;;  %v2364_v41 = vadd.f32 %v2363_v12, %v5566_v40  ;;  %4450 = vtanh.f32 %v2563_v15  ;;  %v2405_v28 = vmul.f32 0.5, %v5704_v32 }
 0x4c7   :  { %v2470_v11 = vmul.f32 %v2438_v49, %v5723_v20  ;;  %v2440_v18 = vmul.f32 0.044715, %v5730_v48  ;;  %2881 = vmatprep.mubr.bf16.mxu1 %v2681_v63  ;;  %4452 = vtanh.f32 %v2565_v7  ;;  %v5761_v4 = vmul.f32 0.5, %v2360_v54 }
 0x4c8   :  { %v2471_v45 = vmul.f32 %v2439_v58, %v2360_v54  ;;  %v2441_v13 = vmul.f32 0.044715, %v2364_v41  ;;  %2882 = vmatmul.mubr.bf16.gmra.mrb[76].mxu1 %v2680_v6  ;;  %4454 = vtanh.f32 %v2562_v19  ;;  %v5763_v24 = vmul.f32 0.5, %v2364_v41 }
 0x4c9   :  { %v2502_v59 = vmul.f32 %v2470_v11, %v5723_v20  ;;  %v2472_v8 = vmul.f32 %v2440_v18, %v5730_v48  ;;  %4456 = vtanh.f32 %v2564_v10 }
 0x4ca   :  { %v2503_v25 = vmul.f32 %v2471_v45, %v2360_v54  ;;  %v2473_v50 = vmul.f32 %v2441_v13, %v2364_v41  ;;  %v2367_v43 = vpop.f32.mrb[88].mxu0 }
 0x4cb   :  { %v2504_v21 = vmul.f32 %v2472_v8, %v5730_v48  ;;  %v2534_v57 = vadd.f32 %v2502_v59, %v5723_v20  ;;  %v5740_v14 = vadd.f32 %v2367_v43, %v5563_v30  ;;  %v2369_v29 = vpop.f32.mrb[89].mxu0 }
 0x4cc   :  { %v2505_v3 = vmul.f32 %v2473_v50, %v2364_v41  ;;  %v2535_v17 = vadd.f32 %v2503_v25, %v2360_v54  ;;  %v5744_v52 = vadd.f32 %v2369_v29, %v5566_v40  ;;  %v2371_v27 = vpop.f32.mrb[90].mxu0 }
 0x4cd   :  { %v2536_v34 = vadd.f32 %v2504_v21, %v5730_v48  ;;  %v2566_v23 = vmul.f32 0.7978846, %v2534_v57  ;;  %v2442_v39 = vmul.f32 0.044715, %v5740_v14  ;;  %v5750_v9 = vadd.f32 %v2371_v27, %v5563_v30  ;;  %v2373_v26 = vpop.f32.mrb[91].mxu0 }
 0x4ce   :  { %v2537_v2 = vadd.f32 %v2505_v3, %v2364_v41  ;;  %v2567_v5 = vmul.f32 0.7978846, %v2535_v17  ;;  %v2443_v61 = vmul.f32 0.044715, %v5744_v52  ;;  %v5754_v22 = vadd.f32 %v2373_v26, %v5566_v40 }
 0x4cf   :  { %v2568_v35 = vmul.f32 0.7978846, %v2536_v34  ;;  %4458 = vtanh.f32 %v2566_v23  ;;  %v2444_v51 = vmul.f32 0.044715, %v5750_v9  ;;  %v2474_v36 = vmul.f32 %v2442_v39, %v5740_v14 }
 0x4d0   :  { %v2569_v46 = vmul.f32 0.7978846, %v2537_v2  ;;  %4460 = vtanh.f32 %v2567_v5  ;;  %v4451_v38 = vpop.eup %4450  ;;  %v2475_v16 = vmul.f32 %v2443_v61, %v5744_v52  ;;  %v2445_v47 = vmul.f32 0.044715, %v5754_v22 }
 0x4d1   :  { %4462 = vtanh.f32 %v2568_v35  ;;  %v4453_v55 = vpop.eup %4452  ;;  %v2627_v44 = vadd.f32 1.0, %v4451_v38  ;;  %v2476_v32 = vmul.f32 %v2444_v51, %v5750_v9  ;;  %v2506_v50 = vmul.f32 %v2474_v36, %v5740_v14 }
 0x4d2   :  { %4464 = vtanh.f32 %v2569_v46  ;;  %v4455_v42 = vpop.eup %4454  ;;  %v2507_v37 = vmul.f32 %v2475_v16, %v5744_v52  ;;  %v2477_v60 = vmul.f32 %v2445_v47, %v5754_v22  ;;  %v2377_v19 = vpop.f32.mrb[92].mxu0  ;;  %v2629_v53 = vadd.f32 1.0, %v4453_v55 }
 0x4d3   :  { %v4457_v56 = vpop.eup %4456  ;;  %v5770_v1 = vadd.f32 %v2377_v19, %v5563_v30  ;;  %v2379_v54 = vpop.f32.mrb[93].mxu0  ;;  %v2659_v15 = vmul.f32 %v2627_v44, %v2403_v31  ;;  %v2626_v49 = vadd.f32 1.0, %v4455_v42  ;;  %v2508_v27 = vmul.f32 %v2476_v32, %v5750_v9 }
 0x4d4   :  { %v2509_v12 = vmul.f32 %v2477_v60, %v5754_v22  ;;  %v5774_v6 = vadd.f32 %v2379_v54, %v5566_v40  ;;  %v2381_v10 = vpop.f32.mrb[94].mxu0  ;;  %v2661_v58 = vmul.f32 %v2629_v53, %v2405_v28  ;;  %v2628_v41 = vadd.f32 1.0, %v4457_v56 }
 0x4d5   :  { %v2446_v63 = vmul.f32 0.044715, %v5770_v1  ;;  %v5778_v7 = vadd.f32 %v2381_v10, %v5563_v30  ;;  %v2383_v11 = vpop.f32.mrb[95].mxu0  ;;  %v2658_v18 = vmul.f32 %v2626_v49, %v2402_v33  ;;  %v2539_v45 = vadd.f32 %v2507_v37, %v5744_v52 }
 0x4d6   :  { %v2447_v13 = vmul.f32 0.044715, %v5774_v6  ;;  %v5783_v59 = vadd.f32 %v2383_v11, %v5566_v40  ;;  %v2683_v8 = vpack.c.bf16 %v2661_v58, %v2659_v15  ;;  %v2660_v25 = vmul.f32 %v2628_v41, %v2404_v62 }
 0x4d7   :  { %v2448_v21 = vmul.f32 0.044715, %v5778_v7  ;;  %v2541_v43 = vadd.f32 %v2509_v12, %v5754_v22  ;;  %v2571_v57 = vmul.f32 0.7978846, %v2539_v45  ;;  %v2478_v3 = vmul.f32 %v2446_v63, %v5770_v1 }
 0x4d8   :  { %v2479_v29 = vmul.f32 %v2447_v13, %v5774_v6  ;;  %v2449_v33 = vmul.f32 0.044715, %v5783_v59  ;;  %2889 = vmatprep.mubr.bf16.mxu1 %v2683_v8  ;;  %v2682_v17 = vpack.c.bf16 %v2660_v25, %v2658_v18  ;;  %v2406_v35 = vmul.f32 0.5, %v5723_v20 }
 0x4d9   :  { %v4459_v30 = vpop.eup %4458  ;;  %v2480_v31 = vmul.f32 %v2448_v21, %v5778_v7  ;;  %v2573_v23 = vmul.f32 0.7978846, %v2541_v43  ;;  %4466 = vtanh.f32 %v2571_v57  ;;  %v2408_v51 = vmul.f32 0.5, %v5730_v48 }
 0x4da   :  { %v4461_v40 = vpop.eup %4460  ;;  %v2630_v34 = vadd.f32 1.0, %v4459_v30  ;;  %v2511_v26 = vmul.f32 %v2479_v29, %v5774_v6  ;;  %v2481_v2 = vmul.f32 %v2449_v33, %v5783_v59  ;;  %2890 = vmatmul.mubr.bf16.gmra.mrb[80].mxu1 %v2682_v17  ;;  %v2510_v46 = vmul.f32 %v2478_v3, %v5770_v1 }
 0x4db   :  { %v4463_v39 = vpop.eup %4462  ;;  %v2631_v5 = vadd.f32 1.0, %v4461_v40  ;;  %4468 = vtanh.f32 %v2573_v23  ;;  %v2512_v38 = vmul.f32 %v2480_v31, %v5778_v7  ;;  %v2538_v44 = vadd.f32 %v2506_v50, %v5740_v14 }
 0x4dc   :  { %v4465_v61 = vpop.eup %4464  ;;  %v2632_v62 = vadd.f32 1.0, %v4463_v39  ;;  %v2513_v16 = vmul.f32 %v2481_v2, %v5783_v59  ;;  %v2662_v28 = vmul.f32 %v2630_v34, %v2406_v35  ;;  %v2540_v42 = vadd.f32 %v2508_v27, %v5750_v9 }
 0x4dd   :  { %v2633_v47 = vadd.f32 1.0, %v4465_v61  ;;  %v2663_v36 = vmul.f32 %v2631_v5, %v5761_v4  ;;  %v2543_v48 = vadd.f32 %v2511_v26, %v5774_v6  ;;  %v2570_v19 = vmul.f32 0.7978846, %v2538_v44  ;;  %v4283_v44 = vld [vmem:[#allocation10 + $0xcc] ss:$16 sps:$4 sm:$0xff]  }
 0x4de   :  { %v2664_v55 = vmul.f32 %v2632_v62, %v2408_v51  ;;  %v2545_v37 = vadd.f32 %v2513_v16, %v5783_v59  ;;  %v2572_v53 = vmul.f32 0.7978846, %v2540_v42  ;;  %v2542_v15 = vadd.f32 %v2510_v46, %v5770_v1  ;;  %v4268_v51 = vld [vmem:[#allocation10 + $0x84] ss:$16 sps:$4 sm:$0xff]   ;;  %v4269_v62 = vld [vmem:[#allocation10 + $0x88] ss:$16 sps:$4 sm:$0xff]  }
 0x4df   :  { %v2665_v20 = vmul.f32 %v2633_v47, %v5763_v24  ;;  %v2575_v32 = vmul.f32 0.7978846, %v2543_v48  ;;  %4470 = vtanh.f32 %v2570_v19  ;;  %v2544_v49 = vadd.f32 %v2512_v38, %v5778_v7  ;;  %3274 = vmatprep.subr.bf16.mxu0 %v4268_v51  ;;  %v4272_v46 = vld [vmem:[#allocation10 + $0xa0] ss:$16 sps:$4 sm:$0xff]   ;;  %v4277_v38 = vld [vmem:[#allocation10 + $0xac] ss:$16 sps:$4 sm:$0xff]  }
 0x4e0   :  { %v2684_v60 = vpack.c.bf16 %v2664_v55, %v2662_v28  ;;  %v2577_v54 = vmul.f32 0.7978846, %v2545_v37  ;;  %4472 = vtanh.f32 %v2572_v53  ;;  %v2574_v4 = vmul.f32 0.7978846, %v2542_v15  ;;  %v4275_v16 = vld [vmem:[#allocation10 + $0xa8] ss:$16 sps:$4 sm:$0xff]  }
 0x4e1   :  { %v2685_v56 = vpack.c.bf16 %v2665_v20, %v2663_v36  ;;  %4474 = vtanh.f32 %v2575_v32  ;;  %v2576_v24 = vmul.f32 0.7978846, %v2544_v49  ;;  %v2411_v41 = vmul.f32 0.5, %v5744_v52  ;;  %v4278_v47 = vld [vmem:[#allocation10 + $0xc0] ss:$16 sps:$4 sm:$0xff]  }
 0x4e2   :  { %4476 = vtanh.f32 %v2577_v54  ;;  %v2413_v63 = vmul.f32 0.5, %v5754_v22  ;;  %v2410_v43 = vmul.f32 0.5, %v5740_v14  ;;  %v2412_v57 = vmul.f32 0.5, %v5750_v9  ;;  %v4280_v28 = vld [vmem:[#allocation10 + $0xc4] ss:$16 sps:$4 sm:$0xff]  }
 0x4e3   :  { %2897 = vmatprep.mubr.bf16.mxu1 %v2685_v56  ;;  %v4467_v12 = vpop.eup %4466  ;;  %4478 = vtanh.f32 %v2574_v4  ;;  %v2415_v52 = vmul.f32 0.5, %v5774_v6  ;;  %v2417_v40 = vmul.f32 0.5, %v5783_v59  ;;  %v2414_v34 = vmul.f32 0.5, %v5770_v1  ;;  %v4266_v59 = vld [vmem:[#allocation10 + $0x80] ss:$16 sps:$4 sm:$0xff]  }
 0x4e4   :  { %2898 = vmatmul.mubr.bf16.gmra.mrb[84].mxu1 %v2684_v60  ;;  %v2635_v58 = vadd.f32 1.0, %v4467_v12  ;;  %4480 = vtanh.f32 %v2576_v24  ;;  %v2416_v23 = vmul.f32 0.5, %v5778_v7  ;;  %v4271_v1 = vld [vmem:[#allocation10 + $0x8c] ss:$16 sps:$4 sm:$0xff]   ;;  %v4274_v7 = vld [vmem:[#allocation10 + $0xa4] ss:$16 sps:$4 sm:$0xff]   ;;  %3275 = vmatpush1.bf16.msra.mxu0 %v4266_v59 }
 0x4e5   :  { %v4469_v10 = vpop.eup %4468  ;;  %3387 = vmatprep.subr.bf16.mxu1 %v4271_v1  ;;  %3276 = vmatprep.subr.bf16.mxu0 %v4274_v7  ;;  %v4281_v55 = vld [vmem:[#allocation10 + $0xc8] ss:$16 sps:$4 sm:$0xff]   ;;  %v4284_v42 = vld [vmem:[#allocation10 + $0xe0] ss:$16 sps:$4 sm:$0xff]   ;;  %v4286_v36 = vld [vmem:[#allocation10 + $0xe4] ss:$16 sps:$4 sm:$0xff]  }
 0x4e6   :  { %v2637_v11 = vadd.f32 1.0, %v4469_v10  ;;  %v2667_v18 = vmul.f32 %v2635_v58, %v2411_v41  ;;  %3388 = vmatpush1.bf16.msra.mxu1 %v4269_v62  ;;  %v4287_v20 = vld [vmem:[#allocation10 + $0xe8] ss:$16 sps:$4 sm:$0xff]   ;;  %v4289_v48 = vld [vmem:[#allocation10 + $0xec] ss:$16 sps:$4 sm:$0xff]  }
 0x4e7   :  { %3389 = vmatprep.subr.bf16.mxu1 %v4277_v38  ;;  %v5820_v60 = vld [vmem:[%s5880_s9] ss:$0 sm:$0xff]  ;;  %s4667_s9 = smov [#allocation11]  }
 0x4e8   :  { %v2669_v45 = vmul.f32 %v2637_v11, %v2413_v63  ;;  %3277 = vmatpush1.bf16.msra.mxu0 %v4272_v46  ;;  %s3561_s21 = sshll.u32 %s4667_s9, 4  ;;  %s3562_s21 = int_to_ptr.vmem [resolvable:$true] %s3561_s21 }
 0x4e9   :  { %v4471_v8 = vpop.eup %4470  ;;  %3278 = vmatprep.subr.bf16.mxu0 %v4280_v28  ;;  %s4624_s23 = scalar_lea.vmem %s3562_s21, 8192  ;;  %p4629_p13 = scmp.lt.s32.totalorder %s3562_s21, %s3562_s21 }
 0x4ea   :  { %v2687_v13 = vpack.c.bf16 %v2669_v45, %v2667_v18  ;;  %v4473_v25 = vpop.eup %4472  ;;  %v2634_v50 = vadd.f32 1.0, %v4471_v8  ;;  %3390 = vmatpush1.bf16.msra.mxu1 %v4275_v16  ;;  %p4625_p12 = scmp.ne.s32.totalorder %s3562_s21, %s4624_s23  ;;  %p4630_p0 = scmp.lt.s32.totalorder %s4624_s23, %s4624_s23 }
 0x4eb   :  { %v4475_v21 = vpop.eup %4474  ;;  %v2636_v30 = vadd.f32 1.0, %v4473_v25  ;;  %3391 = vmatprep.subr.bf16.mxu1 %v4283_v44 }
 0x4ec   :  { %2905 = vmatprep.mubr.bf16.mxu1 %v2687_v13  ;;  %v4477_v3 = vpop.eup %4476  ;;  %v2639_v29 = vadd.f32 1.0, %v4475_v21  ;;  %v2666_v33 = vmul.f32 %v2634_v50, %v2410_v43  ;;  %3279 = vmatpush1.bf16.msra.mxu0 %v4278_v47  ;;  %p4631_p1 = por %p4630_p0, %p4629_p13 }
 0x4ed   :  { %v4479_v22 = vpop.eup %4478  ;;  %v2668_v17 = vmul.f32 %v2636_v30, %v2412_v57  ;;  %v2641_v27 = vadd.f32 1.0, %v4477_v3  ;;  %3280 = vmatprep.subr.bf16.mxu0 %v4286_v36 }
 0x4ee   :  { %v4481_v31 = vpop.eup %4480  ;;  %v2638_v39 = vadd.f32 1.0, %v4479_v22  ;;  %v2671_v26 = vmul.f32 %v2639_v29, %v2415_v52  ;;  %3392 = vmatpush1.bf16.msra.mxu1 %v4281_v55  ;;  %p4632_p2 = pnand %p4631_p1, %p4625_p12 }
 0x4ef   :  { %v2686_v14 = vpack.c.bf16 %v2668_v17, %v2666_v33  ;;  %v2673_v9 = vmul.f32 %v2641_v27, %v2417_v40  ;;  %v2640_v2 = vadd.f32 1.0, %v4481_v31  ;;  %3393 = vmatprep.subr.bf16.mxu1 %v4289_v48 }
 0x4f0   :  { %v2670_v6 = vmul.f32 %v2638_v39, %v2414_v34  ;;  %3281 = vmatpush1.bf16.msra.mxu0 %v4284_v42 }
 0x4f1   :  { %2906 = vmatmul.mubr.bf16.gmra.mrb[88].mxu1 %v2686_v14  ;;  %v2689_v5 = vpack.c.bf16 %v2673_v9, %v2671_v26  ;;  %v2672_v61 = vmul.f32 %v2640_v2, %v2416_v23 }
 0x4f2   :  { %3394 = vmatpush1.bf16.msra.mxu1 %v4287_v20 }
 0x4f3   :  { %2913 = vmatprep.mubr.bf16.mxu1 %v2689_v5  ;;  %v2688_v35 = vpack.c.bf16 %v2672_v61, %v2670_v6 }
 0x4f9   :  { %2914 = vmatmul.mubr.bf16.gmra.mrb[92].mxu1 %v2688_v35 }
 0x4fa   :  { %3411 = vmatprep.mubr.bf16.mxu1 %v4665_v0 }
 0x578   :  { %v4008_v37 = vpop.f32.mrb[64].mxu1 }
 0x579   :  { %v4009_v19 = vpop.f32.mrb[65].mxu1 }
 0x57a   :  { %v4010_v53 = vadd.f32 %v4009_v19, %v4008_v37  ;;  %v4011_v56 = vpop.f32.mrb[66].mxu1 }
 0x57b   :  { %v4012_v32 = vpop.f32.mrb[67].mxu1 }
 0x57c   :  { %v2860_v54 = vadd.f32 %v4010_v53, %v5820_v60  ;;  %v4013_v15 = vadd.f32 %v4012_v32, %v4011_v56 }
 0x57e   :  { %v2938_v49 = vmul.f32 0.044715, %v2860_v54  ;;  %v2863_v4 = vadd.f32 %v4013_v15, %v5820_v60  ;;  %v2922_v6 = vmul.f32 0.5, %v2860_v54 }
 0x580   :  { %v2954_v24 = vmul.f32 %v2938_v49, %v2860_v54  ;;  %v2939_v12 = vmul.f32 0.044715, %v2863_v4  ;;  %v4014_v10 = vpop.f32.mrb[68].mxu1  ;;  %v2923_v35 = vmul.f32 0.5, %v2863_v4 }
 0x581   :  { %v4015_v58 = vpop.f32.mrb[69].mxu1 }
 0x582   :  { %v2970_v41 = vmul.f32 %v2954_v24, %v2860_v54  ;;  %v2955_v63 = vmul.f32 %v2939_v12, %v2863_v4  ;;  %v4016_v11 = vadd.f32 %v4015_v58, %v4014_v10  ;;  %v4017_v18 = vpop.f32.mrb[70].mxu1 }
 0x583   :  { %v4018_v45 = vpop.f32.mrb[71].mxu1 }
 0x584   :  { %v2986_v13 = vadd.f32 %v2970_v41, %v2860_v54  ;;  %v2971_v8 = vmul.f32 %v2955_v63, %v2863_v4  ;;  %v2868_v25 = vadd.f32 %v4016_v11, %v5820_v60  ;;  %v4019_v50 = vadd.f32 %v4018_v45, %v4017_v18 }
 0x586   :  { %v3002_v21 = vmul.f32 0.7978846, %v2986_v13  ;;  %v2987_v43 = vadd.f32 %v2971_v8, %v2863_v4  ;;  %v2940_v57 = vmul.f32 0.044715, %v2868_v25  ;;  %v2871_v30 = vadd.f32 %v4019_v50, %v5820_v60 }
 0x587   :  { %v2924_v48 = vmul.f32 0.5, %v2868_v25 }
 0x588   :  { %4482 = vtanh.f32 %v3002_v21  ;;  %v3003_v3 = vmul.f32 0.7978846, %v2987_v43  ;;  %v2956_v52 = vmul.f32 %v2940_v57, %v2868_v25  ;;  %v2941_v29 = vmul.f32 0.044715, %v2871_v30 }
 0x589   :  { %v2925_v19 = vmul.f32 0.5, %v2871_v30 }
 0x58a   :  { %4484 = vtanh.f32 %v3003_v3  ;;  %v2957_v22 = vmul.f32 %v2941_v29, %v2871_v30  ;;  %v2972_v33 = vmul.f32 %v2956_v52, %v2868_v25 }
 0x58c   :  { %v2973_v17 = vmul.f32 %v2957_v22, %v2871_v30  ;;  %v2988_v40 = vadd.f32 %v2972_v33, %v2868_v25 }
 0x58e   :  { %v2989_v27 = vadd.f32 %v2973_v17, %v2871_v30  ;;  %v3004_v31 = vmul.f32 0.7978846, %v2988_v40 }
 0x58f   :  { %v4020_v23 = vpop.f32.mrb[72].mxu1 }
 0x590   :  { %v3005_v34 = vmul.f32 0.7978846, %v2989_v27  ;;  %4486 = vtanh.f32 %v3004_v31  ;;  %v4021_v14 = vpop.f32.mrb[73].mxu1 }
 0x591   :  { %v4022_v26 = vadd.f32 %v4021_v14, %v4020_v23  ;;  %v4023_v9 = vpop.f32.mrb[74].mxu1 }
 0x592   :  { %v4483_v39 = vpop.eup %4482  ;;  %4488 = vtanh.f32 %v3005_v34  ;;  %v4024_v61 = vpop.f32.mrb[75].mxu1 }
 0x593   :  { %v3034_v2 = vadd.f32 1.0, %v4483_v39  ;;  %v2876_v59 = vadd.f32 %v4022_v26, %v5820_v60  ;;  %v4025_v51 = vadd.f32 %v4024_v61, %v4023_v9 }
 0x594   :  { %v4485_v5 = vpop.eup %4484 }
 0x595   :  { %v3035_v62 = vadd.f32 1.0, %v4485_v5  ;;  %v2942_v1 = vmul.f32 0.044715, %v2876_v59  ;;  %v2879_v7 = vadd.f32 %v4025_v51, %v5820_v60  ;;  %v3050_v46 = vmul.f32 %v3034_v2, %v2922_v6 }
 0x596   :  { %v2926_v17 = vmul.f32 0.5, %v2876_v59 }
 0x597   :  { %v3051_v38 = vmul.f32 %v3035_v62, %v2923_v35  ;;  %v2958_v16 = vmul.f32 %v2942_v1, %v2876_v59  ;;  %v2943_v47 = vmul.f32 0.044715, %v2879_v7  ;;  %v2927_v40 = vmul.f32 0.5, %v2879_v7 }
 0x599   :  { %v3066_v28 = vpack.c.bf16 %v3051_v38, %v3050_v46  ;;  %v2959_v44 = vmul.f32 %v2943_v47, %v2879_v7  ;;  %v2974_v36 = vmul.f32 %v2958_v16, %v2876_v59 }
 0x59a   :  { %v4487_v55 = vpop.eup %4486 }
 0x59b   :  { %3299 = vmatmul.mubr.bf16.vlgmr.msra.gmra.mrb[96].mxu0 %v3066_v28  ;;  %3412 = vmatmul.mubr.bf16.vlgmr.msra.gmra.mrb[96].mxu1 %v3066_v28  ;;  %v3036_v42 = vadd.f32 1.0, %v4487_v55  ;;  %v4026_v37 = vpop.f32.mrb[76].mxu1  ;;  %v2975_v56 = vmul.f32 %v2959_v44, %v2879_v7  ;;  %v2990_v32 = vadd.f32 %v2974_v36, %v2876_v59 }
 0x59c   :  { %v4489_v20 = vpop.eup %4488  ;;  %3308 = vmatprep.mubr.bf16.mxu0 %v4665_v0  ;;  %3421 = vmatprep.mubr.bf16.mxu1 %v4665_v0  ;;  %v4027_v54 = vpop.f32.mrb[77].mxu1 }
 0x59d   :  { %v3037_v53 = vadd.f32 1.0, %v4489_v20  ;;  %v3052_v15 = vmul.f32 %v3036_v42, %v2924_v48  ;;  %v4028_v49 = vadd.f32 %v4027_v54, %v4026_v37  ;;  %v4029_v4 = vpop.f32.mrb[78].mxu1  ;;  %v2991_v12 = vadd.f32 %v2975_v56, %v2879_v7 }
 0x59e   :  { %v3006_v10 = vmul.f32 0.7978846, %v2990_v32  ;;  %v4030_v58 = vpop.f32.mrb[79].mxu1 }
 0x59f   :  { %v3053_v24 = vmul.f32 %v3037_v53, %v2925_v19  ;;  %v2884_v41 = vadd.f32 %v4028_v49, %v5820_v60  ;;  %v4031_v63 = vadd.f32 %v4030_v58, %v4029_v4  ;;  %v3007_v18 = vmul.f32 0.7978846, %v2991_v12 }
 0x5a0   :  { %4490 = vtanh.f32 %v3006_v10 }
 0x5a1   :  { %v3067_v11 = vpack.c.bf16 %v3053_v24, %v3052_v15  ;;  %v2944_v45 = vmul.f32 0.044715, %v2884_v41  ;;  %v2887_v13 = vadd.f32 %v4031_v63, %v5820_v60  ;;  %4492 = vtanh.f32 %v3007_v18 }
 0x5a2   :  { %v2928_v44 = vmul.f32 0.5, %v2884_v41 }
 0x5a3   :  { %3309 = vmatmul.mubr.bf16.gmra.mrb[100].mxu0 %v3067_v11  ;;  %3422 = vmatmul.mubr.bf16.gmra.mrb[100].mxu1 %v3067_v11  ;;  %v2960_v8 = vmul.f32 %v2944_v45, %v2884_v41  ;;  %v2945_v25 = vmul.f32 0.044715, %v2887_v13  ;;  %v2929_v42 = vmul.f32 0.5, %v2887_v13 }
 0x5a4   :  { %3318 = vmatprep.mubr.bf16.mxu0 %v4665_v0  ;;  %3431 = vmatprep.mubr.bf16.mxu1 %v4665_v0 }
 0x5a5   :  { %v2961_v50 = vmul.f32 %v2945_v25, %v2887_v13  ;;  %v2976_v21 = vmul.f32 %v2960_v8, %v2884_v41 }
 0x5a7   :  { %v2977_v43 = vmul.f32 %v2961_v50, %v2887_v13  ;;  %v2992_v57 = vadd.f32 %v2976_v21, %v2884_v41 }
 0x5a9   :  { %v2993_v30 = vadd.f32 %v2977_v43, %v2887_v13  ;;  %v3008_v3 = vmul.f32 0.7978846, %v2992_v57 }
 0x5aa   :  { %v4491_v52 = vpop.eup %4490 }
 0x5ab   :  { %v4493_v29 = vpop.eup %4492  ;;  %v3038_v22 = vadd.f32 1.0, %v4491_v52  ;;  %v3009_v33 = vmul.f32 0.7978846, %v2993_v30  ;;  %4494 = vtanh.f32 %v3008_v3 }
 0x5ac   :  { %v3039_v27 = vadd.f32 1.0, %v4493_v29 }
 0x5ad   :  { %v4032_v31 = vpop.f32.mrb[80].mxu1  ;;  %4496 = vtanh.f32 %v3009_v33  ;;  %v3054_v23 = vmul.f32 %v3038_v22, %v2926_v17 }
 0x5ae   :  { %v4033_v34 = vpop.f32.mrb[81].mxu1  ;;  %v3055_v39 = vmul.f32 %v3039_v27, %v2927_v40 }
 0x5af   :  { %v4034_v14 = vadd.f32 %v4033_v34, %v4032_v31  ;;  %v4035_v26 = vpop.f32.mrb[82].mxu1 }
 0x5b0   :  { %v4036_v9 = vpop.f32.mrb[83].mxu1  ;;  %v3068_v2 = vpack.c.bf16 %v3055_v39, %v3054_v23 }
 0x5b1   :  { %v2892_v5 = vadd.f32 %v4034_v14, %v5820_v60  ;;  %v4037_v6 = vadd.f32 %v4036_v9, %v4035_v26 }
 0x5b2   :  { %3319 = vmatmul.mubr.bf16.gmra.mrb[104].mxu0 %v3068_v2  ;;  %3432 = vmatmul.mubr.bf16.gmra.mrb[104].mxu1 %v3068_v2 }
 0x5b3   :  { %v2946_v61 = vmul.f32 0.044715, %v2892_v5  ;;  %v2895_v35 = vadd.f32 %v4037_v6, %v5820_v60  ;;  %3328 = vmatprep.mubr.bf16.mxu0 %v4665_v0  ;;  %3441 = vmatprep.mubr.bf16.mxu1 %v4665_v0  ;;  %v2930_v29 = vmul.f32 0.5, %v2892_v5 }
 0x5b5   :  { %v4495_v59 = vpop.eup %4494  ;;  %v2962_v51 = vmul.f32 %v2946_v61, %v2892_v5  ;;  %v2947_v62 = vmul.f32 0.044715, %v2895_v35  ;;  %v2931_v17 = vmul.f32 0.5, %v2895_v35 }
 0x5b6   :  { %v3040_v7 = vadd.f32 1.0, %v4495_v59 }
 0x5b7   :  { %v4038_v1 = vpop.f32.mrb[84].mxu1  ;;  %v4497_v46 = vpop.eup %4496  ;;  %v2963_v38 = vmul.f32 %v2947_v62, %v2895_v35  ;;  %v2978_v47 = vmul.f32 %v2962_v51, %v2892_v5 }
 0x5b8   :  { %v4039_v16 = vpop.f32.mrb[85].mxu1  ;;  %v3041_v36 = vadd.f32 1.0, %v4497_v46  ;;  %v3056_v56 = vmul.f32 %v3040_v7, %v2928_v44 }
 0x5b9   :  { %v4040_v28 = vadd.f32 %v4039_v16, %v4038_v1  ;;  %v4041_v55 = vpop.f32.mrb[86].mxu1  ;;  %v2979_v48 = vmul.f32 %v2963_v38, %v2895_v35  ;;  %v2994_v37 = vadd.f32 %v2978_v47, %v2892_v5 }
 0x5ba   :  { %v4042_v20 = vpop.f32.mrb[87].mxu1  ;;  %v3057_v32 = vmul.f32 %v3041_v36, %v2929_v42 }
 0x5bb   :  { %v5839_v19 = vadd.f32 %v4040_v28, %v5820_v60  ;;  %v4043_v53 = vadd.f32 %v4042_v20, %v4041_v55  ;;  %v2995_v54 = vadd.f32 %v2979_v48, %v2895_v35  ;;  %v3010_v15 = vmul.f32 0.7978846, %v2994_v37 }
 0x5bc   :  { %v3069_v24 = vpack.c.bf16 %v3057_v32, %v3056_v56 }
 0x5bd   :  { %v2948_v49 = vmul.f32 0.044715, %v5839_v19  ;;  %v2903_v4 = vadd.f32 %v4043_v53, %v5820_v60  ;;  %v3011_v12 = vmul.f32 0.7978846, %v2995_v54  ;;  %4498 = vtanh.f32 %v3010_v15 }
 0x5be   :  { %3329 = vmatmul.mubr.bf16.gmra.mrb[108].mxu0 %v3069_v24  ;;  %3442 = vmatmul.mubr.bf16.gmra.mrb[108].mxu1 %v3069_v24  ;;  %v2932_v47 = vmul.f32 0.5, %v5839_v19 }
 0x5bf   :  { %v2964_v10 = vmul.f32 %v2948_v49, %v5839_v19  ;;  %v2949_v58 = vmul.f32 0.044715, %v2903_v4  ;;  %3338 = vmatprep.mubr.bf16.mxu0 %v4665_v0  ;;  %3451 = vmatprep.mubr.bf16.mxu1 %v4665_v0  ;;  %4500 = vtanh.f32 %v3011_v12  ;;  %v2933_v28 = vmul.f32 0.5, %v2903_v4 }
 0x5c1   :  { %v2965_v41 = vmul.f32 %v2949_v58, %v2903_v4  ;;  %v2980_v63 = vmul.f32 %v2964_v10, %v5839_v19 }
 0x5c3   :  { %v2981_v11 = vmul.f32 %v2965_v41, %v2903_v4  ;;  %v2996_v18 = vadd.f32 %v2980_v63, %v5839_v19 }
 0x5c4   :  { %v4044_v8 = vpop.f32.mrb[88].mxu1 }
 0x5c5   :  { %v2997_v45 = vadd.f32 %v2981_v11, %v2903_v4  ;;  %v3012_v13 = vmul.f32 0.7978846, %v2996_v18  ;;  %v4045_v21 = vpop.f32.mrb[89].mxu1 }
 0x5c6   :  { %v4046_v43 = vadd.f32 %v4045_v21, %v4044_v8  ;;  %v4047_v57 = vpop.f32.mrb[90].mxu1 }
 0x5c7   :  { %v3013_v25 = vmul.f32 0.7978846, %v2997_v45  ;;  %4502 = vtanh.f32 %v3012_v13  ;;  %v4499_v50 = vpop.eup %4498  ;;  %v4048_v52 = vpop.f32.mrb[91].mxu1 }
 0x5c8   :  { %v3042_v30 = vadd.f32 1.0, %v4499_v50  ;;  %v2908_v22 = vadd.f32 %v4046_v43, %v5820_v60  ;;  %v4049_v33 = vadd.f32 %v4048_v52, %v4047_v57 }
 0x5c9   :  { %4504 = vtanh.f32 %v3013_v25  ;;  %v4501_v3 = vpop.eup %4500 }
 0x5ca   :  { %v3043_v40 = vadd.f32 1.0, %v4501_v3  ;;  %v2950_v27 = vmul.f32 0.044715, %v2908_v22  ;;  %v2911_v31 = vadd.f32 %v4049_v33, %v5820_v60  ;;  %v3058_v34 = vmul.f32 %v3042_v30, %v2930_v29 }
 0x5cb   :  { %v2934_v63 = vmul.f32 0.5, %v2908_v22 }
 0x5cc   :  { %v3059_v23 = vmul.f32 %v3043_v40, %v2931_v17  ;;  %v2966_v39 = vmul.f32 %v2950_v27, %v2908_v22  ;;  %v2951_v14 = vmul.f32 0.044715, %v2911_v31  ;;  %v4050_v26 = vpop.f32.mrb[92].mxu1  ;;  %v2935_v11 = vmul.f32 0.5, %v2911_v31 }
 0x5cd   :  { %v4051_v2 = vpop.f32.mrb[93].mxu1 }
 0x5ce   :  { %v3070_v9 = vpack.c.bf16 %v3059_v23, %v3058_v34  ;;  %v2967_v61 = vmul.f32 %v2951_v14, %v2911_v31  ;;  %v4052_v59 = vadd.f32 %v4051_v2, %v4050_v26  ;;  %v4053_v51 = vpop.f32.mrb[94].mxu1  ;;  %v2982_v5 = vmul.f32 %v2966_v39, %v2908_v22 }
 0x5cf   :  { %v4054_v62 = vpop.f32.mrb[95].mxu1 }
 0x5d0   :  { %3339 = vmatmul.mubr.bf16.gmra.mrb[112].mxu0 %v3070_v9  ;;  %3452 = vmatmul.mubr.bf16.gmra.mrb[112].mxu1 %v3070_v9  ;;  %v2916_v7 = vadd.f32 %v4052_v59, %v5820_v60  ;;  %v4055_v46 = vadd.f32 %v4054_v62, %v4053_v51  ;;  %v2983_v38 = vmul.f32 %v2967_v61, %v2911_v31 }
 0x5d1   :  { %v4503_v6 = vpop.eup %4502  ;;  %3348 = vmatprep.mubr.bf16.mxu0 %v4665_v0  ;;  %3461 = vmatprep.mubr.bf16.mxu1 %v4665_v0  ;;  %v2998_v16 = vadd.f32 %v2982_v5, %v2908_v22 }
 0x5d2   :  { %v3044_v35 = vadd.f32 1.0, %v4503_v6  ;;  %v2952_v44 = vmul.f32 0.044715, %v2916_v7  ;;  %v2919_v42 = vadd.f32 %v4055_v46, %v5820_v60  ;;  %v2999_v36 = vadd.f32 %v2983_v38, %v2911_v31 }
 0x5d3   :  { %v4505_v1 = vpop.eup %4504  ;;  %v3014_v20 = vmul.f32 0.7978846, %v2998_v16  ;;  %v2936_v43 = vmul.f32 0.5, %v2916_v7 }
 0x5d4   :  { %v3045_v55 = vadd.f32 1.0, %v4505_v1  ;;  %v3060_v48 = vmul.f32 %v3044_v35, %v2932_v47  ;;  %v2968_v53 = vmul.f32 %v2952_v44, %v2916_v7  ;;  %v2953_v56 = vmul.f32 0.044715, %v2919_v42 }
 0x5d5   :  { %v3015_v32 = vmul.f32 0.7978846, %v2999_v36  ;;  %4506 = vtanh.f32 %v3014_v20  ;;  %v2937_v57 = vmul.f32 0.5, %v2919_v42 }
 0x5d6   :  { %v3061_v37 = vmul.f32 %v3045_v55, %v2933_v28  ;;  %v2969_v15 = vmul.f32 %v2953_v56, %v2919_v42  ;;  %v2984_v49 = vmul.f32 %v2968_v53, %v2916_v7 }
 0x5d7   :  { %4508 = vtanh.f32 %v3015_v32 }
 0x5d8   :  { %v3071_v54 = vpack.c.bf16 %v3061_v37, %v3060_v48  ;;  %v2985_v19 = vmul.f32 %v2969_v15, %v2919_v42  ;;  %v3000_v60 = vadd.f32 %v2984_v49, %v2916_v7 }
 0x5da   :  { %3349 = vmatmul.mubr.bf16.gmra.mrb[116].mxu0 %v3071_v54  ;;  %3462 = vmatmul.mubr.bf16.gmra.mrb[116].mxu1 %v3071_v54  ;;  %v3001_v4 = vadd.f32 %v2985_v19, %v2919_v42  ;;  %v3016_v24 = vmul.f32 0.7978846, %v3000_v60 }
 0x5db   :  { %3358 = vmatprep.mubr.bf16.mxu0 %v4665_v0  ;;  %3471 = vmatprep.mubr.bf16.mxu1 %v4665_v0 }
 0x5dc   :  { %v3017_v12 = vmul.f32 0.7978846, %v3001_v4  ;;  %4510 = vtanh.f32 %v3016_v24 }
 0x5de   :  { %4512 = vtanh.f32 %v3017_v12 }
 0x5df   :  { %v4507_v10 = vpop.eup %4506 }
 0x5e0   :  { %v3046_v58 = vadd.f32 1.0, %v4507_v10 }
 0x5e1   :  { %v4509_v41 = vpop.eup %4508 }
 0x5e2   :  { %v3047_v18 = vadd.f32 1.0, %v4509_v41  ;;  %v3062_v45 = vmul.f32 %v3046_v58, %v2934_v63 }
 0x5e4   :  { %v3063_v13 = vmul.f32 %v3047_v18, %v2935_v11 }
 0x5e6   :  { %v3072_v8 = vpack.c.bf16 %v3063_v13, %v3062_v45  ;;  %v4511_v25 = vpop.eup %4510 }
 0x5e7   :  { %v3048_v50 = vadd.f32 1.0, %v4511_v25 }
 0x5e8   :  { %3359 = vmatmul.mubr.bf16.gmra.mrb[120].mxu0 %v3072_v8  ;;  %3472 = vmatmul.mubr.bf16.gmra.mrb[120].mxu1 %v3072_v8  ;;  %v4513_v21 = vpop.eup %4512 }
 0x5e9   :  { %3368 = vmatprep.mubr.bf16.mxu0 %v4665_v0  ;;  %3481 = vmatprep.mubr.bf16.mxu1 %v4665_v0  ;;  %v3049_v30 = vadd.f32 1.0, %v4513_v21  ;;  %v3064_v3 = vmul.f32 %v3048_v50, %v2936_v43 }
 0x5eb   :  { %v3065_v52 = vmul.f32 %v3049_v30, %v2937_v57 }
 0x5ed   :  { %v3073_v29 = vpack.c.bf16 %v3065_v52, %v3064_v3 }
 0x5f0   :  { %3369 = vmatmul.mubr.bf16.gmra.mrb[124].mxu0 %v3073_v29  ;;  %3482 = vmatmul.mubr.bf16.gmra.mrb[124].mxu1 %v3073_v29 }
 0x66e   :  { %v3300_v22 = vpop.f32.mrb[96].mxu0  ;;  %v3413_v33 = vpop.f32.mrb[96].mxu1 }
 0x66f   :  { %3492 = vst [vmem:[#allocation11] sm:$0xff] %v3300_v22  ;;  %3494 = vst [vmem:[#allocation11 + $0x10] sm:$0xff] %v3413_v33  ;;  %v3302_v17 = vpop.f32.mrb[97].mxu0  ;;  %v3415_v40 = vpop.f32.mrb[97].mxu1 }
 0x670   :  { %3493 = vst [vmem:[#allocation11 + $0x8] sm:$0xff] %v3302_v17  ;;  %3495 = vst [vmem:[#allocation11 + $0x18] sm:$0xff] %v3415_v40  ;;  %v3304_v27 = vpop.f32.mrb[98].mxu0  ;;  %v3417_v31 = vpop.f32.mrb[98].mxu1 }
 0x671   :  { %3496 = vst [vmem:[#allocation11 + $0x20] sm:$0xff] %v3304_v27  ;;  %3498 = vst [vmem:[#allocation11 + $0x30] sm:$0xff] %v3417_v31  ;;  %v3306_v0 = vpop.f32.mrb[99].mxu0  ;;  %v3419_v34 = vpop.f32.mrb[99].mxu1 }
 0x672   :  { %3497 = vst [vmem:[#allocation11 + $0x28] sm:$0xff] %v3306_v0  ;;  %3499 = vst [vmem:[#allocation11 + $0x38] sm:$0xff] %v3419_v34 }
 0x676   :  { %v3310_v23 = vpop.f32.mrb[100].mxu0  ;;  %v3423_v39 = vpop.f32.mrb[100].mxu1 }
 0x677   :  { %3500 = vst [vmem:[#allocation11 + $0x40] sm:$0xff] %v3310_v23  ;;  %3502 = vst [vmem:[#allocation11 + $0x50] sm:$0xff] %v3423_v39  ;;  %v3312_v14 = vpop.f32.mrb[101].mxu0  ;;  %v3425_v26 = vpop.f32.mrb[101].mxu1 }
 0x678   :  { %3501 = vst [vmem:[#allocation11 + $0x48] sm:$0xff] %v3312_v14  ;;  %3503 = vst [vmem:[#allocation11 + $0x58] sm:$0xff] %v3425_v26  ;;  %v3314_v9 = vpop.f32.mrb[102].mxu0  ;;  %v3427_v2 = vpop.f32.mrb[102].mxu1 }
 0x679   :  { %3504 = vst [vmem:[#allocation11 + $0x60] sm:$0xff] %v3314_v9  ;;  %3506 = vst [vmem:[#allocation11 + $0x70] sm:$0xff] %v3427_v2  ;;  %v3316_v6 = vpop.f32.mrb[103].mxu0  ;;  %v3429_v61 = vpop.f32.mrb[103].mxu1 }
 0x67a   :  { %3505 = vst [vmem:[#allocation11 + $0x68] sm:$0xff] %v3316_v6  ;;  %3507 = vst [vmem:[#allocation11 + $0x78] sm:$0xff] %v3429_v61 }
 0x685   :  { %v3320_v59 = vpop.f32.mrb[104].mxu0  ;;  %v3433_v51 = vpop.f32.mrb[104].mxu1 }
 0x686   :  { %3508 = vst [vmem:[#allocation11 + $0x80] sm:$0xff] %v3320_v59  ;;  %3510 = vst [vmem:[#allocation11 + $0x90] sm:$0xff] %v3433_v51  ;;  %v3322_v5 = vpop.f32.mrb[105].mxu0  ;;  %v3435_v62 = vpop.f32.mrb[105].mxu1 }
 0x687   :  { %3509 = vst [vmem:[#allocation11 + $0x88] sm:$0xff] %v3322_v5  ;;  %3511 = vst [vmem:[#allocation11 + $0x98] sm:$0xff] %v3435_v62  ;;  %v3324_v35 = vpop.f32.mrb[106].mxu0  ;;  %v3437_v1 = vpop.f32.mrb[106].mxu1 }
 0x688   :  { %3512 = vst [vmem:[#allocation11 + $0xa0] sm:$0xff] %v3324_v35  ;;  %3514 = vst [vmem:[#allocation11 + $0xb0] sm:$0xff] %v3437_v1  ;;  %v3326_v7 = vpop.f32.mrb[107].mxu0  ;;  %v3439_v46 = vpop.f32.mrb[107].mxu1 }
 0x689   :  { %3513 = vst [vmem:[#allocation11 + $0xa8] sm:$0xff] %v3326_v7  ;;  %3515 = vst [vmem:[#allocation11 + $0xb8] sm:$0xff] %v3439_v46 }
 0x691   :  { %v3330_v38 = vpop.f32.mrb[108].mxu0  ;;  %v3443_v16 = vpop.f32.mrb[108].mxu1 }
 0x692   :  { %3516 = vst [vmem:[#allocation11 + $0xc0] sm:$0xff] %v3330_v38  ;;  %3518 = vst [vmem:[#allocation11 + $0xd0] sm:$0xff] %v3443_v16  ;;  %v3332_v47 = vpop.f32.mrb[109].mxu0  ;;  %v3445_v28 = vpop.f32.mrb[109].mxu1 }
 0x693   :  { %3517 = vst [vmem:[#allocation11 + $0xc8] sm:$0xff] %v3332_v47  ;;  %3519 = vst [vmem:[#allocation11 + $0xd8] sm:$0xff] %v3445_v28  ;;  %v3334_v55 = vpop.f32.mrb[110].mxu0  ;;  %v3447_v44 = vpop.f32.mrb[110].mxu1 }
 0x694   :  { %3520 = vst [vmem:[#allocation11 + $0xe0] sm:$0xff] %v3334_v55  ;;  %3522 = vst [vmem:[#allocation11 + $0xf0] sm:$0xff] %v3447_v44  ;;  %v3336_v42 = vpop.f32.mrb[111].mxu0  ;;  %v3449_v36 = vpop.f32.mrb[111].mxu1 }
 0x695   :  { %3521 = vst [vmem:[#allocation11 + $0xe8] sm:$0xff] %v3336_v42  ;;  %3523 = vst [vmem:[#allocation11 + $0xf8] sm:$0xff] %v3449_v36 }
 0x6a3   :  { %v3340_v20 = vpop.f32.mrb[112].mxu0  ;;  %v3453_v48 = vpop.f32.mrb[112].mxu1 }
 0x6a4   :  { %3524 = vst [vmem:[#allocation11 + $0x100] sm:$0xff] %v3340_v20  ;;  %3526 = vst [vmem:[#allocation11 + $0x110] sm:$0xff] %v3453_v48  ;;  %v3342_v37 = vpop.f32.mrb[113].mxu0  ;;  %v3455_v53 = vpop.f32.mrb[113].mxu1 }
 0x6a5   :  { %3525 = vst [vmem:[#allocation11 + $0x108] sm:$0xff] %v3342_v37  ;;  %3527 = vst [vmem:[#allocation11 + $0x118] sm:$0xff] %v3455_v53  ;;  %v3344_v56 = vpop.f32.mrb[114].mxu0  ;;  %v3457_v32 = vpop.f32.mrb[114].mxu1 }
 0x6a6   :  { %3528 = vst [vmem:[#allocation11 + $0x120] sm:$0xff] %v3344_v56  ;;  %3530 = vst [vmem:[#allocation11 + $0x130] sm:$0xff] %v3457_v32  ;;  %v3346_v54 = vpop.f32.mrb[115].mxu0  ;;  %v3459_v15 = vpop.f32.mrb[115].mxu1 }
 0x6a7   :  { %3529 = vst [vmem:[#allocation11 + $0x128] sm:$0xff] %v3346_v54  ;;  %3531 = vst [vmem:[#allocation11 + $0x138] sm:$0xff] %v3459_v15 }
 0x6ad   :  { %v3350_v49 = vpop.f32.mrb[116].mxu0  ;;  %v3463_v19 = vpop.f32.mrb[116].mxu1 }
 0x6ae   :  { %3532 = vst [vmem:[#allocation11 + $0x140] sm:$0xff] %v3350_v49  ;;  %3534 = vst [vmem:[#allocation11 + $0x150] sm:$0xff] %v3463_v19  ;;  %v3352_v60 = vpop.f32.mrb[117].mxu0  ;;  %v3465_v4 = vpop.f32.mrb[117].mxu1 }
 0x6af   :  { %3533 = vst [vmem:[#allocation11 + $0x148] sm:$0xff] %v3352_v60  ;;  %3535 = vst [vmem:[#allocation11 + $0x158] sm:$0xff] %v3465_v4  ;;  %v3354_v24 = vpop.f32.mrb[118].mxu0  ;;  %v3467_v12 = vpop.f32.mrb[118].mxu1 }
 0x6b0   :  { %3536 = vst [vmem:[#allocation11 + $0x160] sm:$0xff] %v3354_v24  ;;  %3538 = vst [vmem:[#allocation11 + $0x170] sm:$0xff] %v3467_v12  ;;  %v3356_v10 = vpop.f32.mrb[119].mxu0  ;;  %v3469_v58 = vpop.f32.mrb[119].mxu1 }
 0x6b1   :  { %3537 = vst [vmem:[#allocation11 + $0x168] sm:$0xff] %v3356_v10  ;;  %3539 = vst [vmem:[#allocation11 + $0x178] sm:$0xff] %v3469_v58 }
 0x6bb   :  { %v3360_v41 = vpop.f32.mrb[120].mxu0  ;;  %v3473_v63 = vpop.f32.mrb[120].mxu1 }
 0x6bc   :  { %3540 = vst [vmem:[#allocation11 + $0x180] sm:$0xff] %v3360_v41  ;;  %3542 = vst [vmem:[#allocation11 + $0x190] sm:$0xff] %v3473_v63  ;;  %v3362_v11 = vpop.f32.mrb[121].mxu0  ;;  %v3475_v18 = vpop.f32.mrb[121].mxu1 }
 0x6bd   :  { %3541 = vst [vmem:[#allocation11 + $0x188] sm:$0xff] %v3362_v11  ;;  %3543 = vst [vmem:[#allocation11 + $0x198] sm:$0xff] %v3475_v18  ;;  %v3364_v45 = vpop.f32.mrb[122].mxu0  ;;  %v3477_v13 = vpop.f32.mrb[122].mxu1 }
 0x6be   :  { %3544 = vst [vmem:[#allocation11 + $0x1a0] sm:$0xff] %v3364_v45  ;;  %3546 = vst [vmem:[#allocation11 + $0x1b0] sm:$0xff] %v3477_v13  ;;  %v3366_v8 = vpop.f32.mrb[123].mxu0  ;;  %v3479_v25 = vpop.f32.mrb[123].mxu1 }
 0x6bf   :  { %3545 = vst [vmem:[#allocation11 + $0x1a8] sm:$0xff] %v3366_v8  ;;  %3547 = vst [vmem:[#allocation11 + $0x1b8] sm:$0xff] %v3479_v25 }
 0x6c3   :  { %v3370_v50 = vpop.f32.mrb[124].mxu0  ;;  %v3483_v21 = vpop.f32.mrb[124].mxu1 }
 0x6c4   :  { %3548 = vst [vmem:[#allocation11 + $0x1c0] sm:$0xff] %v3370_v50  ;;  %3550 = vst [vmem:[#allocation11 + $0x1d0] sm:$0xff] %v3483_v21  ;;  %v3372_v43 = vpop.f32.mrb[125].mxu0  ;;  %v3485_v57 = vpop.f32.mrb[125].mxu1 }
 0x6c5   :  { %3549 = vst [vmem:[#allocation11 + $0x1c8] sm:$0xff] %v3372_v43  ;;  %3551 = vst [vmem:[#allocation11 + $0x1d8] sm:$0xff] %v3485_v57  ;;  %v3374_v30 = vpop.f32.mrb[126].mxu0  ;;  %v3487_v3 = vpop.f32.mrb[126].mxu1 }
 0x6c6   :  { %3552 = vst [vmem:[#allocation11 + $0x1e0] sm:$0xff] %v3374_v30  ;;  %3554 = vst [vmem:[#allocation11 + $0x1f0] sm:$0xff] %v3487_v3  ;;  %v3376_v52 = vpop.f32.mrb[127].mxu0  ;;  %v3489_v29 = vpop.f32.mrb[127].mxu1 }
 0x6c7   :  { %3553 = vst [vmem:[#allocation11 + $0x1e8] sm:$0xff] %v3376_v52  ;;  %3555 = vst [vmem:[#allocation11 + $0x1f8] sm:$0xff] %v3489_v29 }
 0x6c8   :  { %4635 = shalt.err (!%p4632_p2)
}
 0x6c9   :  { %s4636_s28 = scalar_lea.hbm %s5882_s11, 8192 }
 0x6ca   :  { %p4637_p3 = scmp.ne.s32.totalorder %s5882_s11, %s4636_s28  ;;  %p4640_p4 = scmp.lt.u32.totalorder %s4636_s28, %s5882_s11 }
 0x6cc   :  { %p4642_p5 = pnand %p4640_p4, %p4637_p3 }
 0x6ce   :  { %4645 = shalt.err (!%p4642_p5)
}
 0x6cf   :  { %s4668_s30 = smov 512   ;;  %s4669_s10 = smov 32  }
 0x6d0   :  { %3567 = dma.vmem_to_hbm [thread:$0]  %s3562_s21, 8192, %s5882_s11, [#allocation4], %s4668_s30, %s4668_s30, %s4669_s10  }
 0x6d1   :  { %4652 = dma.done.wait [#allocation4], 8192  }
 0x6d2   :  { %4653 = vsyncadd [#allocation4], 4294959104 }
 0x6d3   :  { %3571 = vsyncpa [#allocation3], 1 }
 0x6d4   :  { %3572 = vsyncpa [#allocation6], 1 }
 0x6d5   :  { %3573 = vsyncpa [#allocation9], 1 }
 0x6d6   :  { %3574 = vsyncpa [#allocation4], 1 }

</bundles_post_ra>
